<compile_context>
chip_gen: v6e
topology: v6e:2x2x1
jax: 0.10.0
libtpu: 0.0.40
codegen_flags: <defaults>
</compile_context>

<pallas_src>
import jax
import jax.numpy as jnp
from jax import lax
from jax.experimental import pallas as pl
from jax.experimental.pallas import tpu as pltpu

BN_EPS = 1e-5
SUBLANE = 8
VMEM_LIMIT = 32 * 1024 * 1024


def _round_up(x, m):
    return ((x + m - 1) // m) * m


def _pick_block_batch(n):
    """Largest sample block that still leaves >= 2 grid steps (pipelining)."""
    for bt in (8, 4, 2):
        if n % bt == 0 and n // bt >= 2:
            return bt
    return 1


# --------------------------------------------------------------------------
# Kernel
# --------------------------------------------------------------------------
def _make_conv_kernel(apply_input_act):
    """Bt-sample 3x3 SAME conv with optional fused input BN+ReLU and BN stats.

    Activations / scale / shift are f32 (VPU); the conv runs as 9 accumulating
    bf16 MXU dots with f32 accumulation, K = real channel count per tap.
    Emits the raw f32 conv output (real channels only) plus per-block
    (sum, sum-of-squares) rows for the wrapper-side BatchNorm fold.
    """

    def kernel(x_ref, scale_ref, shift_ref, w_ref, out_ref, stats_ref):
        Bt, H, W, Ci = x_ref.shape
        Co = out_ref.shape[-1]

        x = x_ref[...]                                    # (Bt, H, W, Ci) f32
        if apply_input_act:
            sc = scale_ref[...].reshape(1, 1, 1, Ci)
            sh = shift_ref[...].reshape(1, 1, 1, Ci)
            x = jnp.maximum(x * sc + sh, 0.0)             # prev layer's folded BN+ReLU

        # SAME zero padding built as a value (no scratch, no strided column stores).
        xb = x.astype(jnp.bfloat16)                       # MXU operand dtype
        zc = jnp.zeros((Bt, H, 1, Ci), jnp.bfloat16)
        zr = jnp.zeros((Bt, 1, W + 2, Ci), jnp.bfloat16)
        xpad = jnp.concatenate(
            [zr, jnp.concatenate([zc, xb, zc], axis=2), zr], axis=1)  # (Bt,H+2,W+2,Ci)

        # 9 accumulating MXU dots; K = real channels (no per-tap zero padding,
        # no im2col concat / patches buffer).
        acc = jnp.zeros((Bt * H * W, Co), jnp.float32)
        for kh in range(3):
            for kw in range(3):
                patch = xpad[:, kh:kh + H, kw:kw + W, :].reshape(Bt * H * W, Ci)
                acc = acc + jnp.dot(patch, w_ref[kh * 3 + kw],
                                    preferred_element_type=jnp.float32)
        # Conv bias intentionally omitted: cancels exactly under training-mode BN.
        out_ref[...] = acc.reshape(Bt, H, W, Co)

        # Per-block BN statistics in rows 0/1 of an 8-row (sublane-aligned) slab.
        s1 = jnp.sum(acc, axis=0, keepdims=True)
        s2 = jnp.sum(acc * acc, axis=0, keepdims=True)
        stats_ref[0] = jnp.concatenate(
            [s1, s2, jnp.zeros((6, Co), jnp.float32)], axis=0)

    return kernel


# --------------------------------------------------------------------------
# pallas_call wrapper
# --------------------------------------------------------------------------
def _conv_layer(x, scale, shift, w, apply_input_act, bt):
    """x: (N,H,W,Ci) f32, scale/shift: (1,Ci) f32, w: (9,Ci,Co) bf16."""
    N, H, W, Ci = x.shape
    Co = w.shape[-1]
    nb = N // bt

    return pl.pallas_call(
        _make_conv_kernel(apply_input_act),
        out_shape=(jax.ShapeDtypeStruct((N, H, W, Co), jnp.float32),
                   jax.ShapeDtypeStruct((nb, 8, Co), jnp.float32)),
        grid=(nb,),
        in_specs=[
            pl.BlockSpec((bt, H, W, Ci), lambda i: (i, 0, 0, 0)),
            pl.BlockSpec((1, Ci), lambda i: (0, 0)),
            pl.BlockSpec((1, Ci), lambda i: (0, 0)),
            pl.BlockSpec((9, Ci, Co), lambda i: (0, 0, 0)),
        ],
        out_specs=(
            pl.BlockSpec((bt, H, W, Co), lambda i: (i, 0, 0, 0)),
            pl.BlockSpec((1, 8, Co), lambda i: (i, 0, 0)),
        ),
        compiler_params=pltpu.CompilerParams(
            dimension_semantics=("parallel",),
            vmem_limit_bytes=VMEM_LIMIT),
    )(x, scale, shift, w)


# --------------------------------------------------------------------------
# Wrapper-side helpers (layout plumbing + BN fold; stays in XLA)
# --------------------------------------------------------------------------
def _pad_vec(v, cp):
    v = v.reshape(1, -1).astype(jnp.float32)
    return jnp.pad(v, ((0, 0), (0, cp - v.shape[1])))


def _pack_weight(w, ci_p, co_p):
    """(3,3,Ci,Co) f32 -> (9, Ci_p, Co_p) bf16, rows ordered (kh, kw)."""
    kh, kw, ci, co = w.shape
    wp = jnp.zeros((kh * kw, ci_p, co_p), jnp.float32)
    wp = wp.at[:, :ci, :co].set(w.reshape(kh * kw, ci, co).astype(jnp.float32))
    return wp.astype(jnp.bfloat16)


def _bn_affine(stats, gamma, beta, count, cp):
    """Fold training-mode BN into per-channel (scale, shift) from per-block sums."""
    s = jnp.sum(stats, axis=0)                       # (8, Cp)
    mean = s[0] / count
    var = s[1] / count - mean * mean                 # biased batch variance (f32)
    g = _pad_vec(gamma, cp)[0]
    b = _pad_vec(beta, cp)[0]
    scale = g * lax.rsqrt(var + BN_EPS)
    shift = b - mean * scale
    return scale.reshape(1, -1), shift.reshape(1, -1)


@jax.jit
def conv_block_forward(x_nchw, params):
    # NCHW (PyTorch) -> NHWC (kernel) -> NCHW (output).
    x = jnp.transpose(x_nchw, (0, 2, 3, 1)).astype(jnp.float32)
    N, H, W, Cin = x.shape
    Cout = params["w1"].shape[-1]

    # Channels rounded up only to 8 sublanes (no 128-lane padding anywhere).
    cin_p = _round_up(max(Cin, SUBLANE), SUBLANE)
    cout_p = _round_up(max(Cout, SUBLANE), SUBLANE)
    xp = jnp.pad(x, ((0, 0), (0, 0), (0, 0), (0, cin_p - Cin)))

    w1 = _pack_weight(params["w1"], cin_p, cout_p)
    w2 = _pack_weight(params["w2"], cout_p, cout_p)

    bt = _pick_block_batch(N)
    npix = N * H * W

    # layer 1: raw conv + per-block BN sums (identity input activation)
    id_sc = jnp.ones((1, cin_p), jnp.float32)
    id_sh = jnp.zeros((1, cin_p), jnp.float32)
    h1, st1 = _conv_layer(xp, id_sc, id_sh, w1, False, bt)
    sc1, sh1 = _bn_affine(st1, params["g1"], params["be1"], npix, cout_p)

    # layer 2: conv with layer-1 BN+ReLU fused into its input path
    h2, st2 = _conv_layer(h1, sc1, sh1, w2, True, bt)
    sc2, sh2 = _bn_affine(st2, params["g2"], params["be2"], npix, cout_p)

    # final BN+ReLU + channel slice + NCHW transpose: plain jnp, fused by XLA.
    out = jnp.maximum(h2 * sc2.reshape(1, 1, 1, -1) + sh2.reshape(1, 1, 1, -1), 0.0)
    out = out[..., :Cout]
    return jnp.transpose(out, (0, 3, 1, 2))


# --------------------------------------------------------------------------
# Params / reference / test
# --------------------------------------------------------------------------
def make_params(key, ch_in, ch_out):
    ks = jax.random.split(key, 8)
    return {
        "w1": 0.1 * jax.random.normal(ks[0], (3, 3, ch_in, ch_out), jnp.float32),
        "b1": 0.1 * jax.random.normal(ks[1], (1, ch_out), jnp.float32),
        "g1": 1.0 + 0.05 * jax.random.normal(ks[2], (1, ch_out), jnp.float32),
        "be1": 0.05 * jax.random.normal(ks[3], (1, ch_out), jnp.float32),
        "w2": 0.1 * jax.random.normal(ks[4], (3, 3, ch_out, ch_out), jnp.float32),
        "b2": 0.1 * jax.random.normal(ks[5], (1, ch_out), jnp.float32),
        "g2": 1.0 + 0.05 * jax.random.normal(ks[6], (1, ch_out), jnp.float32),
        "be2": 0.05 * jax.random.normal(ks[7], (1, ch_out), jnp.float32),
    }


def reference_forward(x_nchw, params):
    # pure-JAX f32 reference (XLA conv + training-mode BN with bias), NCHW in/out.
    x = jnp.transpose(x_nchw, (0, 2, 3, 1)).astype(jnp.float32)

    def conv(h, w, b):
        y = lax.conv_general_dilated(h, w, (1, 1), "SAME",
                                     dimension_numbers=("NHWC", "HWIO", "NHWC"))
        return y + b.reshape(1, 1, 1, -1)

    def bn_relu(h, g, be):
        mean = h.mean(axis=(0, 1, 2), keepdims=True)
        var = ((h - mean) ** 2).mean(axis=(0, 1, 2), keepdims=True)
        y = g.reshape(1, 1, 1, -1) * (h - mean) / jnp.sqrt(var + BN_EPS) \
            + be.reshape(1, 1, 1, -1)
        return jnp.maximum(y, 0.0)

    h = bn_relu(conv(x, params["w1"], params["b1"]), params["g1"], params["be1"])
    h = bn_relu(conv(h, params["w2"], params["b2"]), params["g2"], params["be2"])
    return jnp.transpose(h, (0, 3, 1, 2))


if __name__ == "__main__":
    key = jax.random.PRNGKey(0)
    kx, kp = jax.random.split(key)

    N, CH_IN, CH_OUT, H, W = 2, 4, 8, 16, 16
    x = jax.random.normal(kx, (N, CH_IN, H, W), jnp.float32)
    params = make_params(kp, CH_IN, CH_OUT)

    out = jax.block_until_ready(conv_block_forward(x, params))
    ref = jax.block_until_ready(reference_forward(x, params))

    assert out.shape == (N, CH_OUT, H, W), out.shape
    max_err = float(jnp.max(jnp.abs(out - ref)))
    # bf16 MXU operands with f32 accumulation (per the perf review) leave ~1e-3
    # level rounding on O(1) post-BN activations; 2e-2 keeps a comfortable margin
    # while still validating the conv/BN/ReLU pipeline against the f32 reference.
    assert jnp.allclose(out, ref, rtol=2e-2, atol=2e-2), max_err

    print("KERNEL_OK")
</pallas_src>

<mosaic_0001>
module attributes {stable_mosaic.version = 11 : i64} {
  func.func @kernel(%arg0: i32, %arg1: memref<1x16x16x8xf32, #tpu.memory_space<vmem>>, %arg2: memref<1x8xf32, #tpu.memory_space<vmem>>, %arg3: memref<1x8xf32, #tpu.memory_space<vmem>>, %arg4: memref<9x8x8xbf16, #tpu.memory_space<vmem>>, %arg5: memref<1x16x16x8xf32, #tpu.memory_space<vmem>>, %arg6: memref<1x8x8xf32, #tpu.memory_space<vmem>>) attributes {dimension_semantics = [#tpu.dimension_semantics<parallel>], iteration_bounds = array<i64: 2>, scalar_prefetch = 0 : i64, scratch_operands = 0 : i64, tpu.core_type = #tpu.core_type<tc>, window_params = [{transform_indices = @transform_0, window_bounds = array<i64: 1, 16, 16, 8>}, {pipeline_mode = #tpu.pipeline_mode<synchronous>, transform_indices = @transform_1, window_bounds = array<i64: 1, 8>}, {pipeline_mode = #tpu.pipeline_mode<synchronous>, transform_indices = @transform_2, window_bounds = array<i64: 1, 8>}, {pipeline_mode = #tpu.pipeline_mode<synchronous>, transform_indices = @transform_3, window_bounds = array<i64: 9, 8, 8>}, {transform_indices = @transform_4, window_bounds = array<i64: 1, 16, 16, 8>}, {transform_indices = @transform_5, window_bounds = array<i64: 1, 8, 8>}]} {
    %c0 = arith.constant 0 : index
    %c0_0 = arith.constant 0 : index
    %c0_1 = arith.constant 0 : index
    %c0_2 = arith.constant 0 : index
    %0 = vector.load %arg1[%c0, %c0_0, %c0_1, %c0_2] : memref<1x16x16x8xf32, #tpu.memory_space<vmem>>, vector<1x16x16x8xf32>
    %1 = arith.truncf %0 : vector<1x16x16x8xf32> to vector<1x16x16x8xbf16>
    %cst = arith.constant 0.000000e+00 : bf16
    %2 = vector.broadcast %cst : bf16 to vector<1x16x1x8xbf16>
    %cst_3 = arith.constant 0.000000e+00 : bf16
    %3 = vector.broadcast %cst_3 : bf16 to vector<1x1x18x8xbf16>
    %4 = tpu.concatenate %2, %1, %2 in 2 : vector<1x16x1x8xbf16>, vector<1x16x16x8xbf16>, vector<1x16x1x8xbf16> -> vector<1x16x18x8xbf16>
    %5 = tpu.concatenate %3, %4, %3 in 1 : vector<1x1x18x8xbf16>, vector<1x16x18x8xbf16>, vector<1x1x18x8xbf16> -> vector<1x18x18x8xbf16>
    %cst_4 = arith.constant 0.000000e+00 : f32
    %6 = vector.broadcast %cst_4 : f32 to vector<256x8xf32>
    %7 = vector.extract_strided_slice %5 {offsets = [0, 0, 0, 0], sizes = [1, 16, 16, 8], strides = [1, 1, 1, 1]} : vector<1x18x18x8xbf16> to vector<1x16x16x8xbf16>
    %8 = vector.shape_cast %7 : vector<1x16x16x8xbf16> to vector<256x8xbf16>
    %c0_5 = arith.constant 0 : index
    %c0_6 = arith.constant 0 : index
    %c0_7 = arith.constant 0 : index
    %9 = vector.load %arg4[%c0_5, %c0_6, %c0_7] : memref<9x8x8xbf16, #tpu.memory_space<vmem>>, vector<1x8x8xbf16>
    %10 = vector.shape_cast %9 : vector<1x8x8xbf16> to vector<8x8xbf16>
    %cst_8 = arith.constant dense<0.000000e+00> : vector<256x8xf32>
    %11 = tpu.matmul %8, %10, %cst_8 {dimension_numbers = #tpu.dot_dimension_numbers<[1], [0], [0], [1], [0, 0, 1, 1], [], []>} : vector<256x8xbf16>, vector<8x8xbf16>, vector<256x8xf32> -> vector<256x8xf32>
    %12 = arith.addf %6, %11 : vector<256x8xf32>
    %13 = vector.extract_strided_slice %5 {offsets = [0, 0, 1, 0], sizes = [1, 16, 16, 8], strides = [1, 1, 1, 1]} : vector<1x18x18x8xbf16> to vector<1x16x16x8xbf16>
    %14 = vector.shape_cast %13 : vector<1x16x16x8xbf16> to vector<256x8xbf16>
    %c1 = arith.constant 1 : index
    %c0_9 = arith.constant 0 : index
    %c0_10 = arith.constant 0 : index
    %15 = vector.load %arg4[%c1, %c0_9, %c0_10] : memref<9x8x8xbf16, #tpu.memory_space<vmem>>, vector<1x8x8xbf16>
    %16 = vector.shape_cast %15 : vector<1x8x8xbf16> to vector<8x8xbf16>
    %cst_11 = arith.constant dense<0.000000e+00> : vector<256x8xf32>
    %17 = tpu.matmul %14, %16, %cst_11 {dimension_numbers = #tpu.dot_dimension_numbers<[1], [0], [0], [1], [0, 0, 1, 1], [], []>} : vector<256x8xbf16>, vector<8x8xbf16>, vector<256x8xf32> -> vector<256x8xf32>
    %18 = arith.addf %12, %17 : vector<256x8xf32>
    %19 = vector.extract_strided_slice %5 {offsets = [0, 0, 2, 0], sizes = [1, 16, 16, 8], strides = [1, 1, 1, 1]} : vector<1x18x18x8xbf16> to vector<1x16x16x8xbf16>
    %20 = vector.shape_cast %19 : vector<1x16x16x8xbf16> to vector<256x8xbf16>
    %c2 = arith.constant 2 : index
    %c0_12 = arith.constant 0 : index
    %c0_13 = arith.constant 0 : index
    %21 = vector.load %arg4[%c2, %c0_12, %c0_13] : memref<9x8x8xbf16, #tpu.memory_space<vmem>>, vector<1x8x8xbf16>
    %22 = vector.shape_cast %21 : vector<1x8x8xbf16> to vector<8x8xbf16>
    %cst_14 = arith.constant dense<0.000000e+00> : vector<256x8xf32>
    %23 = tpu.matmul %20, %22, %cst_14 {dimension_numbers = #tpu.dot_dimension_numbers<[1], [0], [0], [1], [0, 0, 1, 1], [], []>} : vector<256x8xbf16>, vector<8x8xbf16>, vector<256x8xf32> -> vector<256x8xf32>
    %24 = arith.addf %18, %23 : vector<256x8xf32>
    %25 = vector.extract_strided_slice %5 {offsets = [0, 1, 0, 0], sizes = [1, 16, 16, 8], strides = [1, 1, 1, 1]} : vector<1x18x18x8xbf16> to vector<1x16x16x8xbf16>
    %26 = vector.shape_cast %25 : vector<1x16x16x8xbf16> to vector<256x8xbf16>
    %c3 = arith.constant 3 : index
    %c0_15 = arith.constant 0 : index
    %c0_16 = arith.constant 0 : index
    %27 = vector.load %arg4[%c3, %c0_15, %c0_16] : memref<9x8x8xbf16, #tpu.memory_space<vmem>>, vector<1x8x8xbf16>
    %28 = vector.shape_cast %27 : vector<1x8x8xbf16> to vector<8x8xbf16>
    %cst_17 = arith.constant dense<0.000000e+00> : vector<256x8xf32>
    %29 = tpu.matmul %26, %28, %cst_17 {dimension_numbers = #tpu.dot_dimension_numbers<[1], [0], [0], [1], [0, 0, 1, 1], [], []>} : vector<256x8xbf16>, vector<8x8xbf16>, vector<256x8xf32> -> vector<256x8xf32>
    %30 = arith.addf %24, %29 : vector<256x8xf32>
    %31 = vector.extract_strided_slice %5 {offsets = [0, 1, 1, 0], sizes = [1, 16, 16, 8], strides = [1, 1, 1, 1]} : vector<1x18x18x8xbf16> to vector<1x16x16x8xbf16>
    %32 = vector.shape_cast %31 : vector<1x16x16x8xbf16> to vector<256x8xbf16>
    %c4 = arith.constant 4 : index
    %c0_18 = arith.constant 0 : index
    %c0_19 = arith.constant 0 : index
    %33 = vector.load %arg4[%c4, %c0_18, %c0_19] : memref<9x8x8xbf16, #tpu.memory_space<vmem>>, vector<1x8x8xbf16>
    %34 = vector.shape_cast %33 : vector<1x8x8xbf16> to vector<8x8xbf16>
    %cst_20 = arith.constant dense<0.000000e+00> : vector<256x8xf32>
    %35 = tpu.matmul %32, %34, %cst_20 {dimension_numbers = #tpu.dot_dimension_numbers<[1], [0], [0], [1], [0, 0, 1, 1], [], []>} : vector<256x8xbf16>, vector<8x8xbf16>, vector<256x8xf32> -> vector<256x8xf32>
    %36 = arith.addf %30, %35 : vector<256x8xf32>
    %37 = vector.extract_strided_slice %5 {offsets = [0, 1, 2, 0], sizes = [1, 16, 16, 8], strides = [1, 1, 1, 1]} : vector<1x18x18x8xbf16> to vector<1x16x16x8xbf16>
    %38 = vector.shape_cast %37 : vector<1x16x16x8xbf16> to vector<256x8xbf16>
    %c5 = arith.constant 5 : index
    %c0_21 = arith.constant 0 : index
    %c0_22 = arith.constant 0 : index
    %39 = vector.load %arg4[%c5, %c0_21, %c0_22] : memref<9x8x8xbf16, #tpu.memory_space<vmem>>, vector<1x8x8xbf16>
    %40 = vector.shape_cast %39 : vector<1x8x8xbf16> to vector<8x8xbf16>
    %cst_23 = arith.constant dense<0.000000e+00> : vector<256x8xf32>
    %41 = tpu.matmul %38, %40, %cst_23 {dimension_numbers = #tpu.dot_dimension_numbers<[1], [0], [0], [1], [0, 0, 1, 1], [], []>} : vector<256x8xbf16>, vector<8x8xbf16>, vector<256x8xf32> -> vector<256x8xf32>
    %42 = arith.addf %36, %41 : vector<256x8xf32>
    %43 = vector.extract_strided_slice %5 {offsets = [0, 2, 0, 0], sizes = [1, 16, 16, 8], strides = [1, 1, 1, 1]} : vector<1x18x18x8xbf16> to vector<1x16x16x8xbf16>
    %44 = vector.shape_cast %43 : vector<1x16x16x8xbf16> to vector<256x8xbf16>
    %c6 = arith.constant 6 : index
    %c0_24 = arith.constant 0 : index
    %c0_25 = arith.constant 0 : index
    %45 = vector.load %arg4[%c6, %c0_24, %c0_25] : memref<9x8x8xbf16, #tpu.memory_space<vmem>>, vector<1x8x8xbf16>
    %46 = vector.shape_cast %45 : vector<1x8x8xbf16> to vector<8x8xbf16>
    %cst_26 = arith.constant dense<0.000000e+00> : vector<256x8xf32>
    %47 = tpu.matmul %44, %46, %cst_26 {dimension_numbers = #tpu.dot_dimension_numbers<[1], [0], [0], [1], [0, 0, 1, 1], [], []>} : vector<256x8xbf16>, vector<8x8xbf16>, vector<256x8xf32> -> vector<256x8xf32>
    %48 = arith.addf %42, %47 : vector<256x8xf32>
    %49 = vector.extract_strided_slice %5 {offsets = [0, 2, 1, 0], sizes = [1, 16, 16, 8], strides = [1, 1, 1, 1]} : vector<1x18x18x8xbf16> to vector<1x16x16x8xbf16>
    %50 = vector.shape_cast %49 : vector<1x16x16x8xbf16> to vector<256x8xbf16>
    %c7 = arith.constant 7 : index
    %c0_27 = arith.constant 0 : index
    %c0_28 = arith.constant 0 : index
    %51 = vector.load %arg4[%c7, %c0_27, %c0_28] : memref<9x8x8xbf16, #tpu.memory_space<vmem>>, vector<1x8x8xbf16>
    %52 = vector.shape_cast %51 : vector<1x8x8xbf16> to vector<8x8xbf16>
    %cst_29 = arith.constant dense<0.000000e+00> : vector<256x8xf32>
    %53 = tpu.matmul %50, %52, %cst_29 {dimension_numbers = #tpu.dot_dimension_numbers<[1], [0], [0], [1], [0, 0, 1, 1], [], []>} : vector<256x8xbf16>, vector<8x8xbf16>, vector<256x8xf32> -> vector<256x8xf32>
    %54 = arith.addf %48, %53 : vector<256x8xf32>
    %55 = vector.extract_strided_slice %5 {offsets = [0, 2, 2, 0], sizes = [1, 16, 16, 8], strides = [1, 1, 1, 1]} : vector<1x18x18x8xbf16> to vector<1x16x16x8xbf16>
    %56 = vector.shape_cast %55 : vector<1x16x16x8xbf16> to vector<256x8xbf16>
    %c8 = arith.constant 8 : index
    %c0_30 = arith.constant 0 : index
    %c0_31 = arith.constant 0 : index
    %57 = vector.load %arg4[%c8, %c0_30, %c0_31] : memref<9x8x8xbf16, #tpu.memory_space<vmem>>, vector<1x8x8xbf16>
    %58 = vector.shape_cast %57 : vector<1x8x8xbf16> to vector<8x8xbf16>
    %cst_32 = arith.constant dense<0.000000e+00> : vector<256x8xf32>
    %59 = tpu.matmul %56, %58, %cst_32 {dimension_numbers = #tpu.dot_dimension_numbers<[1], [0], [0], [1], [0, 0, 1, 1], [], []>} : vector<256x8xbf16>, vector<8x8xbf16>, vector<256x8xf32> -> vector<256x8xf32>
    %60 = arith.addf %54, %59 : vector<256x8xf32>
    %61 = vector.shape_cast %60 : vector<256x8xf32> to vector<1x16x16x8xf32>
    %c0_33 = arith.constant 0 : index
    %c0_34 = arith.constant 0 : index
    %c0_35 = arith.constant 0 : index
    %c0_36 = arith.constant 0 : index
    %62 = vector.load %arg5[%c0_33, %c0_34, %c0_35, %c0_36] : memref<1x16x16x8xf32, #tpu.memory_space<vmem>>, vector<1x16x16x8xf32>
    tpu.vector_store %arg5[%c0_33, %c0_34, %c0_35, %c0_36], %61 {strides = array<i32>} : memref<1x16x16x8xf32, #tpu.memory_space<vmem>>, vector<1x16x16x8xf32>,
    %cst_37 = arith.constant dense<0.000000e+00> : vector<8xf32>
    %63 = vector.multi_reduction <add>, %60, %cst_37 [0] : vector<256x8xf32> to vector<8xf32>
    %64 = vector.shape_cast %63 : vector<8xf32> to vector<1x8xf32>
    %65 = arith.mulf %60, %60 : vector<256x8xf32>
    %cst_38 = arith.constant dense<0.000000e+00> : vector<8xf32>
    %66 = vector.multi_reduction <add>, %65, %cst_38 [0] : vector<256x8xf32> to vector<8xf32>
    %67 = vector.shape_cast %66 : vector<8xf32> to vector<1x8xf32>
    %cst_39 = arith.constant 0.000000e+00 : f32
    %68 = vector.broadcast %cst_39 : f32 to vector<6x8xf32>
    %69 = tpu.concatenate %64, %67, %68 in 0 : vector<1x8xf32>, vector<1x8xf32>, vector<6x8xf32> -> vector<8x8xf32>
    %c0_40 = arith.constant 0 : index
    %c0_41 = arith.constant 0 : index
    %c0_42 = arith.constant 0 : index
    %70 = vector.load %arg6[%c0_40, %c0_41, %c0_42] : memref<1x8x8xf32, #tpu.memory_space<vmem>>, vector<1x8x8xf32>
    %71 = vector.shape_cast %70 : vector<1x8x8xf32> to vector<8x8xf32>
    %72 = vector.shape_cast %69 : vector<8x8xf32> to vector<1x8x8xf32>
    tpu.vector_store %arg6[%c0_40, %c0_41, %c0_42], %72 {strides = array<i32>} : memref<1x8x8xf32, #tpu.memory_space<vmem>>, vector<1x8x8xf32>,
    return
  }
  func.func @transform_0(%arg0: i32) -> (i32, i32, i32, i32) {
    %c0_i32 = arith.constant 0 : i32
    %c0_i32_0 = arith.constant 0 : i32
    %c0_i32_1 = arith.constant 0 : i32
    %c0_i32_2 = arith.constant 0 : i32
    return %arg0, %c0_i32, %c0_i32_0, %c0_i32_1 : i32, i32, i32, i32
  }
  func.func @transform_1(%arg0: i32) -> (i32, i32) {
    %c0_i32 = arith.constant 0 : i32
    %c0_i32_0 = arith.constant 0 : i32
    %c0_i32_1 = arith.constant 0 : i32
    return %c0_i32, %c0_i32_0 : i32, i32
  }
  func.func @transform_2(%arg0: i32) -> (i32, i32) {
    %c0_i32 = arith.constant 0 : i32
    %c0_i32_0 = arith.constant 0 : i32
    %c0_i32_1 = arith.constant 0 : i32
    return %c0_i32, %c0_i32_0 : i32, i32
  }
  func.func @transform_3(%arg0: i32) -> (i32, i32, i32) {
    %c0_i32 = arith.constant 0 : i32
    %c0_i32_0 = arith.constant 0 : i32
    %c0_i32_1 = arith.constant 0 : i32
    %c0_i32_2 = arith.constant 0 : i32
    return %c0_i32, %c0_i32_0, %c0_i32_1 : i32, i32, i32
  }
  func.func @transform_4(%arg0: i32) -> (i32, i32, i32, i32) {
    %c0_i32 = arith.constant 0 : i32
    %c0_i32_0 = arith.constant 0 : i32
    %c0_i32_1 = arith.constant 0 : i32
    %c0_i32_2 = arith.constant 0 : i32
    return %arg0, %c0_i32, %c0_i32_0, %c0_i32_1 : i32, i32, i32, i32
  }
  func.func @transform_5(%arg0: i32) -> (i32, i32, i32) {
    %c0_i32 = arith.constant 0 : i32
    %c0_i32_0 = arith.constant 0 : i32
    %c0_i32_1 = arith.constant 0 : i32
    return %arg0, %c0_i32, %c0_i32_0 : i32, i32, i32
  }
}

module attributes {stable_mosaic.version = 11 : i64} {
  func.func @kernel(%arg0: i32, %arg1: memref<1x16x16x8xf32, #tpu.memory_space<vmem>>, %arg2: memref<1x8xf32, #tpu.memory_space<vmem>>, %arg3: memref<1x8xf32, #tpu.memory_space<vmem>>, %arg4: memref<9x8x8xbf16, #tpu.memory_space<vmem>>, %arg5: memref<1x16x16x8xf32, #tpu.memory_space<vmem>>, %arg6: memref<1x8x8xf32, #tpu.memory_space<vmem>>) attributes {dimension_semantics = [#tpu.dimension_semantics<parallel>], iteration_bounds = array<i64: 2>, scalar_prefetch = 0 : i64, scratch_operands = 0 : i64, tpu.core_type = #tpu.core_type<tc>, window_params = [{transform_indices = @transform_0, window_bounds = array<i64: 1, 16, 16, 8>}, {pipeline_mode = #tpu.pipeline_mode<synchronous>, transform_indices = @transform_1, window_bounds = array<i64: 1, 8>}, {pipeline_mode = #tpu.pipeline_mode<synchronous>, transform_indices = @transform_2, window_bounds = array<i64: 1, 8>}, {pipeline_mode = #tpu.pipeline_mode<synchronous>, transform_indices = @transform_3, window_bounds = array<i64: 9, 8, 8>}, {transform_indices = @transform_4, window_bounds = array<i64: 1, 16, 16, 8>}, {transform_indices = @transform_5, window_bounds = array<i64: 1, 8, 8>}]} {
    %c0 = arith.constant 0 : index
    %c0_0 = arith.constant 0 : index
    %c0_1 = arith.constant 0 : index
    %c0_2 = arith.constant 0 : index
    %0 = vector.load %arg1[%c0, %c0_0, %c0_1, %c0_2] : memref<1x16x16x8xf32, #tpu.memory_space<vmem>>, vector<1x16x16x8xf32>
    %c0_3 = arith.constant 0 : index
    %c0_4 = arith.constant 0 : index
    %1 = vector.load %arg2[%c0_3, %c0_4] : memref<1x8xf32, #tpu.memory_space<vmem>>, vector<1x8xf32>
    %2 = vector.shape_cast %1 : vector<1x8xf32> to vector<1x1x1x8xf32>
    %c0_5 = arith.constant 0 : index
    %c0_6 = arith.constant 0 : index
    %3 = vector.load %arg3[%c0_5, %c0_6] : memref<1x8xf32, #tpu.memory_space<vmem>>, vector<1x8xf32>
    %4 = vector.shape_cast %3 : vector<1x8xf32> to vector<1x1x1x8xf32>
    %5 = vector.broadcast %2 : vector<1x1x1x8xf32> to vector<1x16x16x8xf32>
    %6 = arith.mulf %0, %5 : vector<1x16x16x8xf32>
    %7 = vector.broadcast %4 : vector<1x1x1x8xf32> to vector<1x16x16x8xf32>
    %8 = arith.addf %6, %7 : vector<1x16x16x8xf32>
    %cst = arith.constant 0.000000e+00 : f32
    %9 = vector.broadcast %cst : f32 to vector<1x16x16x8xf32>
    %10 = arith.maximumf %8, %9 : vector<1x16x16x8xf32>
    %11 = arith.truncf %10 : vector<1x16x16x8xf32> to vector<1x16x16x8xbf16>
    %cst_7 = arith.constant 0.000000e+00 : bf16
    %12 = vector.broadcast %cst_7 : bf16 to vector<1x16x1x8xbf16>
    %cst_8 = arith.constant 0.000000e+00 : bf16
    %13 = vector.broadcast %cst_8 : bf16 to vector<1x1x18x8xbf16>
    %14 = tpu.concatenate %12, %11, %12 in 2 : vector<1x16x1x8xbf16>, vector<1x16x16x8xbf16>, vector<1x16x1x8xbf16> -> vector<1x16x18x8xbf16>
    %15 = tpu.concatenate %13, %14, %13 in 1 : vector<1x1x18x8xbf16>, vector<1x16x18x8xbf16>, vector<1x1x18x8xbf16> -> vector<1x18x18x8xbf16>
    %cst_9 = arith.constant 0.000000e+00 : f32
    %16 = vector.broadcast %cst_9 : f32 to vector<256x8xf32>
    %17 = vector.extract_strided_slice %15 {offsets = [0, 0, 0, 0], sizes = [1, 16, 16, 8], strides = [1, 1, 1, 1]} : vector<1x18x18x8xbf16> to vector<1x16x16x8xbf16>
    %18 = vector.shape_cast %17 : vector<1x16x16x8xbf16> to vector<256x8xbf16>
    %c0_10 = arith.constant 0 : index
    %c0_11 = arith.constant 0 : index
    %c0_12 = arith.constant 0 : index
    %19 = vector.load %arg4[%c0_10, %c0_11, %c0_12] : memref<9x8x8xbf16, #tpu.memory_space<vmem>>, vector<1x8x8xbf16>
    %20 = vector.shape_cast %19 : vector<1x8x8xbf16> to vector<8x8xbf16>
    %cst_13 = arith.constant dense<0.000000e+00> : vector<256x8xf32>
    %21 = tpu.matmul %18, %20, %cst_13 {dimension_numbers = #tpu.dot_dimension_numbers<[1], [0], [0], [1], [0, 0, 1, 1], [], []>} : vector<256x8xbf16>, vector<8x8xbf16>, vector<256x8xf32> -> vector<256x8xf32>
    %22 = arith.addf %16, %21 : vector<256x8xf32>
    %23 = vector.extract_strided_slice %15 {offsets = [0, 0, 1, 0], sizes = [1, 16, 16, 8], strides = [1, 1, 1, 1]} : vector<1x18x18x8xbf16> to vector<1x16x16x8xbf16>
    %24 = vector.shape_cast %23 : vector<1x16x16x8xbf16> to vector<256x8xbf16>
    %c1 = arith.constant 1 : index
    %c0_14 = arith.constant 0 : index
    %c0_15 = arith.constant 0 : index
    %25 = vector.load %arg4[%c1, %c0_14, %c0_15] : memref<9x8x8xbf16, #tpu.memory_space<vmem>>, vector<1x8x8xbf16>
    %26 = vector.shape_cast %25 : vector<1x8x8xbf16> to vector<8x8xbf16>
    %cst_16 = arith.constant dense<0.000000e+00> : vector<256x8xf32>
    %27 = tpu.matmul %24, %26, %cst_16 {dimension_numbers = #tpu.dot_dimension_numbers<[1], [0], [0], [1], [0, 0, 1, 1], [], []>} : vector<256x8xbf16>, vector<8x8xbf16>, vector<256x8xf32> -> vector<256x8xf32>
    %28 = arith.addf %22, %27 : vector<256x8xf32>
    %29 = vector.extract_strided_slice %15 {offsets = [0, 0, 2, 0], sizes = [1, 16, 16, 8], strides = [1, 1, 1, 1]} : vector<1x18x18x8xbf16> to vector<1x16x16x8xbf16>
    %30 = vector.shape_cast %29 : vector<1x16x16x8xbf16> to vector<256x8xbf16>
    %c2 = arith.constant 2 : index
    %c0_17 = arith.constant 0 : index
    %c0_18 = arith.constant 0 : index
    %31 = vector.load %arg4[%c2, %c0_17, %c0_18] : memref<9x8x8xbf16, #tpu.memory_space<vmem>>, vector<1x8x8xbf16>
    %32 = vector.shape_cast %31 : vector<1x8x8xbf16> to vector<8x8xbf16>
    %cst_19 = arith.constant dense<0.000000e+00> : vector<256x8xf32>
    %33 = tpu.matmul %30, %32, %cst_19 {dimension_numbers = #tpu.dot_dimension_numbers<[1], [0], [0], [1], [0, 0, 1, 1], [], []>} : vector<256x8xbf16>, vector<8x8xbf16>, vector<256x8xf32> -> vector<256x8xf32>
    %34 = arith.addf %28, %33 : vector<256x8xf32>
    %35 = vector.extract_strided_slice %15 {offsets = [0, 1, 0, 0], sizes = [1, 16, 16, 8], strides = [1, 1, 1, 1]} : vector<1x18x18x8xbf16> to vector<1x16x16x8xbf16>
    %36 = vector.shape_cast %35 : vector<1x16x16x8xbf16> to vector<256x8xbf16>
    %c3 = arith.constant 3 : index
    %c0_20 = arith.constant 0 : index
    %c0_21 = arith.constant 0 : index
    %37 = vector.load %arg4[%c3, %c0_20, %c0_21] : memref<9x8x8xbf16, #tpu.memory_space<vmem>>, vector<1x8x8xbf16>
    %38 = vector.shape_cast %37 : vector<1x8x8xbf16> to vector<8x8xbf16>
    %cst_22 = arith.constant dense<0.000000e+00> : vector<256x8xf32>
    %39 = tpu.matmul %36, %38, %cst_22 {dimension_numbers = #tpu.dot_dimension_numbers<[1], [0], [0], [1], [0, 0, 1, 1], [], []>} : vector<256x8xbf16>, vector<8x8xbf16>, vector<256x8xf32> -> vector<256x8xf32>
    %40 = arith.addf %34, %39 : vector<256x8xf32>
    %41 = vector.extract_strided_slice %15 {offsets = [0, 1, 1, 0], sizes = [1, 16, 16, 8], strides = [1, 1, 1, 1]} : vector<1x18x18x8xbf16> to vector<1x16x16x8xbf16>
    %42 = vector.shape_cast %41 : vector<1x16x16x8xbf16> to vector<256x8xbf16>
    %c4 = arith.constant 4 : index
    %c0_23 = arith.constant 0 : index
    %c0_24 = arith.constant 0 : index
    %43 = vector.load %arg4[%c4, %c0_23, %c0_24] : memref<9x8x8xbf16, #tpu.memory_space<vmem>>, vector<1x8x8xbf16>
    %44 = vector.shape_cast %43 : vector<1x8x8xbf16> to vector<8x8xbf16>
    %cst_25 = arith.constant dense<0.000000e+00> : vector<256x8xf32>
    %45 = tpu.matmul %42, %44, %cst_25 {dimension_numbers = #tpu.dot_dimension_numbers<[1], [0], [0], [1], [0, 0, 1, 1], [], []>} : vector<256x8xbf16>, vector<8x8xbf16>, vector<256x8xf32> -> vector<256x8xf32>
    %46 = arith.addf %40, %45 : vector<256x8xf32>
    %47 = vector.extract_strided_slice %15 {offsets = [0, 1, 2, 0], sizes = [1, 16, 16, 8], strides = [1, 1, 1, 1]} : vector<1x18x18x8xbf16> to vector<1x16x16x8xbf16>
    %48 = vector.shape_cast %47 : vector<1x16x16x8xbf16> to vector<256x8xbf16>
    %c5 = arith.constant 5 : index
    %c0_26 = arith.constant 0 : index
    %c0_27 = arith.constant 0 : index
    %49 = vector.load %arg4[%c5, %c0_26, %c0_27] : memref<9x8x8xbf16, #tpu.memory_space<vmem>>, vector<1x8x8xbf16>
    %50 = vector.shape_cast %49 : vector<1x8x8xbf16> to vector<8x8xbf16>
    %cst_28 = arith.constant dense<0.000000e+00> : vector<256x8xf32>
    %51 = tpu.matmul %48, %50, %cst_28 {dimension_numbers = #tpu.dot_dimension_numbers<[1], [0], [0], [1], [0, 0, 1, 1], [], []>} : vector<256x8xbf16>, vector<8x8xbf16>, vector<256x8xf32> -> vector<256x8xf32>
    %52 = arith.addf %46, %51 : vector<256x8xf32>
    %53 = vector.extract_strided_slice %15 {offsets = [0, 2, 0, 0], sizes = [1, 16, 16, 8], strides = [1, 1, 1, 1]} : vector<1x18x18x8xbf16> to vector<1x16x16x8xbf16>
    %54 = vector.shape_cast %53 : vector<1x16x16x8xbf16> to vector<256x8xbf16>
    %c6 = arith.constant 6 : index
    %c0_29 = arith.constant 0 : index
    %c0_30 = arith.constant 0 : index
    %55 = vector.load %arg4[%c6, %c0_29, %c0_30] : memref<9x8x8xbf16, #tpu.memory_space<vmem>>, vector<1x8x8xbf16>
    %56 = vector.shape_cast %55 : vector<1x8x8xbf16> to vector<8x8xbf16>
    %cst_31 = arith.constant dense<0.000000e+00> : vector<256x8xf32>
    %57 = tpu.matmul %54, %56, %cst_31 {dimension_numbers = #tpu.dot_dimension_numbers<[1], [0], [0], [1], [0, 0, 1, 1], [], []>} : vector<256x8xbf16>, vector<8x8xbf16>, vector<256x8xf32> -> vector<256x8xf32>
    %58 = arith.addf %52, %57 : vector<256x8xf32>
    %59 = vector.extract_strided_slice %15 {offsets = [0, 2, 1, 0], sizes = [1, 16, 16, 8], strides = [1, 1, 1, 1]} : vector<1x18x18x8xbf16> to vector<1x16x16x8xbf16>
    %60 = vector.shape_cast %59 : vector<1x16x16x8xbf16> to vector<256x8xbf16>
    %c7 = arith.constant 7 : index
    %c0_32 = arith.constant 0 : index
    %c0_33 = arith.constant 0 : index
    %61 = vector.load %arg4[%c7, %c0_32, %c0_33] : memref<9x8x8xbf16, #tpu.memory_space<vmem>>, vector<1x8x8xbf16>
    %62 = vector.shape_cast %61 : vector<1x8x8xbf16> to vector<8x8xbf16>
    %cst_34 = arith.constant dense<0.000000e+00> : vector<256x8xf32>
    %63 = tpu.matmul %60, %62, %cst_34 {dimension_numbers = #tpu.dot_dimension_numbers<[1], [0], [0], [1], [0, 0, 1, 1], [], []>} : vector<256x8xbf16>, vector<8x8xbf16>, vector<256x8xf32> -> vector<256x8xf32>
    %64 = arith.addf %58, %63 : vector<256x8xf32>
    %65 = vector.extract_strided_slice %15 {offsets = [0, 2, 2, 0], sizes = [1, 16, 16, 8], strides = [1, 1, 1, 1]} : vector<1x18x18x8xbf16> to vector<1x16x16x8xbf16>
    %66 = vector.shape_cast %65 : vector<1x16x16x8xbf16> to vector<256x8xbf16>
    %c8 = arith.constant 8 : index
    %c0_35 = arith.constant 0 : index
    %c0_36 = arith.constant 0 : index
    %67 = vector.load %arg4[%c8, %c0_35, %c0_36] : memref<9x8x8xbf16, #tpu.memory_space<vmem>>, vector<1x8x8xbf16>
    %68 = vector.shape_cast %67 : vector<1x8x8xbf16> to vector<8x8xbf16>
    %cst_37 = arith.constant dense<0.000000e+00> : vector<256x8xf32>
    %69 = tpu.matmul %66, %68, %cst_37 {dimension_numbers = #tpu.dot_dimension_numbers<[1], [0], [0], [1], [0, 0, 1, 1], [], []>} : vector<256x8xbf16>, vector<8x8xbf16>, vector<256x8xf32> -> vector<256x8xf32>
    %70 = arith.addf %64, %69 : vector<256x8xf32>
    %71 = vector.shape_cast %70 : vector<256x8xf32> to vector<1x16x16x8xf32>
    %c0_38 = arith.constant 0 : index
    %c0_39 = arith.constant 0 : index
    %c0_40 = arith.constant 0 : index
    %c0_41 = arith.constant 0 : index
    %72 = vector.load %arg5[%c0_38, %c0_39, %c0_40, %c0_41] : memref<1x16x16x8xf32, #tpu.memory_space<vmem>>, vector<1x16x16x8xf32>
    tpu.vector_store %arg5[%c0_38, %c0_39, %c0_40, %c0_41], %71 {strides = array<i32>} : memref<1x16x16x8xf32, #tpu.memory_space<vmem>>, vector<1x16x16x8xf32>,
    %cst_42 = arith.constant dense<0.000000e+00> : vector<8xf32>
    %73 = vector.multi_reduction <add>, %70, %cst_42 [0] : vector<256x8xf32> to vector<8xf32>
    %74 = vector.shape_cast %73 : vector<8xf32> to vector<1x8xf32>
    %75 = arith.mulf %70, %70 : vector<256x8xf32>
    %cst_43 = arith.constant dense<0.000000e+00> : vector<8xf32>
    %76 = vector.multi_reduction <add>, %75, %cst_43 [0] : vector<256x8xf32> to vector<8xf32>
    %77 = vector.shape_cast %76 : vector<8xf32> to vector<1x8xf32>
    %cst_44 = arith.constant 0.000000e+00 : f32
    %78 = vector.broadcast %cst_44 : f32 to vector<6x8xf32>
    %79 = tpu.concatenate %74, %77, %78 in 0 : vector<1x8xf32>, vector<1x8xf32>, vector<6x8xf32> -> vector<8x8xf32>
    %c0_45 = arith.constant 0 : index
    %c0_46 = arith.constant 0 : index
    %c0_47 = arith.constant 0 : index
    %80 = vector.load %arg6[%c0_45, %c0_46, %c0_47] : memref<1x8x8xf32, #tpu.memory_space<vmem>>, vector<1x8x8xf32>
    %81 = vector.shape_cast %80 : vector<1x8x8xf32> to vector<8x8xf32>
    %82 = vector.shape_cast %79 : vector<8x8xf32> to vector<1x8x8xf32>
    tpu.vector_store %arg6[%c0_45, %c0_46, %c0_47], %82 {strides = array<i32>} : memref<1x8x8xf32, #tpu.memory_space<vmem>>, vector<1x8x8xf32>,
    return
  }
  func.func @transform_0(%arg0: i32) -> (i32, i32, i32, i32) {
    %c0_i32 = arith.constant 0 : i32
    %c0_i32_0 = arith.constant 0 : i32
    %c0_i32_1 = arith.constant 0 : i32
    %c0_i32_2 = arith.constant 0 : i32
    return %arg0, %c0_i32, %c0_i32_0, %c0_i32_1 : i32, i32, i32, i32
  }
  func.func @transform_1(%arg0: i32) -> (i32, i32) {
    %c0_i32 = arith.constant 0 : i32
    %c0_i32_0 = arith.constant 0 : i32
    %c0_i32_1 = arith.constant 0 : i32
    return %c0_i32, %c0_i32_0 : i32, i32
  }
  func.func @transform_2(%arg0: i32) -> (i32, i32) {
    %c0_i32 = arith.constant 0 : i32
    %c0_i32_0 = arith.constant 0 : i32
    %c0_i32_1 = arith.constant 0 : i32
    return %c0_i32, %c0_i32_0 : i32, i32
  }
  func.func @transform_3(%arg0: i32) -> (i32, i32, i32) {
    %c0_i32 = arith.constant 0 : i32
    %c0_i32_0 = arith.constant 0 : i32
    %c0_i32_1 = arith.constant 0 : i32
    %c0_i32_2 = arith.constant 0 : i32
    return %c0_i32, %c0_i32_0, %c0_i32_1 : i32, i32, i32
  }
  func.func @transform_4(%arg0: i32) -> (i32, i32, i32, i32) {
    %c0_i32 = arith.constant 0 : i32
    %c0_i32_0 = arith.constant 0 : i32
    %c0_i32_1 = arith.constant 0 : i32
    %c0_i32_2 = arith.constant 0 : i32
    return %arg0, %c0_i32, %c0_i32_0, %c0_i32_1 : i32, i32, i32, i32
  }
  func.func @transform_5(%arg0: i32) -> (i32, i32, i32) {
    %c0_i32 = arith.constant 0 : i32
    %c0_i32_0 = arith.constant 0 : i32
    %c0_i32_1 = arith.constant 0 : i32
    return %arg0, %c0_i32, %c0_i32_0 : i32, i32, i32
  }
}

</mosaic_0001>

<bundles_post_ra>
// kernel: conv_block_forward.3
= control target key start
LH: loop header
LB: loop body
LE: loop exit
PB: predicated region body
PF: predicated region fallthrough
CT: control target
= control target key end

     0   :  { %s3692_s18 = smov 0   ;;  %s5176_s0 = inlined_call_operand.vmem [shape: f32[2,16,16,8], index: 0, kind: input, shape index: {}]   ;;  %s5177_s1 = inlined_call_operand.vmem [shape: f32[1,8], index: 1, kind: input, shape index: {}]   ;;  %s5178_s2 = inlined_call_operand.vmem [shape: f32[1,8], index: 2, kind: input, shape index: {}]   ;;  %s5179_s3 = inlined_call_operand.vmem [shape: bf16[9,8,8], index: 3, kind: input, shape index: {}]   ;;  %s5180_s4 = inlined_call_operand.vmem [shape: f32[2,16,16,8], index: 4, kind: output, shape index: {0}]   ;;  %s5181_s5 = inlined_call_operand.vmem [shape: f32[2,8,8], index: 5, kind: output, shape index: {1}]  }
   0x1 LB: > { %s3007_s19 = sadd.s32 4294967295, %s3659_s18   ;;  %p3011_p0 = scmp.ge.s32.totalorder %s3659_s18, 1  ;;  %s3659_s18 = sphi %s3692_s18, %s16_s18  }
   0x2   : > { %p190_p1 = scmp.lt.s32.totalorder %s3659_s18, 3 }
   0x4   : > { %p191_p2 = pnand %p3011_p0, %p190_p1 }
   0x6   : > { %194 = sbr.rel (%p191_p2) target bundleno = 583 (0x247), region = 36 }
   0xb   : > { %v3019_v0 = vld [vmem:[%s5179_s3 + $0x4] sm:$0xf]  ;;  %vm815_vm0 = vcmask 1043456   ;;  %vm766_vm1 = vcmask 64512   ;;  %p222_p3 = scmp.lt.s32.totalorder %s3007_s19, 1  ;;  %v5182_v2 = vmov 0  }
   0xc   : > { %3634 = vmatprep.subr.msk.bf16.mxu0 %vm815_vm0, %v3019_v0  ;;  %3635 = vmatprep.subr.msk.bf16.mxu1 %vm815_vm0, %v3019_v0  ;;  %v817_v1 = vsel %vm815_vm0, %v3019_v0, 0  ;;  %v3707_v3 = vrot.slane %v5182_v2, 1  ;;  %v574_v4 = vld [vmem:[%s5179_s3] sm:$0xf]  ;;  %v3051_v5 = vld [vmem:[%s5179_s3 + $0x8] sm:$0xf] }
   0xd   : > { %3327 = vmatpush3.bf16.msra.mxu0 %v817_v1  ;;  %3633 = vmatpush3.bf16.msra.mxu1 %v817_v1  ;;  %s5301_s19 = smov (!%p222_p3, %s3007_s19), 1  ;;  %v3723_v6 = vld [vmem:[%s5177_s1] ss:$0 sm:$0xff]  ;;  %vm539_vm2 = vcmask 1040384   ;;  %vm540_vm3 = vsmask.f32 256 }
   0xe   : > { %5187 = vst [vmem:[#allocation2_spill] sm:$0xff] %v3707_v3  ;;  %3328 = vmatprep.mubr.msk.bf16.mxu0 %vm766_vm1, %v3707_v3  ;;  %s3171_s26 = sshll.u32 %s5301_s19, 8  ;;  %3636 = vmatprep.subr.msk.bf16.mxu1 %vm815_vm0, %v574_v4  ;;  %v3737_v7 = vld [vmem:[%s5178_s2] ss:$0 sm:$0xff]  ;;  %v3752_v20 = vsel %vm815_vm0, %v574_v4, 0  ;;  %v3776_v58 = vsel %vm815_vm0, %v3051_v5, 0  ;;  %vm3780_vm5 = vmand %vm539_vm2, %vm540_vm3 }
   0xf   : > { %3637 = vmatprep.subr.msk.bf16.mxu0 %vm815_vm0, %v3051_v5  ;;  %s3732_s6 = scalar_lea.vmem %s5176_s0, %s3171_s26  ;;  %vm575_vm4 = vsmask.f32 7424  ;;  %vm1207_vm6 = vcmask 1046528   ;;  %s4876_s25 = scalar_lea.vmem %s5180_s4, %s3171_s26  ;;  %vm2918_vm7 = vcmask 1041408  }
  0x10   : > { %v237_v8 = vld [vmem:[%s3732_s6] sm:$0xff]  ;;  %v238_v9 = vld [vmem:[%s3732_s6 + $0x8] sm:$0xff]  ;;  %v251_v10 = vld [vmem:[%s3732_s6 + $0x70] sm:$0xff]  ;;  %s3016_s26 = sshll.u32 %s5301_s19, 3 }
  0x11   : > { %v277_v11 = vmul.f32 %v3723_v6, %v237_v8  ;;  %v278_v12 = vmul.f32 %v3723_v6, %v238_v9  ;;  %v252_v13 = vld [vmem:[%s3732_s6 + $0x78] sm:$0xff]  ;;  %v291_v14 = vmul.f32 %v3723_v6, %v251_v10  ;;  %v253_v15 = vld [vmem:[%s3732_s6 + $0x80] sm:$0xff]  ;;  %v254_v16 = vld [vmem:[%s3732_s6 + $0x88] sm:$0xff]  ;;  %s235_s29 = scalar_lea.vmem %s5181_s5, %s3016_s26 }
  0x12   : > { %v292_v17 = vmul.f32 %v3723_v6, %v252_v13  ;;  %v293_v18 = vmul.f32 %v3723_v6, %v253_v15  ;;  %v294_v19 = vmul.f32 %v3723_v6, %v254_v16  ;;  %v239_v21 = vld [vmem:[%s3732_s6 + $0x10] sm:$0xff]  ;;  %v240_v22 = vld [vmem:[%s3732_s6 + $0x18] sm:$0xff]  ;;  %v241_v31 = vld [vmem:[%s3732_s6 + $0x20] sm:$0xff] }
  0x13   : > { %v315_v23 = vadd.f32 %v3737_v7, %v277_v11  ;;  %v316_v24 = vadd.f32 %v3737_v7, %v278_v12  ;;  %v329_v25 = vadd.f32 %v3737_v7, %v291_v14  ;;  %v279_v26 = vmul.f32 %v3723_v6, %v239_v21  ;;  %v242_v32 = vld [vmem:[%s3732_s6 + $0x28] sm:$0xff]  ;;  %v255_v37 = vld [vmem:[%s3732_s6 + $0x90] sm:$0xff]  ;;  %v256_v54 = vld [vmem:[%s3732_s6 + $0x98] sm:$0xff] }
  0x14   : > { %v330_v27 = vadd.f32 %v3737_v7, %v292_v17  ;;  %v331_v28 = vadd.f32 %v3737_v7, %v293_v18  ;;  %v332_v29 = vadd.f32 %v3737_v7, %v294_v19  ;;  %v280_v30 = vmul.f32 %v3723_v6, %v240_v22 }
  0x15   : > { %v347_v33 = vmax.f32 %v315_v23, 0.0  ;;  %v348_v34 = vmax.f32 %v316_v24, 0.0  ;;  %v361_v35 = vmax.f32 %v329_v25, 0.0  ;;  %v317_v36 = vadd.f32 %v3737_v7, %v279_v26 }
  0x16   : > { %v362_v38 = vmax.f32 %v330_v27, 0.0  ;;  %v363_v39 = vmax.f32 %v331_v28, 0.0  ;;  %v364_v40 = vmax.f32 %v332_v29, 0.0  ;;  %v318_v41 = vadd.f32 %v3737_v7, %v280_v30 }
  0x17   : > { %v379_v42 = vpack.c.bf16 %v348_v34, %v347_v33  ;;  %v349_v43 = vmax.f32 %v317_v36, 0.0  ;;  %v281_v44 = vmul.f32 %v3723_v6, %v241_v31  ;;  %v282_v45 = vmul.f32 %v3723_v6, %v242_v32 }
  0x18   : > { %v386_v46 = vpack.c.bf16 %v362_v38, %v361_v35  ;;  %v387_v47 = vpack.c.bf16 %v364_v40, %v363_v39  ;;  %v350_v48 = vmax.f32 %v318_v41, 0.0  ;;  %v295_v49 = vmul.f32 %v3723_v6, %v255_v37 }
  0x19   : > { %v396_v50 = vshrl.u32 %v379_v42, 16  ;;  %v399_v51 = vshll.u32 %v379_v42, 16  ;;  %v319_v52 = vadd.f32 %v3737_v7, %v281_v44  ;;  %v320_v53 = vadd.f32 %v3737_v7, %v282_v45 }
  0x1a   : > { %v445_v55 = vshrl.u32 %v386_v46, 16  ;;  %v448_v56 = vshll.u32 %v386_v46, 16  ;;  %v452_v57 = vshrl.u32 %v387_v47, 16  ;;  %v455_v60 = vshll.u32 %v387_v47, 16 }
  0x1b   : > { %v398_v59 = vrot.slane %v396_v50, 7  ;;  %v380_v61 = vpack.c.bf16 %v350_v48, %v349_v43  ;;  %v351_v62 = vmax.f32 %v319_v52, 0.0  ;;  %v352_v4 = vmax.f32 %v320_v53, 0.0  ;;  %v3832_v50 = vld [vmem:[%s5179_s3 + $0x10] sm:$0xf] }
  0x1c   : > { %v447_v0 = vrot.slane %v445_v55, 7  ;;  %v454_v1 = vrot.slane %v452_v57, 7  ;;  %v296_v8 = vmul.f32 %v3723_v6, %v256_v54  ;;  %v333_v11 = vadd.f32 %v3737_v7, %v295_v49  ;;  %v257_v49 = vld [vmem:[%s3732_s6 + $0xa0] sm:$0xff]  ;;  %v258_v55 = vld [vmem:[%s3732_s6 + $0xa8] sm:$0xff] }
  0x1d   : > { %v401_v9 = vor.u32 %v399_v51, %v398_v59  ;;  %v3787_v5 = vsel %vm3780_vm5, %v398_v59, 0  ;;  %v403_v10 = vshrl.u32 %v380_v61, 16  ;;  %v406_v15 = vshll.u32 %v380_v61, 16 }
  0x1e   : > { %v592_v12 = vshll.u32 %v3787_v5, 16  ;;  %v450_v13 = vor.u32 %v448_v56, %v447_v0  ;;  %v3793_v14 = vsel %vm3780_vm5, %v447_v0, 0  ;;  %v457_v18 = vor.u32 %v455_v60, %v454_v1  ;;  %v243_v56 = vld [vmem:[%s3732_s6 + $0x30] sm:$0xff] }
  0x1f   : > { %v3797_v16 = vsel %vm3780_vm5, 0, %v401_v9  ;;  %v676_v17 = vshll.u32 %v3793_v14, 16  ;;  %v3802_v19 = vsel %vm3780_vm5, %v454_v1, 0  ;;  %v405_v34 = vrot.slane %v403_v10, 7 }
  0x20   : > { %v585_v21 = vshrl.u32 %v3797_v16, 16  ;;  %v587_v22 = vshll.u32 %v3797_v16, 16  ;;  %v594_v23 = vrot.slane %v592_v12, 1  ;;  %v3808_v24 = vsel %vm3780_vm5, 0, %v450_v13 }
  0x21   : > { %v669_v25 = vshrl.u32 %v3808_v24, 16  ;;  %v671_v26 = vshll.u32 %v3808_v24, 16  ;;  %v678_v27 = vrot.slane %v676_v17, 1  ;;  %v3814_v28 = vsel %vm3780_vm5, 0, %v457_v18 }
  0x22   : > { %v589_v29 = vrot.slane %v587_v22, 1  ;;  %v681_v30 = vshrl.u32 %v3814_v28, 16  ;;  %v683_v31 = vshll.u32 %v3814_v28, 16  ;;  %v688_v32 = vshll.u32 %v3802_v19, 16 }
  0x23   : > { %v673_v33 = vrot.slane %v671_v26, 1  ;;  %v381_v35 = vpack.c.bf16 %v352_v4, %v351_v62  ;;  %v334_v36 = vadd.f32 %v3737_v7, %v296_v8  ;;  %v365_v40 = vmax.f32 %v333_v11, 0.0  ;;  %v3856_v62 = vld [vmem:[%s5179_s3 + $0xc] sm:$0xf]  ;;  %v244_v11 = vld [vmem:[%s3732_s6 + $0x38] sm:$0xff] }
  0x24   : > { %v590_v37 = vor.u32 %v589_v29, %v585_v21  ;;  %v685_v38 = vrot.slane %v683_v31, 1  ;;  %v690_v39 = vrot.slane %v688_v32, 1  ;;  %v408_v42 = vor.u32 %v406_v15, %v405_v34  ;;  %v245_v21 = vld [vmem:[%s3732_s6 + $0x40] sm:$0xff]  ;;  %v246_v31 = vld [vmem:[%s3732_s6 + $0x48] sm:$0xff] }
  0x25   : > { %v674_v41 = vor.u32 %v673_v33, %v669_v25  ;;  %v3822_v43 = vsel %vm3780_vm5, %v405_v34, 0  ;;  %v410_v44 = vshrl.u32 %v381_v35, 16  ;;  %v413_v48 = vshll.u32 %v381_v35, 16 }
  0x26   : > { %v3825_v45 = vsel %vm575_vm4, %v590_v37, %v594_v23  ;;  %v686_v46 = vor.u32 %v685_v38, %v681_v30  ;;  %v604_v47 = vshll.u32 %v3822_v43, 16  ;;  %v3841_v52 = vsel %vm3780_vm5, 0, %v408_v42 }
  0x27   : > { %3329 = vmatmul.mubr.msk.bf16.vlgmr.msra.gmra.mxu0 %vm766_vm1, %v3825_v45  ;;  %v3837_v51 = vsel %vm575_vm4, %v674_v41, %v678_v27  ;;  %v412_v53 = vrot.slane %v410_v44, 7  ;;  %v366_v54 = vmax.f32 %v334_v36, 0.0  ;;  %v597_v59 = vshrl.u32 %v3841_v52, 16 }
  0x28   : > { %3344 = vmatprep.mubr.msk.bf16.mxu1 %vm766_vm1, %v3837_v51  ;;  %v3848_v57 = vsel %vm575_vm4, %v686_v46, %v690_v39  ;;  %3395 = vmatpush3.bf16.msra.mxu0 %v3776_v58  ;;  %v599_v60 = vshll.u32 %v3841_v52, 16  ;;  %v606_v61 = vrot.slane %v604_v47, 1  ;;  %v297_v4 = vmul.f32 %v3723_v6, %v257_v49 }
  0x29   : > { %3345 = vmatmul.mubr.msk.bf16.vlgmr.msra.gmra.mxu1 %vm766_vm1, %v3848_v57  ;;  %v415_v0 = vor.u32 %v413_v48, %v412_v53  ;;  %v3862_v1 = vsel %vm3780_vm5, %v412_v53, 0  ;;  %v388_v58 = vpack.c.bf16 %v366_v54, %v365_v40  ;;  %3639 = vmatprep.subr.msk.bf16.mxu0 %vm815_vm0, %v3832_v50  ;;  %v298_v10 = vmul.f32 %v3723_v6, %v258_v55  ;;  %v259_v53 = vld [vmem:[%s3732_s6 + $0xb0] sm:$0xff]  ;;  %v260_v54 = vld [vmem:[%s3732_s6 + $0xb8] sm:$0xff] }
  0x2a   : > { %3361 = vmatpush3.bf16.msra.mxu1 %v3752_v20  ;;  %v601_v8 = vrot.slane %v599_v60, 1  ;;  %v616_v9 = vshll.u32 %v3862_v1, 16  ;;  %v283_v12 = vmul.f32 %v3723_v6, %v243_v56  ;;  %v335_v18 = vadd.f32 %v3737_v7, %v297_v4 }
  0x2b   : > { %v3874_v13 = vsel %vm3780_vm5, 0, %v415_v0  ;;  %v459_v15 = vshrl.u32 %v388_v58, 16  ;;  %v462_v17 = vshll.u32 %v388_v58, 16  ;;  %3638 = vmatprep.subr.msk.bf16.mxu1 %vm815_vm0, %v3856_v62  ;;  %v336_v27 = vadd.f32 %v3737_v7, %v298_v10 }
  0x2c   : > { %v602_v20 = vor.u32 %v601_v8, %v597_v59  ;;  %v609_v22 = vshrl.u32 %v3874_v13, 16  ;;  %v611_v23 = vshll.u32 %v3874_v13, 16  ;;  %v618_v25 = vrot.slane %v616_v9, 1  ;;  %v261_v8 = vld [vmem:[%s3732_s6 + $0xc0] sm:$0xff] }
  0x2d   : > { %v461_v26 = vrot.slane %v459_v15, 7  ;;  %v367_v29 = vmax.f32 %v335_v18, 0.0  ;;  %v284_v30 = vmul.f32 %v3723_v6, %v244_v11  ;;  %v321_v34 = vadd.f32 %v3737_v7, %v283_v12 }
  0x2e   : > { %v3886_v32 = vsel %vm575_vm4, %v602_v20, %v606_v61  ;;  %v613_v33 = vrot.slane %v611_v23, 1  ;;  %v285_v35 = vmul.f32 %v3723_v6, %v245_v21  ;;  %v368_v38 = vmax.f32 %v336_v27, 0.0 }
  0x2f   : > { %3332 = vmatprep.mubr.msk.bf16.mxu0 %vm766_vm1, %v3886_v32  ;;  %v464_v36 = vor.u32 %v462_v17, %v461_v26  ;;  %v3894_v37 = vsel %vm3780_vm5, %v461_v26, 0  ;;  %v322_v39 = vadd.f32 %v3737_v7, %v284_v30  ;;  %v353_v42 = vmax.f32 %v321_v34, 0.0 }
  0x30   : > { %v614_v40 = vor.u32 %v613_v33, %v609_v22  ;;  %v700_v41 = vshll.u32 %v3894_v37, 16  ;;  %v286_v44 = vmul.f32 %v3723_v6, %v246_v31  ;;  %v389_v47 = vpack.c.bf16 %v368_v38, %v367_v29 }
  0x31   : > { %v3901_v46 = vsel %vm3780_vm5, 0, %v464_v36  ;;  %v354_v48 = vmax.f32 %v322_v39, 0.0  ;;  %v323_v49 = vadd.f32 %v3737_v7, %v285_v35  ;;  %v299_v11 = vmul.f32 %v3723_v6, %v259_v53 }
  0x32   : > { %v3907_v55 = vsel %vm575_vm4, %v614_v40, %v618_v25  ;;  %v693_v56 = vshrl.u32 %v3901_v46, 16  ;;  %v695_v59 = vshll.u32 %v3901_v46, 16  ;;  %v702_v60 = vrot.slane %v700_v41, 1 }
  0x33   : > { %3333 = vmatmul.mubr.msk.bf16.gmra.mxu0 %vm766_vm1, %v3907_v55  ;;  %v466_v61 = vshrl.u32 %v389_v47, 16  ;;  %v469_v0 = vshll.u32 %v389_v47, 16  ;;  %v382_v58 = vpack.c.bf16 %v354_v48, %v353_v42  ;;  %v324_v4 = vadd.f32 %v3737_v7, %v286_v44 }
  0x34   : > { %v697_v9 = vrot.slane %v695_v59, 1  ;;  %v355_v10 = vmax.f32 %v323_v49, 0.0  ;;  %v300_v12 = vmul.f32 %v3723_v6, %v260_v54  ;;  %v337_v22 = vadd.f32 %v3737_v7, %v299_v11 }
  0x35   : > { %v468_v15 = vrot.slane %v466_v61, 7  ;;  %v417_v17 = vshrl.u32 %v382_v58, 16  ;;  %v420_v18 = vshll.u32 %v382_v58, 16  ;;  %v356_v21 = vmax.f32 %v324_v4, 0.0  ;;  %v247_v58 = vld [vmem:[%s3732_s6 + $0x50] sm:$0xff] }
  0x36   : > { %v698_v20 = vor.u32 %v697_v9, %v693_v56  ;;  %v338_v23 = vadd.f32 %v3737_v7, %v300_v12  ;;  %v301_v25 = vmul.f32 %v3723_v6, %v261_v8  ;;  %v369_v34 = vmax.f32 %v337_v22, 0.0  ;;  %v262_v56 = vld [vmem:[%s3732_s6 + $0xc8] sm:$0xff] }
  0x37   : > { %v471_v26 = vor.u32 %v469_v0, %v468_v15  ;;  %v3922_v27 = vsel %vm3780_vm5, %v468_v15, 0  ;;  %v419_v29 = vrot.slane %v417_v17, 7  ;;  %v383_v30 = vpack.c.bf16 %v356_v21, %v355_v10 }
  0x38   : > { %v3925_v31 = vsel %vm575_vm4, %v698_v20, %v702_v60  ;;  %v712_v33 = vshll.u32 %v3922_v27, 16  ;;  %v370_v35 = vmax.f32 %v338_v23, 0.0  ;;  %v302_v17 = vmul.f32 %v3723_v6, %v262_v56 }
  0x39   : > { %3348 = vmatprep.mubr.msk.bf16.mxu1 %vm766_vm1, %v3925_v31  ;;  %v3932_v36 = vsel %vm3780_vm5, 0, %v471_v26  ;;  %v422_v38 = vor.u32 %v420_v18, %v419_v29  ;;  %v3936_v39 = vsel %vm3780_vm5, %v419_v29, 0  ;;  %v424_v40 = vshrl.u32 %v383_v30, 16 }
  0x3a   : > { %v705_v41 = vshrl.u32 %v3932_v36, 16  ;;  %v707_v42 = vshll.u32 %v3932_v36, 16  ;;  %v714_v44 = vrot.slane %v712_v33, 1  ;;  %v628_v47 = vshll.u32 %v3936_v39, 16  ;;  %v248_v33 = vld [vmem:[%s3732_s6 + $0x58] sm:$0xff] }
  0x3b   : > { %v3943_v48 = vsel %vm3780_vm5, 0, %v422_v38  ;;  %v426_v49 = vrot.slane %v424_v40, 7  ;;  %v427_v53 = vshll.u32 %v383_v30, 16  ;;  %v390_v54 = vpack.c.bf16 %v370_v35, %v369_v34 }
  0x3c   : > { %v709_v59 = vrot.slane %v707_v42, 1  ;;  %v621_v60 = vshrl.u32 %v3943_v48, 16  ;;  %v623_v61 = vshll.u32 %v3943_v48, 16  ;;  %v630_v0 = vrot.slane %v628_v47, 1  ;;  %v249_v47 = vld [vmem:[%s3732_s6 + $0x60] sm:$0xff] }
  0x3d   : > { %v429_v4 = vor.u32 %v427_v53, %v426_v49  ;;  %v3951_v8 = vsel %vm3780_vm5, %v426_v49, 0  ;;  %v473_v9 = vshrl.u32 %v390_v54, 16  ;;  %v476_v10 = vshll.u32 %v390_v54, 16 }
  0x3e   : > { %v710_v11 = vor.u32 %v709_v59, %v705_v41  ;;  %v625_v12 = vrot.slane %v623_v61, 1  ;;  %v640_v15 = vshll.u32 %v3951_v8, 16  ;;  %v339_v20 = vadd.f32 %v3737_v7, %v301_v25  ;;  %v250_v59 = vld [vmem:[%s3732_s6 + $0x68] sm:$0xff] }
  0x3f   : > { %v3957_v18 = vsel %vm3780_vm5, 0, %v429_v4  ;;  %v475_v21 = vrot.slane %v473_v9, 7  ;;  %v287_v22 = vmul.f32 %v3723_v6, %v247_v58  ;;  %v340_v38 = vadd.f32 %v3737_v7, %v302_v17 }
  0x40   : > { %v3962_v23 = vsel %vm575_vm4, %v710_v11, %v714_v44  ;;  %v626_v26 = vor.u32 %v625_v12, %v621_v60  ;;  %v633_v29 = vshrl.u32 %v3957_v18, 16  ;;  %v635_v30 = vshll.u32 %v3957_v18, 16  ;;  %v263_v60 = vld [vmem:[%s3732_s6 + $0xd0] sm:$0xff] }
  0x41   : > { %3349 = vmatmul.mubr.msk.bf16.gmra.mxu1 %vm766_vm1, %v3962_v23  ;;  %v642_v34 = vrot.slane %v640_v15, 1  ;;  %v478_v35 = vor.u32 %v476_v10, %v475_v21  ;;  %v3971_v25 = vsel %vm3780_vm5, %v475_v21, 0  ;;  %v371_v44 = vmax.f32 %v339_v20, 0.0  ;;  %v264_v15 = vld [vmem:[%s3732_s6 + $0xd8] sm:$0xff] }
  0x42   : > { %v3975_v40 = vsel %vm575_vm4, %v626_v26, %v630_v0  ;;  %v637_v41 = vrot.slane %v635_v30, 1  ;;  %v724_v42 = vshll.u32 %v3971_v25, 16  ;;  %v372_v53 = vmax.f32 %v340_v38, 0.0  ;;  %v265_v26 = vld [vmem:[%s3732_s6 + $0xe0] sm:$0xff] }
  0x43   : > { %3336 = vmatprep.mubr.msk.bf16.mxu0 %vm766_vm1, %v3975_v40  ;;  %v3983_v49 = vsel %vm3780_vm5, 0, %v478_v35  ;;  %v288_v54 = vmul.f32 %v3723_v6, %v248_v33  ;;  %v325_v56 = vadd.f32 %v3737_v7, %v287_v22  ;;  %v289_v12 = vmul.f32 %v3723_v6, %v249_v47 }
  0x44   : > { %v638_v61 = vor.u32 %v637_v41, %v633_v29  ;;  %v717_v0 = vshrl.u32 %v3983_v49, 16  ;;  %v719_v58 = vshll.u32 %v3983_v49, 16  ;;  %v726_v4 = vrot.slane %v724_v42, 1 }
  0x45   : > { %v391_v9 = vpack.c.bf16 %v372_v53, %v371_v44  ;;  %v326_v10 = vadd.f32 %v3737_v7, %v288_v54  ;;  %v357_v11 = vmax.f32 %v325_v56, 0.0  ;;  %v290_v20 = vmul.f32 %v3723_v6, %v250_v59  ;;  %v266_v54 = vld [vmem:[%s3732_s6 + $0xe8] sm:$0xff] }
  0x46   : > { %v3995_v17 = vsel %vm575_vm4, %v638_v61, %v642_v34  ;;  %v721_v21 = vrot.slane %v719_v58, 1  ;;  %v303_v22 = vmul.f32 %v3723_v6, %v263_v60  ;;  %v327_v35 = vadd.f32 %v3737_v7, %v289_v12 }
  0x47   : > { %3337 = vmatmul.mubr.msk.bf16.gmra.mxu0 %vm766_vm1, %v3995_v17  ;;  %v480_v29 = vshrl.u32 %v391_v9, 16  ;;  %v483_v30 = vshll.u32 %v391_v9, 16  ;;  %v358_v33 = vmax.f32 %v326_v10, 0.0  ;;  %v328_v41 = vadd.f32 %v3737_v7, %v290_v20 }
  0x48   : > { %v722_v38 = vor.u32 %v721_v21, %v717_v0  ;;  %v304_v34 = vmul.f32 %v3723_v6, %v264_v15  ;;  %v341_v42 = vadd.f32 %v3737_v7, %v303_v22  ;;  %v359_v53 = vmax.f32 %v327_v35, 0.0 }
  0x49   : > { %v482_v44 = vrot.slane %v480_v29, 7  ;;  %v384_v47 = vpack.c.bf16 %v358_v33, %v357_v11  ;;  %v305_v56 = vmul.f32 %v3723_v6, %v265_v26  ;;  %v360_v60 = vmax.f32 %v328_v41, 0.0 }
  0x4a   : > { %v4009_v59 = vsel %vm575_vm4, %v722_v38, %v726_v4  ;;  %v342_v61 = vadd.f32 %v3737_v7, %v304_v34  ;;  %v373_v58 = vmax.f32 %v341_v42, 0.0  ;;  %v306_v4 = vmul.f32 %v3723_v6, %v266_v54 }
  0x4b   : > { %3352 = vmatprep.mubr.msk.bf16.mxu1 %vm766_vm1, %v4009_v59  ;;  %v485_v0 = vor.u32 %v483_v30, %v482_v44  ;;  %v4016_v9 = vsel %vm3780_vm5, %v482_v44, 0  ;;  %v431_v10 = vshrl.u32 %v384_v47, 16  ;;  %v434_v11 = vshll.u32 %v384_v47, 16 }
  0x4c   : > { %v736_v12 = vshll.u32 %v4016_v9, 16  ;;  %v385_v15 = vpack.c.bf16 %v360_v60, %v359_v53  ;;  %v374_v21 = vmax.f32 %v342_v61, 0.0  ;;  %v343_v26 = vadd.f32 %v3737_v7, %v305_v56 }
  0x4d   : > { %v4022_v20 = vsel %vm3780_vm5, 0, %v485_v0  ;;  %v433_v22 = vrot.slane %v431_v10, 7  ;;  %v344_v54 = vadd.f32 %v3737_v7, %v306_v4 }
  0x4e   : > { %v729_v29 = vshrl.u32 %v4022_v20, 16  ;;  %v731_v30 = vshll.u32 %v4022_v20, 16  ;;  %v738_v33 = vrot.slane %v736_v12, 1  ;;  %v438_v35 = vshrl.u32 %v385_v15, 16 }
  0x4f   : > { %v436_v38 = vor.u32 %v434_v11, %v433_v22  ;;  %v4029_v41 = vsel %vm3780_vm5, %v433_v22, 0  ;;  %v441_v34 = vshll.u32 %v385_v15, 16  ;;  %v392_v42 = vpack.c.bf16 %v374_v21, %v373_v58 }
  0x50   : > { %v733_v44 = vrot.slane %v731_v30, 1  ;;  %v652_v47 = vshll.u32 %v4029_v41, 16  ;;  %v440_v53 = vrot.slane %v438_v35, 7  ;;  %v375_v0 = vmax.f32 %v343_v26, 0.0 }
  0x51   : > { %v4035_v56 = vsel %vm3780_vm5, 0, %v436_v38  ;;  %v487_v60 = vshrl.u32 %v392_v42, 16  ;;  %v490_v61 = vshll.u32 %v392_v42, 16  ;;  %v376_v22 = vmax.f32 %v344_v54, 0.0 }
  0x52   : > { %v734_v10 = vor.u32 %v733_v44, %v729_v29  ;;  %v645_v11 = vshrl.u32 %v4035_v56, 16  ;;  %v647_v12 = vshll.u32 %v4035_v56, 16  ;;  %v443_v15 = vor.u32 %v441_v34, %v440_v53 }
  0x53   : > { %v4041_v58 = vsel %vm3780_vm5, %v440_v53, 0  ;;  %v489_v21 = vrot.slane %v487_v60, 7  ;;  %v654_v35 = vrot.slane %v652_v47, 1  ;;  %v393_v42 = vpack.c.bf16 %v376_v22, %v375_v0 }
  0x54   : > { %v4044_v4 = vsel %vm575_vm4, %v734_v10, %v738_v33  ;;  %v649_v30 = vrot.slane %v647_v12, 1  ;;  %v664_v38 = vshll.u32 %v4041_v58, 16  ;;  %v4051_v26 = vsel %vm3780_vm5, 0, %v443_v15 }
  0x55   : > { %3353 = vmatmul.mubr.msk.bf16.gmra.mxu1 %vm766_vm1, %v4044_v4  ;;  %v492_v29 = vor.u32 %v490_v61, %v489_v21  ;;  %v4055_v34 = vsel %vm3780_vm5, %v489_v21, 0  ;;  %v657_v33 = vshrl.u32 %v4051_v26, 16  ;;  %v659_v47 = vshll.u32 %v4051_v26, 16 }
  0x56   : > { %v650_v44 = vor.u32 %v649_v30, %v645_v11  ;;  %v666_v53 = vrot.slane %v664_v38, 1  ;;  %v748_v60 = vshll.u32 %v4055_v34, 16  ;;  %v494_v10 = vshrl.u32 %v393_v42, 16 }
  0x57   : > { %v4061_v54 = vsel %vm3780_vm5, 0, %v492_v29  ;;  %v497_v12 = vshll.u32 %v393_v42, 16  ;;  %v661_v15 = vrot.slane %v659_v47, 1  ;;  %v1211_v47 = vrot.slane %v3787_v5, 1 }
  0x58   : > { %v4065_v61 = vsel %vm575_vm4, %v650_v44, %v654_v35  ;;  %v741_v0 = vshrl.u32 %v4061_v54, 16  ;;  %v743_v11 = vshll.u32 %v4061_v54, 16  ;;  %v496_v21 = vrot.slane %v494_v10, 7 }
  0x59   : > { %3340 = vmatprep.mubr.msk.bf16.mxu0 %vm766_vm1, %v4065_v61  ;;  %v662_v22 = vor.u32 %v661_v15, %v657_v33  ;;  %v750_v38 = vrot.slane %v748_v60, 1 }
  0x5a   : > { %v745_v30 = vrot.slane %v743_v11, 1  ;;  %v499_v29 = vor.u32 %v497_v12, %v496_v21  ;;  %v4073_v2 = vsel %vm3780_vm5, %v496_v21, 0  ;;  %v1210_v12 = vrot.slane %v3797_v16, 1 }
  0x5b   : > { %v4076_v35 = vsel %vm575_vm4, %v662_v22, %v666_v53  ;;  %v760_v44 = vshll.u32 %v4073_v2, 16  ;;  %v1214_v11 = vrot.slane %v3822_v43, 1  ;;  %v5190_v43 = vmov 0  }
  0x5c   : > { %v746_v42 = vor.u32 %v745_v30, %v741_v0  ;;  %3341 = vmatmul.mubr.msk.bf16.gmra.mxu0 %vm766_vm1, %v4076_v35  ;;  %v4084_v33 = vsel %vm3780_vm5, 0, %v499_v29  ;;  %v1213_v0 = vrot.slane %v3841_v52, 1  ;;  %v4099_v22 = vsel %vm1207_vm6, %v1210_v12, %v1211_v47 }
  0x5d   : > { %v753_v10 = vshrl.u32 %v4084_v33, 16  ;;  %v755_v53 = vshll.u32 %v4084_v33, 16  ;;  %3396 = vmatprep.mubr.msk.bf16.mxu0 %vm766_vm1, %v3707_v3  ;;  %v762_v15 = vrot.slane %v760_v44, 1  ;;  %v1719_v30 = vsel %vm815_vm0, %v3832_v50, 0 }
  0x5e   : > { %v4087_v60 = vsel %vm575_vm4, %v746_v42, %v750_v38  ;;  %v4107_v29 = vsel %vm1207_vm6, %v1213_v0, %v1214_v11  ;;  %v4112_v42 = vld [vmem:[%s5179_s3 + $0x18] sm:$0xf]  ;;  %v1216_v50 = vrot.slane %v3874_v13, 1  ;;  %v1217_v44 = vrot.slane %v3862_v1, 1  ;;  %v4138_v1 = vld [vmem:[%s5179_s3 + $0x14] sm:$0xf] }
  0x5f   : > { %3356 = vmatprep.mubr.msk.bf16.mxu1 %vm766_vm1, %v4087_v60  ;;  %v757_v5 = vrot.slane %v755_v53, 1  ;;  %v1219_v47 = vrot.slane %v3943_v48, 1  ;;  %v1507_v12 = vsel %vm815_vm0, %v3856_v62, 0  ;;  %v1222_v62 = vrot.slane %v3957_v18, 1 }
  0x60   : > { %v4128_v53 = vsel %vm1207_vm6, %v1216_v50, %v1217_v44  ;;  %v1226_v0 = vrot.slane %v4029_v41, 1  ;;  %v1229_v41 = vrot.slane %v4041_v58, 1  ;;  %v1232_v50 = vrot.slane %v3793_v14, 1 }
  0x61   : > { %v758_v21 = vor.u32 %v757_v5, %v753_v10  ;;  %v1220_v10 = vrot.slane %v3936_v39, 1  ;;  %v1223_v39 = vrot.slane %v3951_v8, 1  ;;  %v1228_v8 = vrot.slane %v4051_v26, 1 }
  0x62   : > { %v1234_v14 = vrot.slane %v3814_v28, 1  ;;  %v1235_v58 = vrot.slane %v3802_v19, 1  ;;  %v1240_v19 = vrot.slane %v3932_v36, 1 }
  0x63   : > { %v4104_v38 = vsel %vm575_vm4, %v758_v21, %v762_v15  ;;  %v4133_v5 = vsel %vm1207_vm6, %v1219_v47, %v1220_v10  ;;  %v1225_v15 = vrot.slane %v4035_v56, 1  ;;  %v4155_v11 = vsel %vm1207_vm6, %v1222_v62, %v1223_v39 }
  0x64   : > { %3357 = vmatmul.mubr.msk.bf16.gmra.mxu1 %vm766_vm1, %v4104_v38  ;;  %3397 = vmatmul.mubr.msk.bf16.vlgmr.msra.gmra.mxu0 %vm766_vm1, %v4099_v22  ;;  %v4173_v44 = vsel %vm1207_vm6, %v1228_v8, %v1229_v41  ;;  %v1237_v10 = vrot.slane %v3901_v46, 1  ;;  %v4191_v62 = vsel %vm1207_vm6, %v1234_v14, %v1235_v58 }
  0x65   : > { %3362 = vmatprep.mubr.bf16.mxu1 %v5190_v43  ;;  %3463 = vmatpush3.bf16.msra.mxu0 %v1719_v30  ;;  %v4158_v21 = vsel %vm1207_vm6, %v1225_v15, %v1226_v0  ;;  %v1231_v30 = vrot.slane %v3808_v24, 1  ;;  %v1243_v15 = vrot.slane %v3983_v49, 1  ;;  %v1244_v0 = vrot.slane %v3971_v25, 1 }
  0x66   : > { %3400 = vmatprep.mubr.msk.bf16.mxu0 %vm766_vm1, %v4107_v29  ;;  %3641 = vmatprep.subr.msk.bf16.mxu0 %vm815_vm0, %v4112_v42  ;;  %v1247_v25 = vrot.slane %v4016_v9, 1  ;;  %v1252_v9 = vrot.slane %v4084_v33, 1 }
  0x67   : > { %v4176_v47 = vsel %vm1207_vm6, %v1231_v30, %v1232_v50  ;;  %v4212_v41 = vsel %vm1207_vm6, %v1243_v15, %v1244_v0  ;;  %v1249_v30 = vrot.slane %v4061_v54, 1  ;;  %v1250_v50 = vrot.slane %v4055_v34, 1 }
  0x68   : > { %v1253_v34 = vrot.slane %v4073_v2, 1  ;;  %v3152_v2 = vld [vmem:[%s5179_s3 + $0x20] sm:$0xf] }
  0x69   : > { %v4230_v58 = vsel %vm1207_vm6, %v1249_v30, %v1250_v50 }
  0x6c   : > { %3363 = vmatmul.mubr.msk.bf16.vlgmr.msra.gmra.mxu1 %vm766_vm1, %v3797_v16  ;;  %3401 = vmatmul.mubr.msk.bf16.gmra.mxu0 %vm766_vm1, %v4128_v53 }
  0x6d   : > { %3429 = vmatpush3.bf16.msra.mxu1 %v1507_v12  ;;  %3366 = vmatprep.mubr.msk.bf16.mxu1 %vm766_vm1, %v3841_v52  ;;  %v1238_v12 = vrot.slane %v3894_v37, 1  ;;  %v1241_v37 = vrot.slane %v3922_v27, 1  ;;  %v1246_v27 = vrot.slane %v4022_v20, 1 }
  0x6e   : > { %3404 = vmatprep.mubr.msk.bf16.mxu0 %vm766_vm1, %v4133_v5  ;;  %3640 = vmatprep.subr.msk.bf16.mxu1 %vm815_vm0, %v4138_v1 }
  0x6f   : > { %v4194_v39 = vsel %vm1207_vm6, %v1237_v10, %v1238_v12  ;;  %v4209_v8 = vsel %vm1207_vm6, %v1240_v19, %v1241_v37  ;;  %v4227_v14 = vsel %vm1207_vm6, %v1246_v27, %v1247_v25  ;;  %v4243_v10 = vsel %vm1207_vm6, %v1252_v9, %v1253_v34  ;;  %v268_v19 = vld [vmem:[%s3732_s6 + $0xf8] sm:$0xff] }
  0x70   : > { %v2123_v12 = vsel %vm815_vm0, %v4112_v42, 0  ;;  %v267_v42 = vld [vmem:[%s3732_s6 + $0xf0] sm:$0xff]  ;;  %v3135_v37 = vld [vmem:[%s5179_s3 + $0x1c] sm:$0xf] }
  0x74   : > { %3367 = vmatmul.mubr.msk.bf16.gmra.mxu1 %vm766_vm1, %v3874_v13  ;;  %3405 = vmatmul.mubr.msk.bf16.gmra.mxu0 %vm766_vm1, %v4155_v11 }
  0x75   : > { %3370 = vmatprep.mubr.msk.bf16.mxu1 %vm766_vm1, %v3943_v48  ;;  %3408 = vmatprep.mubr.msk.bf16.mxu0 %vm766_vm1, %v4158_v21 }
  0x7c   : > { %3371 = vmatmul.mubr.msk.bf16.gmra.mxu1 %vm766_vm1, %v3957_v18  ;;  %3409 = vmatmul.mubr.msk.bf16.gmra.mxu0 %vm766_vm1, %v4173_v44 }
  0x7d   : > { %3374 = vmatprep.mubr.msk.bf16.mxu1 %vm766_vm1, %v4035_v56  ;;  %3412 = vmatprep.mubr.msk.bf16.mxu0 %vm766_vm1, %v4176_v47 }
  0x84   : > { %3375 = vmatmul.mubr.msk.bf16.gmra.mxu1 %vm766_vm1, %v4051_v26  ;;  %3413 = vmatmul.mubr.msk.bf16.gmra.mxu0 %vm766_vm1, %v4191_v62 }
  0x85   : > { %3378 = vmatprep.mubr.msk.bf16.mxu1 %vm766_vm1, %v3808_v24  ;;  %3416 = vmatprep.mubr.msk.bf16.mxu0 %vm766_vm1, %v4194_v39 }
  0x8c   : > { %3379 = vmatmul.mubr.msk.bf16.gmra.mxu1 %vm766_vm1, %v3814_v28  ;;  %3417 = vmatmul.mubr.msk.bf16.gmra.mxu0 %vm766_vm1, %v4209_v8 }
  0x8d   : > { %3382 = vmatprep.mubr.msk.bf16.mxu1 %vm766_vm1, %v3901_v46  ;;  %3420 = vmatprep.mubr.msk.bf16.mxu0 %vm766_vm1, %v4212_v41 }
  0x94   : > { %3383 = vmatmul.mubr.msk.bf16.gmra.mxu1 %vm766_vm1, %v3932_v36  ;;  %3421 = vmatmul.mubr.msk.bf16.gmra.mxu0 %vm766_vm1, %v4227_v14 }
  0x95   : > { %3386 = vmatprep.mubr.msk.bf16.mxu1 %vm766_vm1, %v3983_v49  ;;  %3424 = vmatprep.mubr.msk.bf16.mxu0 %vm766_vm1, %v4230_v58 }
  0x9c   : > { %3387 = vmatmul.mubr.msk.bf16.gmra.mxu1 %vm766_vm1, %v4022_v20  ;;  %3425 = vmatmul.mubr.msk.bf16.gmra.mxu0 %vm766_vm1, %v4243_v10 }
  0x9d   : > { %3390 = vmatprep.mubr.msk.bf16.mxu1 %vm766_vm1, %v4061_v54  ;;  %3464 = vmatprep.mubr.msk.bf16.mxu0 %vm766_vm1, %v3825_v45  ;;  %v1925_v45 = vsel %vm815_vm0, %v4138_v1, 0  ;;  %v308_v1 = vmul.f32 %v3723_v6, %v268_v19 }
  0x9f   : > { %v346_v0 = vadd.f32 %v3737_v7, %v308_v1 }
  0xa4   : > { %3391 = vmatmul.mubr.msk.bf16.gmra.mxu1 %vm766_vm1, %v4084_v33  ;;  %3465 = vmatmul.mubr.msk.bf16.vlgmr.msra.gmra.mxu0 %vm766_vm1, %v3886_v32 }
  0xa5   : > { %3430 = vmatprep.mubr.msk.bf16.mxu1 %vm766_vm1, %v3797_v16  ;;  %3531 = vmatpush3.bf16.msra.mxu0 %v2123_v12  ;;  %v307_v16 = vmul.f32 %v3723_v6, %v267_v42  ;;  %v378_v6 = vmax.f32 %v346_v0, 0.0  ;;  %v2519_v0 = vsel %vm815_vm0, %v3152_v2, 0 }
  0xa6   : > { %3468 = vmatprep.mubr.msk.bf16.mxu0 %vm766_vm1, %v3907_v55  ;;  %3643 = vmatprep.subr.msk.bf16.mxu0 %vm815_vm0, %v3152_v2 }
  0xa7   : > { %v345_v15 = vadd.f32 %v3737_v7, %v307_v16 }
  0xa9   : > { %v377_v27 = vmax.f32 %v345_v15, 0.0 }
  0xab   : > { %v394_v25 = vpack.c.bf16 %v378_v6, %v377_v27  ;;  %v2321_v27 = vsel %vm815_vm0, %v3135_v37, 0 }
  0xac   : > { %3431 = vmatmul.mubr.msk.bf16.vlgmr.msra.gmra.mxu1 %vm766_vm1, %v3841_v52  ;;  %3469 = vmatmul.mubr.msk.bf16.gmra.mxu0 %vm766_vm1, %v3975_v40 }
  0xad   : > { %3497 = vmatpush3.bf16.msra.mxu1 %v1925_v45  ;;  %3434 = vmatprep.mubr.msk.bf16.mxu1 %vm766_vm1, %v3874_v13  ;;  %v501_v7 = vshrl.u32 %v394_v25, 16  ;;  %v504_v50 = vshll.u32 %v394_v25, 16 }
  0xae   : > { %3472 = vmatprep.mubr.msk.bf16.mxu0 %vm766_vm1, %v3995_v17  ;;  %3642 = vmatprep.subr.msk.bf16.mxu1 %vm815_vm0, %v3135_v37 }
  0xaf   : > { %v503_v30 = vrot.slane %v501_v7, 7 }
  0xb1   : > { %v506_v9 = vor.u32 %v504_v50, %v503_v30  ;;  %v4326_v45 = vsel %vm3780_vm5, %v503_v30, 0 }
  0xb2   : > { %v1709_v16 = vshll.u32 %v4326_v45, 16 }
  0xb3   : > { %v4313_v34 = vsel %vm3780_vm5, 0, %v506_v9 }
  0xb4   : > { %3435 = vmatmul.mubr.msk.bf16.gmra.mxu1 %vm766_vm1, %v3943_v48  ;;  %3473 = vmatmul.mubr.msk.bf16.gmra.mxu0 %vm766_vm1, %v4065_v61  ;;  %v1704_v12 = vshll.u32 %v4313_v34, 16  ;;  %v1702_v42 = vshrl.u32 %v4313_v34, 16  ;;  %v1711_v1 = vrot.slane %v1709_v16, 1 }
  0xb5   : > { %3438 = vmatprep.mubr.msk.bf16.mxu1 %vm766_vm1, %v3957_v18  ;;  %3476 = vmatprep.mubr.msk.bf16.mxu0 %vm766_vm1, %v4076_v35 }
  0xb6   : > { %v1706_v19 = vrot.slane %v1704_v12, 1 }
  0xb8   : > { %v1707_v63 = vor.u32 %v1706_v19, %v1702_v42  ;;  %v1916_v42 = vrot.slane %v4313_v34, 1  ;;  %v1917_v19 = vrot.slane %v4326_v45, 1 }
  0xba   : > { %v4339_v15 = vsel %vm575_vm4, %v1707_v63, %v1711_v1 }
  0xbb   : > { %5191 = vst [vmem:[#allocation3_spill] sm:$0xff] %v4339_v15 }
  0xbc   : > { %3439 = vmatmul.mubr.msk.bf16.gmra.mxu1 %vm766_vm1, %v4035_v56  ;;  %3477 = vmatmul.mubr.msk.bf16.gmra.mxu0 %vm766_vm1, %v3837_v51 }
  0xbd   : > { %3442 = vmatprep.mubr.msk.bf16.mxu1 %vm766_vm1, %v4051_v26  ;;  %3480 = vmatprep.mubr.msk.bf16.mxu0 %vm766_vm1, %v3848_v57 }
  0xc4   : > { %3443 = vmatmul.mubr.msk.bf16.gmra.mxu1 %vm766_vm1, %v3808_v24  ;;  %3481 = vmatmul.mubr.msk.bf16.gmra.mxu0 %vm766_vm1, %v3925_v31 }
  0xc5   : > { %3446 = vmatprep.mubr.msk.bf16.mxu1 %vm766_vm1, %v3814_v28  ;;  %3484 = vmatprep.mubr.msk.bf16.mxu0 %vm766_vm1, %v3962_v23 }
  0xcc   : > { %3447 = vmatmul.mubr.msk.bf16.gmra.mxu1 %vm766_vm1, %v3901_v46  ;;  %3485 = vmatmul.mubr.msk.bf16.gmra.mxu0 %vm766_vm1, %v4009_v59 }
  0xcd   : > { %3450 = vmatprep.mubr.msk.bf16.mxu1 %vm766_vm1, %v3932_v36  ;;  %3488 = vmatprep.mubr.msk.bf16.mxu0 %vm766_vm1, %v4044_v4 }
  0xd4   : > { %3451 = vmatmul.mubr.msk.bf16.gmra.mxu1 %vm766_vm1, %v3983_v49  ;;  %3489 = vmatmul.mubr.msk.bf16.gmra.mxu0 %vm766_vm1, %v4087_v60 }
  0xd5   : > { %3454 = vmatprep.mubr.msk.bf16.mxu1 %vm766_vm1, %v4022_v20  ;;  %3492 = vmatprep.mubr.msk.bf16.mxu0 %vm766_vm1, %v4104_v38 }
  0xdc   : > { %3455 = vmatmul.mubr.msk.bf16.gmra.mxu1 %vm766_vm1, %v4061_v54  ;;  %3493 = vmatmul.mubr.msk.bf16.gmra.mxu0 %vm766_vm1, %v4339_v15 }
  0xdd   : > { %3458 = vmatprep.mubr.msk.bf16.mxu1 %vm766_vm1, %v4084_v33  ;;  %3532 = vmatprep.mubr.msk.bf16.mxu0 %vm766_vm1, %v3841_v52 }
  0xe4   : > { %3459 = vmatmul.mubr.msk.bf16.gmra.mxu1 %vm766_vm1, %v4313_v34  ;;  %3533 = vmatmul.mubr.msk.bf16.vlgmr.msra.gmra.mxu0 %vm766_vm1, %v3874_v13 }
  0xe5   : > { %3498 = vmatprep.mubr.msk.bf16.mxu1 %vm766_vm1, %v4099_v22  ;;  %3599 = vmatpush3.bf16.msra.mxu0 %v2519_v0  ;;  %v4471_v0 = vsel %vm1207_vm6, %v1916_v42, %v1917_v19 }
  0xe6   : > { %3536 = vmatprep.mubr.msk.bf16.mxu0 %vm766_vm1, %v3943_v48 }
  0xe7   : > { %v4363_v52 = vpop.f32.mrf.mxu0 }
  0xe9   : > { %v4369_v13 = vpop.f32.mrf.mxu0  ;;  %v4375_v48 = vpop.f32.mrf.mxu1 }
  0xeb   : > { %v4383_v22 = vpop.f32.mrf.mxu1 }
  0xec   : > { %3499 = vmatmul.mubr.msk.bf16.vlgmr.msra.gmra.mxu1 %vm766_vm1, %v4107_v29  ;;  %3537 = vmatmul.mubr.msk.bf16.gmra.mxu0 %vm766_vm1, %v3957_v18  ;;  %v4377_v18 = vpop.f32.mrf.mxu0 }
  0xed   : > { %3565 = vmatpush3.bf16.msra.mxu1 %v2321_v27  ;;  %3502 = vmatprep.mubr.msk.bf16.mxu1 %vm766_vm1, %v4128_v53 }
  0xee   : > { %3540 = vmatprep.mubr.msk.bf16.mxu0 %vm766_vm1, %v4035_v56  ;;  %v4385_v56 = vpop.f32.mrf.mxu0 }
  0xf3   : > { %v4393_v2 = vpop.f32.mrf.mxu0 }
  0xf4   : > { %3503 = vmatmul.mubr.msk.bf16.gmra.mxu1 %vm766_vm1, %v4133_v5  ;;  %3541 = vmatmul.mubr.msk.bf16.gmra.mxu0 %vm766_vm1, %v4051_v26  ;;  %v4391_v26 = vpop.f32.mrf.mxu1 }
  0xf5   : > { %3506 = vmatprep.mubr.msk.bf16.mxu1 %vm766_vm1, %v4155_v11  ;;  %3544 = vmatprep.mubr.msk.bf16.mxu0 %vm766_vm1, %v3808_v24  ;;  %v4401_v37 = vpop.f32.mrf.mxu0 }
  0xf6   : > { %v4399_v24 = vpop.f32.mrf.mxu1 }
  0xf7   : > { %v4409_v6 = vpop.f32.mrf.mxu0 }
  0xf9   : > { %v4417_v25 = vpop.f32.mrf.mxu0 }
  0xfc   : > { %3507 = vmatmul.mubr.msk.bf16.gmra.mxu1 %vm766_vm1, %v4158_v21  ;;  %3545 = vmatmul.mubr.msk.bf16.gmra.mxu0 %vm766_vm1, %v3814_v28 }
  0xfd   : > { %3510 = vmatprep.mubr.msk.bf16.mxu1 %vm766_vm1, %v4173_v44  ;;  %3548 = vmatprep.mubr.msk.bf16.mxu0 %vm766_vm1, %v3901_v46 }
 0x101   : > { %v4407_v28 = vpop.f32.mrf.mxu1 }
 0x103   : > { %v4415_v46 = vpop.f32.mrf.mxu1 }
 0x104   : > { %3511 = vmatmul.mubr.msk.bf16.gmra.mxu1 %vm766_vm1, %v4176_v47  ;;  %3549 = vmatmul.mubr.msk.bf16.gmra.mxu0 %vm766_vm1, %v3932_v36 }
 0x105   : > { %3514 = vmatprep.mubr.msk.bf16.mxu1 %vm766_vm1, %v4191_v62  ;;  %3552 = vmatprep.mubr.msk.bf16.mxu0 %vm766_vm1, %v3983_v49  ;;  %v4423_v36 = vpop.f32.mrf.mxu1 }
 0x107   : > { %v4425_v7 = vpop.f32.mrf.mxu0  ;;  %v4431_v49 = vpop.f32.mrf.mxu1 }
 0x109   : > { %v4433_v30 = vpop.f32.mrf.mxu0 }
 0x10b   : > { %v4441_v50 = vpop.f32.mrf.mxu0 }
 0x10c   : > { %3515 = vmatmul.mubr.msk.bf16.gmra.mxu1 %vm766_vm1, %v4194_v39  ;;  %3553 = vmatmul.mubr.msk.bf16.gmra.mxu0 %vm766_vm1, %v4022_v20 }
 0x10d   : > { %3518 = vmatprep.mubr.msk.bf16.mxu1 %vm766_vm1, %v4209_v8  ;;  %3556 = vmatprep.mubr.msk.bf16.mxu0 %vm766_vm1, %v4061_v54  ;;  %v4449_v9 = vpop.f32.mrf.mxu0 }
 0x114   : > { %3519 = vmatmul.mubr.msk.bf16.gmra.mxu1 %vm766_vm1, %v4212_v41  ;;  %3557 = vmatmul.mubr.msk.bf16.gmra.mxu0 %vm766_vm1, %v4084_v33 }
 0x115   : > { %v4439_v20 = vpop.f32.mrf.mxu1  ;;  %3522 = vmatprep.mubr.msk.bf16.mxu1 %vm766_vm1, %v4227_v14  ;;  %3560 = vmatprep.mubr.msk.bf16.mxu0 %vm766_vm1, %v4313_v34 }
 0x116   : > { %5192 = vst [vmem:[#allocation4_spill] sm:$0xff] %v4439_v20 }
 0x117   : > { %v4447_v54 = vpop.f32.mrf.mxu1 }
 0x118   : > { %5193 = vst [vmem:[#allocation5_spill] sm:$0xff] %v4447_v54 }
 0x119   : > { %v4453_v12 = vpop.f32.mrf.mxu1 }
 0x11a   : > { %5194 = vst [vmem:[#allocation6_spill] sm:$0xff] %v4453_v12 }
 0x11b   : > { %v4466_v63 = vpop.f32.mrf.mxu1 }
 0x11c   : > { %3523 = vmatmul.mubr.msk.bf16.gmra.mxu1 %vm766_vm1, %v4230_v58  ;;  %v4455_v33 = vpop.f32.mrf.mxu0  ;;  %3561 = vmatmul.mubr.bf16.gmra.mxu0 %v5190_v43  ;;  %5195 = vst [vmem:[#allocation7_spill] sm:$0xff] %v4466_v63 }
 0x11d   : > { %3526 = vmatprep.mubr.msk.bf16.mxu1 %vm766_vm1, %v4243_v10  ;;  %3600 = vmatprep.mubr.msk.bf16.mxu0 %vm766_vm1, %v4107_v29 }
 0x11e   : > { %v4464_v16 = vpop.f32.mrf.mxu0 }
 0x120   : > { %v4468_v1 = vpop.f32.mrf.mxu0 }
 0x122   : > { %v4473_v43 = vpop.f32.mrf.mxu0 }
 0x124   : > { %v4475_v27 = vpop.f32.mrf.mxu1  ;;  %3527 = vmatmul.mubr.msk.bf16.gmra.mxu1 %vm766_vm1, %v4471_v0  ;;  %v3398_v34 = vpop.f32.mrf.mxu0  ;;  %3601 = vmatmul.mubr.msk.bf16.vlgmr.msra.gmra.mxu0 %vm766_vm1, %v4128_v53 }
 0x125   : > { %5196 = vst [vmem:[#allocation8_spill] sm:$0xff] %v4475_v27  ;;  %3566 = vmatprep.mubr.msk.bf16.mxu1 %vm766_vm1, %v3886_v32  ;;  %3604 = vmatprep.mubr.msk.bf16.mxu0 %vm766_vm1, %v4133_v5 }
 0x126   : > { %v4485_v29 = vpop.f32.mrf.mxu1  ;;  %v1342_v45 = vpop.f32.mrf.mxu0 }
 0x127   : > { %5197 = vst [vmem:[#allocation9_spill] sm:$0xff] %v4485_v29 }
 0x128   : > { %v4487_v42 = vpop.f32.mrf.mxu1  ;;  %v3399_v19 = vpop.f32.mrf.mxu0 }
 0x129   : > { %5198 = vst [vmem:[#allocation10_spill] sm:$0xff] %v4487_v42 }
 0x12a   : > { %v4489_v27 = vpop.f32.mrf.mxu1  ;;  %v1345_v63 = vpop.f32.mrf.mxu0 }
 0x12b   : > { %5199 = vst [vmem:[#allocation11_spill] sm:$0xff] %v4489_v27 }
 0x12c   : > { %v3364_v12 = vpop.f32.mrf.mxu1  ;;  %3567 = vmatmul.mubr.msk.bf16.vlgmr.msra.gmra.mxu1 %vm766_vm1, %v3907_v55  ;;  %v3402_v53 = vpop.f32.mrf.mxu0  ;;  %3605 = vmatmul.mubr.msk.bf16.gmra.mxu0 %vm766_vm1, %v4155_v11 }
 0x12d   : > { %v1058_v32 = vadd.f32 %v3364_v12, %v4363_v52  ;;  %3570 = vmatprep.mubr.msk.bf16.mxu1 %vm766_vm1, %v3975_v40  ;;  %3608 = vmatprep.mubr.msk.bf16.mxu0 %vm766_vm1, %v4158_v21 }
 0x12e   : > { %v1049_v5 = vpop.f32.mrf.mxu1  ;;  %v1358_v42 = vpop.f32.mrf.mxu0 }
 0x12f   : > { %v1050_v27 = vadd.f32 %v1049_v5, %v4369_v13  ;;  %v4501_v29 = vadd.f32 %v3398_v34, %v1058_v32 }
 0x130   : > { %v3365_v54 = vpop.f32.mrf.mxu1  ;;  %v3403_v55 = vpop.f32.mrf.mxu0 }
 0x131   : > { %v1061_v15 = vadd.f32 %v3365_v54, %v4377_v18  ;;  %v4504_v20 = vadd.f32 %v1342_v45, %v1050_v27 }
 0x132   : > { %v1052_v11 = vpop.f32.mrf.mxu1  ;;  %v1361_v52 = vpop.f32.mrf.mxu0 }
 0x133   : > { %v1053_v12 = vadd.f32 %v1052_v11, %v4385_v56  ;;  %v4507_v40 = vadd.f32 %v3399_v19, %v1061_v15 }
 0x134   : > { %v3368_v3 = vpop.f32.mrf.mxu1  ;;  %3571 = vmatmul.mubr.msk.bf16.gmra.mxu1 %vm766_vm1, %v3995_v17  ;;  %v3406_v21 = vpop.f32.mrf.mxu0  ;;  %3609 = vmatmul.mubr.msk.bf16.gmra.mxu0 %vm766_vm1, %v4173_v44 }
 0x135   : > { %v1074_v13 = vadd.f32 %v3368_v3, %v4393_v2  ;;  %3574 = vmatprep.mubr.msk.bf16.mxu1 %vm766_vm1, %v4065_v61  ;;  %3612 = vmatprep.mubr.msk.bf16.mxu0 %vm766_vm1, %v4176_v47  ;;  %v4518_v18 = vadd.f32 %v1345_v63, %v1053_v12 }
 0x136   : > { %v1065_v15 = vpop.f32.mrf.mxu1  ;;  %v1374_v56 = vpop.f32.mrf.mxu0 }
 0x137   : > { %v1066_v54 = vadd.f32 %v1065_v15, %v4401_v37  ;;  %v4521_v27 = vadd.f32 %v3402_v53, %v1074_v13 }
 0x138   : > { %v3369_v17 = vpop.f32.mrf.mxu1  ;;  %v3407_v34 = vpop.f32.mrf.mxu0 }
 0x139   : > { %v1077_v44 = vadd.f32 %v3369_v17, %v4409_v6  ;;  %v4524_v45 = vadd.f32 %v1358_v42, %v1066_v54 }
 0x13a   : > { %v1068_v3 = vpop.f32.mrf.mxu1  ;;  %v1377_v2 = vpop.f32.mrf.mxu0 }
 0x13b   : > { %v1069_v61 = vadd.f32 %v1068_v3, %v4417_v25  ;;  %v4527_v19 = vadd.f32 %v3403_v55, %v1077_v44 }
 0x13c   : > { %v3372_v47 = vpop.f32.mrf.mxu1  ;;  %3575 = vmatmul.mubr.msk.bf16.gmra.mxu1 %vm766_vm1, %v4076_v35  ;;  %v3410_v63 = vpop.f32.mrf.mxu0  ;;  %3613 = vmatmul.mubr.msk.bf16.gmra.mxu0 %vm766_vm1, %v4191_v62 }
 0x13d   : > { %v1090_v37 = vadd.f32 %v3372_v47, %v4425_v7  ;;  %3578 = vmatprep.mubr.msk.bf16.mxu1 %vm766_vm1, %v3837_v51  ;;  %3616 = vmatprep.mubr.msk.bf16.mxu0 %vm766_vm1, %v4194_v39  ;;  %v4538_v6 = vadd.f32 %v1361_v52, %v1069_v61 }
 0x13e   : > { %v1081_v25 = vpop.f32.mrf.mxu1  ;;  %v1390_v42 = vpop.f32.mrf.mxu0 }
 0x13f   : > { %v1082_v53 = vadd.f32 %v1081_v25, %v4433_v30  ;;  %v4541_v32 = vadd.f32 %v3406_v21, %v1090_v37 }
 0x140   : > { %v3373_v35 = vpop.f32.mrf.mxu1  ;;  %v3411_v5 = vpop.f32.mrf.mxu0 }
 0x141   : > { %v1093_v62 = vadd.f32 %v3373_v35, %v4441_v50  ;;  %v4544_v55 = vadd.f32 %v1374_v56, %v1082_v53 }
 0x142   : > { %v1084_v7 = vpop.f32.mrf.mxu1  ;;  %v1393_v11 = vpop.f32.mrf.mxu0 }
 0x143   : > { %v1085_v51 = vadd.f32 %v1084_v7, %v4449_v9  ;;  %v4547_v12 = vadd.f32 %v3407_v34, %v1093_v62 }
 0x144   : > { %v3376_v39 = vpop.f32.mrf.mxu1  ;;  %3579 = vmatmul.mubr.msk.bf16.gmra.mxu1 %vm766_vm1, %v3848_v57  ;;  %v3414_v52 = vpop.f32.mrf.mxu0  ;;  %3617 = vmatmul.mubr.msk.bf16.gmra.mxu0 %vm766_vm1, %v4209_v8 }
 0x145   : > { %v1106_v30 = vadd.f32 %v3376_v39, %v4455_v33  ;;  %3582 = vmatprep.mubr.msk.bf16.mxu1 %vm766_vm1, %v3925_v31  ;;  %3620 = vmatprep.mubr.msk.bf16.mxu0 %vm766_vm1, %v4212_v41  ;;  %v4558_v50 = vadd.f32 %v1377_v2, %v1085_v51 }
 0x146   : > { %v1097_v9 = vpop.f32.mrf.mxu1  ;;  %v1406_v21 = vpop.f32.mrf.mxu0 }
 0x147   : > { %v1098_v13 = vadd.f32 %v1097_v9, %v4464_v16  ;;  %v4561_v15 = vadd.f32 %v3410_v63, %v1106_v30  ;;  %v5202_v9 = vld [vmem:[#allocation3_spill] sm:$0xff] }
 0x148   : > { %v3377_v57 = vpop.f32.mrf.mxu1  ;;  %v3415_v56 = vpop.f32.mrf.mxu0 }
 0x149   : > { %v1109_v8 = vadd.f32 %v3377_v57, %v4468_v1  ;;  %v4564_v54 = vadd.f32 %v1390_v42, %v1098_v13 }
 0x14a   : > { %v1100_v33 = vpop.f32.mrf.mxu1  ;;  %v1409_v17 = vpop.f32.mrf.mxu0 }
 0x14b   : > { %v1101_v31 = vadd.f32 %v1100_v33, %v4473_v43  ;;  %v4567_v34 = vadd.f32 %v3411_v5, %v1109_v8 }
 0x14c   : > { %v3380_v41 = vpop.f32.mrf.mxu1  ;;  %3583 = vmatmul.mubr.msk.bf16.gmra.mxu1 %vm766_vm1, %v3962_v23  ;;  %v3418_v44 = vpop.f32.mrf.mxu0  ;;  %3621 = vmatmul.mubr.msk.bf16.gmra.mxu0 %vm766_vm1, %v4227_v14 }
 0x14d   : > { %v1122_v16 = vadd.f32 %v3380_v41, %v4375_v48  ;;  %3586 = vmatprep.mubr.msk.bf16.mxu1 %vm766_vm1, %v4009_v59  ;;  %3624 = vmatprep.mubr.msk.bf16.mxu0 %vm766_vm1, %v4230_v58  ;;  %v4578_v1 = vadd.f32 %v1393_v11, %v1101_v31 }
 0x14e   : > { %v1113_v43 = vpop.f32.mrf.mxu1  ;;  %v1422_v3 = vpop.f32.mrf.mxu0 }
 0x14f   : > { %v1114_v2 = vadd.f32 %v1113_v43, %v4383_v22  ;;  %v4581_v61 = vadd.f32 %v3414_v52, %v1122_v16  ;;  %v5201_v52 = vld [vmem:[#allocation4_spill] sm:$0xff]  ;;  %v5205_v16 = vld [vmem:[#allocation7_spill] sm:$0xff] }
 0x150   : > { %v3381_v23 = vpop.f32.mrf.mxu1  ;;  %v3419_v47 = vpop.f32.mrf.mxu0 }
 0x151   : > { %v1125_v14 = vadd.f32 %v3381_v23, %v4391_v26  ;;  %v4584_v63 = vadd.f32 %v1406_v21, %v1114_v2 }
 0x152   : > { %v1116_v48 = vpop.f32.mrf.mxu1  ;;  %v1425_v37 = vpop.f32.mrf.mxu0 }
 0x153   : > { %v1117_v59 = vadd.f32 %v1116_v48, %v4399_v24  ;;  %v4587_v25 = vadd.f32 %v3415_v56, %v1125_v14 }
 0x154   : > { %v3384_v58 = vpop.f32.mrf.mxu1  ;;  %3587 = vmatmul.mubr.msk.bf16.gmra.mxu1 %vm766_vm1, %v4044_v4  ;;  %v3422_v42 = vpop.f32.mrf.mxu0  ;;  %3625 = vmatmul.mubr.msk.bf16.gmra.mxu0 %vm766_vm1, %v4243_v10 }
 0x155   : > { %v1138_v22 = vadd.f32 %v3384_v58, %v4407_v28  ;;  %3590 = vmatprep.mubr.msk.bf16.mxu1 %vm766_vm1, %v4087_v60  ;;  %3628 = vmatprep.mubr.msk.bf16.mxu0 %vm766_vm1, %v4471_v0  ;;  %v4598_v26 = vadd.f32 %v1409_v17, %v1117_v59  ;;  %v5207_v58 = vld [vmem:[#allocation9_spill] sm:$0xff] }
 0x156   : > { %v1129_v24 = vpop.f32.mrf.mxu1  ;;  %v1438_v53 = vpop.f32.mrf.mxu0 }
 0x157   : > { %v1130_v35 = vadd.f32 %v1129_v24, %v4415_v46  ;;  %v4601_v5 = vadd.f32 %v3418_v44, %v1138_v22  ;;  %v5200_v46 = vld [vmem:[#allocation2_spill] sm:$0xff] }
 0x158   : > { %v3385_v4 = vpop.f32.mrf.mxu1  ;;  %v3423_v62 = vpop.f32.mrf.mxu0 }
 0x159   : > { %v1141_v10 = vadd.f32 %v3385_v4, %v4423_v36  ;;  %v4604_v7 = vadd.f32 %v1422_v3, %v1130_v35  ;;  %v5208_v35 = vld [vmem:[#allocation10_spill] sm:$0xff] }
 0x15a   : > { %v1132_v28 = vpop.f32.mrf.mxu1  ;;  %v1441_v11 = vpop.f32.mrf.mxu0 }
 0x15b   : > { %v1133_v60 = vadd.f32 %v1132_v28, %v4431_v49  ;;  %v4607_v51 = vadd.f32 %v3419_v47, %v1141_v10  ;;  %v5203_v49 = vld [vmem:[#allocation5_spill] sm:$0xff]  ;;  %v5206_v47 = vld [vmem:[#allocation8_spill] sm:$0xff] }
 0x15c   : > { %v3388_v0 = vpop.f32.mrf.mxu1  ;;  %3591 = vmatmul.mubr.msk.bf16.gmra.mxu1 %vm766_vm1, %v4104_v38  ;;  %v3426_v39 = vpop.f32.mrf.mxu0  ;;  %3629 = vmatmul.mubr.msk.bf16.gmra.mxu0 %vm766_vm1, %v5200_v46  ;;  %v5204_v38 = vld [vmem:[#allocation6_spill] sm:$0xff] }
 0x15d   : > { %v1154_v30 = vadd.f32 %v3388_v0, %v5201_v52  ;;  %3594 = vmatprep.mubr.msk.bf16.mxu1 %vm766_vm1, %v5202_v9  ;;  %v4616_v36 = vadd.f32 %v1425_v37, %v1133_v60  ;;  %v5209_v60 = vld [vmem:[#allocation11_spill] sm:$0xff] }
 0x15e   : > { %v1145_v21 = vpop.f32.mrf.mxu1  ;;  %v1454_v13 = vpop.f32.mrf.mxu0 }
 0x15f   : > { %v1146_v57 = vadd.f32 %v1145_v21, %v5203_v49  ;;  %v4619_v56 = vadd.f32 %v3422_v42, %v1154_v30 }
 0x160   : > { %v3389_v8 = vpop.f32.mrf.mxu1  ;;  %v3427_v33 = vpop.f32.mrf.mxu0 }
 0x161   : > { %v1157_v17 = vadd.f32 %v3389_v8, %v5204_v38  ;;  %v4622_v31 = vadd.f32 %v1438_v53, %v1146_v57 }
 0x162   : > { %v1148_v41 = vpop.f32.mrf.mxu1  ;;  %v1457_v44 = vpop.f32.mrf.mxu0 }
 0x163   : > { %v1149_v43 = vadd.f32 %v1148_v41, %v5205_v16  ;;  %v4625_v3 = vadd.f32 %v3423_v62, %v1157_v17 }
 0x164   : > { %v3392_v2 = vpop.f32.mrf.mxu1  ;;  %3595 = vmatmul.mubr.msk.bf16.gmra.mxu1 %vm766_vm1, %v5200_v46  ;;  %v3466_v23 = vpop.f32.mrf.mxu0 }
 0x165   : > { %v1170_v14 = vadd.f32 %v3392_v2, %v5206_v47  ;;  %v4630_v48 = vadd.f32 %v1441_v11, %v1149_v43 }
 0x166   : > { %v1161_v37 = vpop.f32.mrf.mxu1  ;;  %v1755_v59 = vpop.f32.mrf.mxu0 }
 0x167   : > { %v1162_v42 = vadd.f32 %v1161_v37, %v5207_v58  ;;  %v4633_v22 = vadd.f32 %v3426_v39, %v1170_v14 }
 0x168   : > { %v3393_v24 = vpop.f32.mrf.mxu1  ;;  %v3467_v53 = vpop.f32.mrf.mxu0 }
 0x169   : > { %v1173_v4 = vadd.f32 %v3393_v24, %v5208_v35  ;;  %v4636_v62 = vadd.f32 %v1454_v13, %v1162_v42 }
 0x16a   : > { %v1164_v10 = vpop.f32.mrf.mxu1  ;;  %v1758_v28 = vpop.f32.mrf.mxu0 }
 0x16b   : > { %v1165_v0 = vadd.f32 %v1164_v10, %v5209_v60  ;;  %v4639_v46 = vadd.f32 %v3427_v33, %v1173_v4 }
 0x16c   : > { %v3432_v11 = vpop.f32.mrf.mxu1  ;;  %v3470_v52 = vpop.f32.mrf.mxu0 }
 0x16d   : > { %v1672_v30 = vadd.f32 %v3432_v11, %v4501_v29  ;;  %v4642_v9 = vadd.f32 %v1457_v44, %v1165_v0 }
 0x16e   : > { %v1543_v39 = vpop.f32.mrf.mxu1  ;;  %v1771_v21 = vpop.f32.mrf.mxu0 }
 0x16f   : > { %v1670_v49 = vadd.f32 %v1543_v39, %v4504_v20  ;;  %v4645_v57 = vadd.f32 %v3466_v23, %v1672_v30 }
 0x170   : > { %v3433_v13 = vpop.f32.mrf.mxu1  ;;  %v3471_v8 = vpop.f32.mrf.mxu0 }
 0x171   : > { %v1673_v38 = vadd.f32 %v3433_v13, %v4507_v40  ;;  %v4648_v17 = vadd.f32 %v1755_v59, %v1670_v49 }
 0x172   : > { %v1546_v33 = vpop.f32.mrf.mxu1  ;;  %v1774_v41 = vpop.f32.mrf.mxu0 }
 0x173   : > { %v1671_v16 = vadd.f32 %v1546_v33, %v4518_v18  ;;  %v4651_v43 = vadd.f32 %v3467_v53, %v1673_v38 }
 0x174   : > { %v3436_v29 = vpop.f32.mrf.mxu1  ;;  %v3474_v44 = vpop.f32.mrf.mxu0 }
 0x175   : > { %v1676_v2 = vadd.f32 %v3436_v29, %v4521_v27  ;;  %v4654_v47 = vadd.f32 %v1758_v28, %v1671_v16 }
 0x176   : > { %v1559_v20 = vpop.f32.mrf.mxu1  ;;  %v1787_v23 = vpop.f32.mrf.mxu0 }
 0x177   : > { %v1674_v14 = vadd.f32 %v1559_v20, %v4524_v45  ;;  %v4657_v37 = vadd.f32 %v3470_v52, %v1676_v2 }
 0x178   : > { %v3437_v40 = vpop.f32.mrf.mxu1  ;;  %v3475_v59 = vpop.f32.mrf.mxu0 }
 0x179   : > { %v1677_v58 = vadd.f32 %v3437_v40, %v4527_v19  ;;  %v4660_v42 = vadd.f32 %v1771_v21, %v1674_v14 }
 0x17a   : > { %v1562_v18 = vpop.f32.mrf.mxu1  ;;  %v1790_v24 = vpop.f32.mrf.mxu0 }
 0x17b   : > { %v1675_v53 = vadd.f32 %v1562_v18, %v4538_v6  ;;  %v4663_v35 = vadd.f32 %v3471_v8, %v1677_v58 }
 0x17c   : > { %v3440_v27 = vpop.f32.mrf.mxu1  ;;  %v3478_v4 = vpop.f32.mrf.mxu0 }
 0x17d   : > { %v1680_v10 = vadd.f32 %v3440_v27, %v4541_v32  ;;  %v4666_v28 = vadd.f32 %v1774_v41, %v1675_v53 }
 0x17e   : > { %v1575_v45 = vpop.f32.mrf.mxu1  ;;  %v1803_v60 = vpop.f32.mrf.mxu0 }
 0x17f   : > { %v1678_v0 = vadd.f32 %v1575_v45, %v4544_v55  ;;  %v4669_v11 = vadd.f32 %v3474_v44, %v1680_v10 }
 0x180   : > { %v3441_v19 = vpop.f32.mrf.mxu1  ;;  %v3479_v52 = vpop.f32.mrf.mxu0 }
 0x181   : > { %v1681_v30 = vadd.f32 %v3441_v19, %v4547_v12  ;;  %v4672_v39 = vadd.f32 %v1787_v23, %v1678_v0 }
 0x182   : > { %v1578_v6 = vpop.f32.mrf.mxu1  ;;  %v1806_v21 = vpop.f32.mrf.mxu0 }
 0x183   : > { %v1679_v49 = vadd.f32 %v1578_v6, %v4558_v50  ;;  %v4675_v13 = vadd.f32 %v3475_v59, %v1681_v30 }
 0x184   : > { %v3444_v32 = vpop.f32.mrf.mxu1  ;;  %v3482_v8 = vpop.f32.mrf.mxu0 }
 0x185   : > { %v1684_v38 = vadd.f32 %v3444_v32, %v4561_v15  ;;  %v4678_v33 = vadd.f32 %v1790_v24, %v1679_v49 }
 0x186   : > { %v1591_v55 = vpop.f32.mrf.mxu1  ;;  %v1819_v41 = vpop.f32.mrf.mxu0 }
 0x187   : > { %v1682_v16 = vadd.f32 %v1591_v55, %v4564_v54  ;;  %v4681_v29 = vadd.f32 %v3478_v4, %v1684_v38 }
 0x188   : > { %v3445_v12 = vpop.f32.mrf.mxu1  ;;  %v3483_v44 = vpop.f32.mrf.mxu0 }
 0x189   : > { %v1685_v2 = vadd.f32 %v3445_v12, %v4567_v34  ;;  %v4684_v20 = vadd.f32 %v1803_v60, %v1682_v16 }
 0x18a   : > { %v1594_v50 = vpop.f32.mrf.mxu1  ;;  %v1822_v23 = vpop.f32.mrf.mxu0 }
 0x18b   : > { %v1683_v14 = vadd.f32 %v1594_v50, %v4578_v1  ;;  %v4687_v40 = vadd.f32 %v3479_v52, %v1685_v2 }
 0x18c   : > { %v3448_v15 = vpop.f32.mrf.mxu1  ;;  %v3486_v59 = vpop.f32.mrf.mxu0 }
 0x18d   : > { %v1688_v58 = vadd.f32 %v3448_v15, %v4581_v61  ;;  %v4690_v18 = vadd.f32 %v1806_v21, %v1683_v14 }
 0x18e   : > { %v1607_v54 = vpop.f32.mrf.mxu1  ;;  %v1835_v24 = vpop.f32.mrf.mxu0 }
 0x18f   : > { %v1686_v53 = vadd.f32 %v1607_v54, %v4584_v63  ;;  %v4693_v27 = vadd.f32 %v3482_v8, %v1688_v58 }
 0x190   : > { %v3449_v34 = vpop.f32.mrf.mxu1  ;;  %v3487_v4 = vpop.f32.mrf.mxu0 }
 0x191   : > { %v1689_v10 = vadd.f32 %v3449_v34, %v4587_v25  ;;  %v4696_v45 = vadd.f32 %v1819_v41, %v1686_v53 }
 0x192   : > { %v1610_v1 = vpop.f32.mrf.mxu1  ;;  %v1838_v60 = vpop.f32.mrf.mxu0 }
 0x193   : > { %v1687_v0 = vadd.f32 %v1610_v1, %v4598_v26  ;;  %v4699_v19 = vadd.f32 %v3483_v44, %v1689_v10 }
 0x194   : > { %v3452_v61 = vpop.f32.mrf.mxu1  ;;  %v3490_v52 = vpop.f32.mrf.mxu0 }
 0x195   : > { %v1692_v30 = vadd.f32 %v3452_v61, %v4601_v5  ;;  %v4702_v6 = vadd.f32 %v1822_v23, %v1687_v0 }
 0x196   : > { %v1623_v63 = vpop.f32.mrf.mxu1  ;;  %v1851_v21 = vpop.f32.mrf.mxu0 }
 0x197   : > { %5210 = vst [vmem:[#allocation2_spill] sm:$0xff] %v4702_v6  ;;  %v1690_v49 = vadd.f32 %v1623_v63, %v4604_v7  ;;  %v4705_v32 = vadd.f32 %v3486_v59, %v1692_v30 }
 0x198   : > { %v3453_v25 = vpop.f32.mrf.mxu1  ;;  %v3491_v8 = vpop.f32.mrf.mxu0 }
 0x199   : > { %5211 = vst [vmem:[#allocation4_spill] sm:$0xff] %v4705_v32  ;;  %v1693_v38 = vadd.f32 %v3453_v25, %v4607_v51  ;;  %v4708_v55 = vadd.f32 %v1835_v24, %v1690_v49 }
 0x19a   : > { %v1626_v26 = vpop.f32.mrf.mxu1  ;;  %v1854_v41 = vpop.f32.mrf.mxu0 }
 0x19b   : > { %5212 = vst [vmem:[#allocation3_spill] sm:$0xff] %v4708_v55  ;;  %v1691_v16 = vadd.f32 %v1626_v26, %v4616_v36  ;;  %v4711_v12 = vadd.f32 %v3487_v4, %v1693_v38 }
 0x19c   : > { %v3456_v5 = vpop.f32.mrf.mxu1  ;;  %v3494_v44 = vpop.f32.mrf.mxu0 }
 0x19d   : > { %5213 = vst [vmem:[#allocation5_spill] sm:$0xff] %v4711_v12  ;;  %v1696_v2 = vadd.f32 %v3456_v5, %v4619_v56  ;;  %v4714_v50 = vadd.f32 %v1838_v60, %v1691_v16 }
 0x19e   : > { %v1639_v7 = vpop.f32.mrf.mxu1  ;;  %v1867_v23 = vpop.f32.mrf.mxu0 }
 0x19f   : > { %5214 = vst [vmem:[#allocation6_spill] sm:$0xff] %v4714_v50  ;;  %v1694_v14 = vadd.f32 %v1639_v7, %v4622_v31  ;;  %v4717_v15 = vadd.f32 %v3490_v52, %v1696_v2 }
 0x1a0   : > { %v3457_v51 = vpop.f32.mrf.mxu1  ;;  %v3495_v59 = vpop.f32.mrf.mxu0 }
 0x1a1   : > { %5215 = vst [vmem:[#allocation7_spill] sm:$0xff] %v4717_v15  ;;  %v1697_v58 = vadd.f32 %v3457_v51, %v4625_v3  ;;  %v4720_v54 = vadd.f32 %v1851_v21, %v1694_v14 }
 0x1a2   : > { %v1642_v36 = vpop.f32.mrf.mxu1  ;;  %v1870_v24 = vpop.f32.mrf.mxu0 }
 0x1a3   : > { %5216 = vst [vmem:[#allocation8_spill] sm:$0xff] %v4720_v54  ;;  %v1695_v53 = vadd.f32 %v1642_v36, %v4630_v48  ;;  %v4723_v34 = vadd.f32 %v3491_v8, %v1697_v58 }
 0x1a4   : > { %v3460_v56 = vpop.f32.mrf.mxu1  ;;  %v4725_v4 = vpop.f32.mrf.mxu0 }
 0x1a5   : > { %5217 = vst [vmem:[#allocation9_spill] sm:$0xff] %v4723_v34  ;;  %v1700_v10 = vadd.f32 %v3460_v56, %v4633_v22  ;;  %v4728_v31 = vadd.f32 %v1854_v41, %v1695_v53 }
 0x1a6   : > { %v1655_v1 = vpop.f32.mrf.mxu1  ;;  %v4730_v60 = vpop.f32.mrf.mxu0 }
 0x1a7   : > { %5218 = vst [vmem:[#allocation10_spill] sm:$0xff] %v4728_v31  ;;  %v1698_v3 = vadd.f32 %v1655_v1, %v4636_v62  ;;  %v4733_v0 = vadd.f32 %v3494_v44, %v1700_v10 }
 0x1a8   : > { %v3461_v61 = vpop.f32.mrf.mxu1  ;;  %v4735_v52 = vpop.f32.mrf.mxu0 }
 0x1a9   : > { %5219 = vst [vmem:[#allocation11_spill] sm:$0xff] %v4733_v0  ;;  %v1701_v48 = vadd.f32 %v3461_v61, %v4639_v46  ;;  %v4738_v30 = vadd.f32 %v1867_v23, %v1698_v3 }
 0x1aa   : > { %v1658_v63 = vpop.f32.mrf.mxu1  ;;  %v4740_v21 = vpop.f32.mrf.mxu0 }
 0x1ab   : > { %5220 = vst [vmem:[#allocation12_spill] sm:$0xff] %v4738_v30  ;;  %v1699_v22 = vadd.f32 %v1658_v63, %v4642_v9  ;;  %v4743_v49 = vadd.f32 %v3495_v59, %v1701_v48 }
 0x1ac   : > { %v3500_v25 = vpop.f32.mrf.mxu1  ;;  %v4745_v8 = vpop.f32.mrf.mxu0 }
 0x1ad   : > { %5221 = vst [vmem:[#allocation13_spill] sm:$0xff] %v4743_v49  ;;  %v4747_v62 = vadd.f32 %v1870_v24, %v1699_v22 }
 0x1ae   : > { %v1961_v38 = vpop.f32.mrf.mxu1  ;;  %v4749_v26 = vpop.f32.mrf.mxu0 }
 0x1af   : > { %5222 = vst [vmem:[#allocation14_spill] sm:$0xff] %v4747_v62 }
 0x1b0   : > { %v3501_v41 = vpop.f32.mrf.mxu1  ;;  %v4751_v16 = vpop.f32.mrf.mxu0 }
 0x1b2   : > { %v1964_v46 = vpop.f32.mrf.mxu1  ;;  %v4753_v5 = vpop.f32.mrf.mxu0 }
 0x1b4   : > { %v3504_v44 = vpop.f32.mrf.mxu1  ;;  %v4755_v2 = vpop.f32.mrf.mxu0 }
 0x1b6   : > { %v1977_v9 = vpop.f32.mrf.mxu1  ;;  %v4757_v7 = vpop.f32.mrf.mxu0 }
 0x1b8   : > { %v4759_v23 = vpop.f32.mrf.mxu1  ;;  %v4761_v14 = vpop.f32.mrf.mxu0 }
 0x1ba   : > { %v4763_v51 = vpop.f32.mrf.mxu1  ;;  %v4765_v59 = vpop.f32.mrf.mxu0 }
 0x1bc   : > { %v4767_v58 = vpop.f32.mrf.mxu1  ;;  %v4769_v36 = vpop.f32.mrf.mxu0 }
 0x1bd   : > { %5223 = vst [vmem:[#allocation15_spill] sm:$0xff] %v4769_v36 }
 0x1be   : > { %v4771_v24 = vpop.f32.mrf.mxu1  ;;  %v4773_v53 = vpop.f32.mrf.mxu0 }
 0x1bf   : > { %5224 = vst [vmem:[#allocation16_spill] sm:$0xff] %v4773_v53  ;;  %v2092_v53 = vadd.f32 %v1977_v9, %v4660_v42 }
 0x1c0   : > { %v4775_v56 = vpop.f32.mrf.mxu1  ;;  %v4777_v10 = vpop.f32.mrf.mxu0 }
 0x1c1   : > { %5225 = vst [vmem:[#allocation17_spill] sm:$0xff] %v4777_v10 }
 0x1c2   : > { %v4779_v1 = vpop.f32.mrf.mxu1  ;;  %v4781_v3 = vpop.f32.mrf.mxu0 }
 0x1c3   : > { %5226 = vst [vmem:[#allocation18_spill] sm:$0xff] %v4781_v3 }
 0x1c4   : > { %v4783_v61 = vpop.f32.mrf.mxu1  ;;  %v4785_v48 = vpop.f32.mrf.mxu0 }
 0x1c5   : > { %5227 = vst [vmem:[#allocation19_spill] sm:$0xff] %v4785_v48 }
 0x1c6   : > { %v4787_v63 = vpop.f32.mrf.mxu1  ;;  %v4789_v22 = vpop.f32.mrf.mxu0 }
 0x1c7   : > { %5228 = vst [vmem:[#allocation20_spill] sm:$0xff] %v4789_v22 }
 0x1c8   : > { %v4791_v62 = vpop.f32.mrf.mxu1  ;;  %v4793_v49 = vpop.f32.mrf.mxu0  ;;  %v5257_v9 = vld [vmem:[#allocation17_spill] sm:$0xff] }
 0x1c9   : > { %5229 = vst [vmem:[#allocation21_spill] sm:$0xff] %v4793_v49 }
 0x1ca   : > { %v4795_v30 = vpop.f32.mrf.mxu1  ;;  %v4797_v0 = vpop.f32.mrf.mxu0 }
 0x1cb   : > { %5230 = vst [vmem:[#allocation22_spill] sm:$0xff] %v4797_v0 }
 0x1cc   : > { %v4799_v31 = vpop.f32.mrf.mxu1  ;;  %v4801_v34 = vpop.f32.mrf.mxu0 }
 0x1cd   : > { %5231 = vst [vmem:[#allocation23_spill] sm:$0xff] %v4801_v34 }
 0x1ce   : > { %v4803_v54 = vpop.f32.mrf.mxu1  ;;  %v4805_v15 = vpop.f32.mrf.mxu0 }
 0x1cf   : > { %5232 = vst [vmem:[#allocation24_spill] sm:$0xff] %v4805_v15 }
 0x1d0   : > { %v4807_v50 = vpop.f32.mrf.mxu1  ;;  %v4809_v12 = vpop.f32.mrf.mxu0 }
 0x1d1   : > { %5233 = vst [vmem:[#allocation25_spill] sm:$0xff] %v4809_v12 }
 0x1d2   : > { %v4811_v55 = vpop.f32.mrf.mxu1  ;;  %v4813_v32 = vpop.f32.mrf.mxu0 }
 0x1d3   : > { %5234 = vst [vmem:[#allocation26_spill] sm:$0xff] %v4811_v55  ;;  %5235 = vst [vmem:[#allocation27_spill] sm:$0xff] %v4813_v32 }
 0x1d4   : > { %v4815_v49 = vpop.f32.mrf.mxu1  ;;  %v4817_v6 = vpop.f32.mrf.mxu0 }
 0x1d5   : > { %5236 = vst [vmem:[#allocation28_spill] sm:$0xff] %v4815_v49  ;;  %5237 = vst [vmem:[#allocation29_spill] sm:$0xff] %v4817_v6 }
 0x1d6   : > { %v4819_v0 = vpop.f32.mrf.mxu1  ;;  %v4821_v22 = vpop.f32.mrf.mxu0 }
 0x1d7   : > { %5238 = vst [vmem:[#allocation30_spill] sm:$0xff] %v4819_v0  ;;  %5239 = vst [vmem:[#allocation31_spill] sm:$0xff] %v4821_v22 }
 0x1d8   : > { %v4823_v34 = vpop.f32.mrf.mxu1  ;;  %v4825_v48 = vpop.f32.mrf.mxu0 }
 0x1d9   : > { %5240 = vst [vmem:[#allocation32_spill] sm:$0xff] %v4823_v34  ;;  %5241 = vst [vmem:[#allocation33_spill] sm:$0xff] %v4825_v48 }
 0x1da   : > { %v4827_v15 = vpop.f32.mrf.mxu1  ;;  %v4829_v3 = vpop.f32.mrf.mxu0 }
 0x1db   : > { %5242 = vst [vmem:[#allocation34_spill] sm:$0xff] %v4827_v15  ;;  %5243 = vst [vmem:[#allocation35_spill] sm:$0xff] %v4829_v3 }
 0x1dc   : > { %v4831_v12 = vpop.f32.mrf.mxu1  ;;  %v4833_v55 = vpop.f32.mrf.mxu0 }
 0x1dd   : > { %5244 = vst [vmem:[#allocation36_spill] sm:$0xff] %v4831_v12  ;;  %5245 = vst [vmem:[#allocation37_spill] sm:$0xff] %v4833_v55  ;;  %v2090_v55 = vadd.f32 %v3500_v25, %v4645_v57 }
 0x1de   : > { %v4835_v32 = vpop.f32.mrf.mxu1  ;;  %v4837_v49 = vpop.f32.mrf.mxu0 }
 0x1df   : > { %5246 = vst [vmem:[#allocation38_spill] sm:$0xff] %v4835_v32  ;;  %5247 = vst [vmem:[#allocation39_spill] sm:$0xff] %v4837_v49  ;;  %v2088_v49 = vadd.f32 %v1961_v38, %v4648_v17 }
 0x1e0   : > { %v4839_v6 = vpop.f32.mrf.mxu1  ;;  %v4841_v0 = vpop.f32.mrf.mxu0 }
 0x1e1   : > { %5248 = vst [vmem:[#allocation40_spill] sm:$0xff] %v4839_v6  ;;  %5249 = vst [vmem:[#allocation41_spill] sm:$0xff] %v4841_v0  ;;  %v2091_v6 = vadd.f32 %v3501_v41, %v4651_v43  ;;  %v2089_v0 = vadd.f32 %v1964_v46, %v4654_v47  ;;  %v2286_v36 = vadd.f32 %v4730_v60, %v2088_v49  ;;  %v5255_v46 = vld [vmem:[#allocation15_spill] sm:$0xff] }
 0x1e2   : > { %v4843_v22 = vpop.f32.mrf.mxu1  ;;  %v4845_v34 = vpop.f32.mrf.mxu0  ;;  %v2095_v47 = vadd.f32 %v4759_v23, %v4663_v35  ;;  %v2096_v35 = vadd.f32 %v4771_v24, %v4672_v39  ;;  %v2290_v49 = vadd.f32 %v4749_v26, %v2092_v53  ;;  %v2103_v39 = vadd.f32 %v4791_v62, %v4687_v40  ;;  %v5260_v24 = vld [vmem:[#allocation20_spill] sm:$0xff] }
 0x1e3   : > { %5250 = vst [vmem:[#allocation42_spill] sm:$0xff] %v4843_v22  ;;  %5251 = vst [vmem:[#allocation43_spill] sm:$0xff] %v4845_v34  ;;  %v2094_v34 = vadd.f32 %v3504_v44, %v4657_v37  ;;  %v2289_v17 = vadd.f32 %v4735_v52, %v2091_v6  ;;  %v2287_v43 = vadd.f32 %v4740_v21, %v2089_v0  ;;  %v5256_v44 = vld [vmem:[#allocation16_spill] sm:$0xff] }
 0x1e4   : > { %v4847_v48 = vpop.f32.mrf.mxu1  ;;  %v3602_v15 = vpop.f32.mrf.mxu0  ;;  %v2093_v37 = vadd.f32 %v4763_v51, %v4666_v28  ;;  %v2099_v28 = vadd.f32 %v4775_v56, %v4675_v13  ;;  %v2102_v52 = vadd.f32 %v4783_v61, %v4681_v29  ;;  %v2100_v21 = vadd.f32 %v4787_v63, %v4684_v20  ;;  %v5261_v56 = vld [vmem:[#allocation2_spill] sm:$0xff] }
 0x1e5   : > { %5252 = vst [vmem:[#allocation44_spill] sm:$0xff] %v4847_v48  ;;  %v2292_v6 = vadd.f32 %v4745_v8, %v2094_v34  ;;  %v2101_v13 = vadd.f32 %v4795_v30, %v4690_v18  ;;  %v2106_v29 = vadd.f32 %v4799_v31, %v4693_v27  ;;  %v2104_v20 = vadd.f32 %v4803_v54, %v4696_v45 }
 0x1e6   : > { %v4849_v3 = vpop.f32.mrf.mxu1  ;;  %v2555_v12 = vpop.f32.mrf.mxu0  ;;  %v2293_v26 = vadd.f32 %v4751_v16, %v2095_v47  ;;  %v2291_v40 = vadd.f32 %v4753_v5, %v2093_v37  ;;  %v4910_v30 = vadd.f32 %v4757_v7, %v2096_v35  ;;  %v4913_v27 = vadd.f32 %v4761_v14, %v2099_v28  ;;  %v5263_v37 = vld [vmem:[#allocation21_spill] sm:$0xff] }
 0x1e7   : > { %5253 = vst [vmem:[#allocation45_spill] sm:$0xff] %v4849_v3  ;;  %v2288_v3 = vadd.f32 %v4725_v4, %v2090_v55  ;;  %v2098_v55 = vadd.f32 %v4767_v58, %v4669_v11  ;;  %v2097_v11 = vadd.f32 %v4779_v1, %v4678_v33  ;;  %v2107_v45 = vadd.f32 %v4807_v50, %v4699_v19  ;;  %v5258_v19 = vld [vmem:[#allocation18_spill] sm:$0xff]  ;;  %v5259_v58 = vld [vmem:[#allocation19_spill] sm:$0xff] }
 0x1e8   : > { %v4852_v10 = vpop.f32.mrf.mxu1  ;;  %v3603_v32 = vpop.f32.mrf.mxu0  ;;  %v4921_v5 = vadd.f32 %v5255_v46, %v2102_v52  ;;  %v4929_v7 = vadd.f32 %v5257_v9, %v2103_v39  ;;  %v4932_v50 = vadd.f32 %v5258_v19, %v2101_v13  ;;  %v4940_v53 = vadd.f32 %v5260_v24, %v2104_v20  ;;  %v5268_v46 = vld [vmem:[#allocation30_spill] sm:$0xff] }
 0x1e9   : > { %5254 = vst [vmem:[#allocation46_spill] sm:$0xff] %v4852_v10  ;;  %v4918_v16 = vadd.f32 %v4765_v59, %v2097_v11 }
 0x1ea   : > { %v4858_v22 = vpop.f32.mrf.mxu1  ;;  %v2558_v48 = vpop.f32.mrf.mxu0 }
 0x1ec   : > { %v3568_v57 = vpop.f32.mrf.mxu1  ;;  %v3606_v25 = vpop.f32.mrf.mxu0 }
 0x1ed   : > { %v2486_v10 = vadd.f32 %v3568_v57, %v2288_v3 }
 0x1ee   : > { %v2357_v42 = vpop.f32.mrf.mxu1  ;;  %v2571_v4 = vpop.f32.mrf.mxu0 }
 0x1ef   : > { %v2684_v60 = vadd.f32 %v3602_v15, %v2486_v10  ;;  %v2484_v0 = vadd.f32 %v2357_v42, %v2286_v36  ;;  %v4937_v36 = vadd.f32 %v5259_v58, %v2106_v29  ;;  %v5262_v10 = vld [vmem:[#allocation26_spill] sm:$0xff]  ;;  %v5264_v42 = vld [vmem:[#allocation4_spill] sm:$0xff] }
 0x1f0   : > { %v3569_v34 = vpop.f32.mrf.mxu1  ;;  %v4890_v8 = vpop.f32.mrf.mxu0  ;;  %v2105_v1 = vadd.f32 %v5262_v10, %v5261_v56 }
 0x1f1   : > { %2716 = vst.msk [vmem:[%s4876_s25 + $0x10] sm:$0xff] %vm766_vm1, %v2684_v60  ;;  %v2682_v33 = vadd.f32 %v2555_v12, %v2484_v0  ;;  %v2487_v15 = vadd.f32 %v3569_v34, %v2289_v17  ;;  %v2296_v12 = vadd.f32 %v4755_v2, %v2098_v55  ;;  %v4926_v2 = vadd.f32 %v5256_v44, %v2100_v21 }
 0x1f2   : > { %v2360_v38 = vpop.f32.mrf.mxu1  ;;  %v4903_v41 = vpop.f32.mrf.mxu0  ;;  %v2817_v3 = vmul.f32 %v2684_v60, %v2684_v60  ;;  %v4951_v55 = vadd.f32 %v5263_v37, %v2107_v45 }
 0x1f3   : > { %2714 = vst.msk [vmem:[%s4876_s25] sm:$0xff] %vm766_vm1, %v2682_v33  ;;  %v2685_v18 = vadd.f32 %v3603_v32, %v2487_v15  ;;  %v2485_v54 = vadd.f32 %v2360_v38, %v2287_v43  ;;  %v2815_v23 = vmul.f32 %v2682_v33, %v2682_v33  ;;  %v2746_v57 = vsel %vm766_vm1, %v2682_v33, 0.0 }
 0x1f4   : > { %v3572_v31 = vpop.f32.mrf.mxu1  ;;  %v3610_v62 = vpop.f32.mrf.mxu0  ;;  %v2850_v13 = vsel %vm766_vm1, %v2817_v3, 0.0 }
 0x1f5   : > { %2717 = vst.msk [vmem:[%s4876_s25 + $0x18] sm:$0xff] %vm766_vm1, %v2685_v18  ;;  %v2490_v32 = vadd.f32 %v3572_v31, %v2292_v6  ;;  %v2683_v14 = vadd.f32 %v2558_v48, %v2485_v54  ;;  %v5265_v6 = vld [vmem:[#allocation28_spill] sm:$0xff]  ;;  %v2847_v11 = vsel %vm766_vm1, %v2815_v23, 0.0  ;;  %v2818_v52 = vmul.f32 %v2685_v18, %v2685_v18  ;;  %v5267_v31 = vld [vmem:[#allocation3_spill] sm:$0xff] }
 0x1f6   : > { %v2373_v51 = vpop.f32.mrf.mxu1  ;;  %v4934_v59 = vpop.f32.mrf.mxu0  ;;  %v2110_v35 = vadd.f32 %v5265_v6, %v5264_v42 }
 0x1f7   : > { %v2688_v61 = vadd.f32 %v3606_v25, %v2490_v32  ;;  %v2488_v63 = vadd.f32 %v2373_v51, %v2290_v49  ;;  %2715 = vst.msk [vmem:[%s4876_s25 + $0x8] sm:$0xff] %vm766_vm1, %v2683_v14  ;;  %v2747_v48 = vsel %vm766_vm1, %v2683_v14, 0.0  ;;  %v2816_v17 = vmul.f32 %v2683_v14, %v2683_v14  ;;  %v5269_v51 = vld [vmem:[#allocation23_spill] sm:$0xff] }
 0x1f8   : > { %v3573_v43 = vpop.f32.mrf.mxu1  ;;  %v4948_v47 = vpop.f32.mrf.mxu0  ;;  %v2749_v25 = vsel %vm766_vm1, %v2684_v60, 0.0  ;;  %v2748_v28 = vadd.f32 %v2747_v48, %v2746_v57  ;;  %v5266_v60 = vld [vmem:[#allocation22_spill] sm:$0xff]  ;;  %v2108_v32 = vadd.f32 %v5268_v46, %v5267_v31  ;;  %v2852_v23 = vsel %vm766_vm1, %v2818_v52, 0.0 }
 0x1f9   : > { %2720 = vst.msk [vmem:[%s4876_s25 + $0x30] sm:$0xff] %vm766_vm1, %v2688_v61  ;;  %v2686_v0 = vadd.f32 %v2571_v4, %v2488_v63  ;;  %v2848_v21 = vsel %vm766_vm1, %v2816_v17, 0.0  ;;  %v2491_v34 = vadd.f32 %v3573_v43, %v2293_v26  ;;  %v4964_v29 = vadd.f32 %v5266_v60, %v2105_v1  ;;  %v5270_v17 = vld [vmem:[#allocation5_spill] sm:$0xff]  ;;  %v5271_v43 = vld [vmem:[#allocation32_spill] sm:$0xff]  ;;  %v5274_v31 = vld [vmem:[#allocation34_spill] sm:$0xff] }
 0x1fa   : > { %v2376_v49 = vpop.f32.mrf.mxu1  ;;  %v2590_v39 = vpop.f32.mrf.mxu0  ;;  %v2750_v33 = vadd.f32 %v2749_v25, %v2748_v28  ;;  %v2849_v15 = vadd.f32 %v2848_v21, %v2847_v11  ;;  %v2751_v4 = vsel %vm766_vm1, %v2685_v18, 0.0  ;;  %v4980_v58 = vadd.f32 %v5269_v51, %v2110_v35 }
 0x1fb   : > { %2718 = vst.msk [vmem:[%s4876_s25 + $0x20] sm:$0xff] %vm766_vm1, %v2686_v0  ;;  %v2819_v20 = vmul.f32 %v2686_v0, %v2686_v0  ;;  %v2689_v38 = vadd.f32 %v4890_v8, %v2491_v34  ;;  %v2489_v45 = vadd.f32 %v2376_v49, %v2291_v40  ;;  %v2753_v14 = vsel %vm766_vm1, %v2686_v0, 0.0 }
 0x1fc   : > { %v3576_v54 = vpop.f32.mrf.mxu1  ;;  %v4968_v26 = vpop.f32.mrf.mxu0  ;;  %v2851_v44 = vadd.f32 %v2850_v13, %v2849_v15  ;;  %v2752_v9 = vadd.f32 %v2751_v4, %v2750_v33  ;;  %v2821_v1 = vmul.f32 %v2688_v61, %v2688_v61  ;;  %v2111_v37 = vadd.f32 %v5271_v43, %v5270_v17 }
 0x1fd   : > { %v2494_v19 = vadd.f32 %v3576_v54, %v2296_v12  ;;  %2721 = vst.msk [vmem:[%s4876_s25 + $0x38] sm:$0xff] %vm766_vm1, %v2689_v38  ;;  %v2687_v18 = vadd.f32 %v4903_v41, %v2489_v45  ;;  %v2854_v3 = vsel %vm766_vm1, %v2819_v20, 0.0  ;;  %v2757_v42 = vsel %vm766_vm1, %v2688_v61, 0.0  ;;  %v5272_v61 = vld [vmem:[#allocation24_spill] sm:$0xff]  ;;  %v5273_v54 = vld [vmem:[#allocation6_spill] sm:$0xff] }
 0x1fe   : > { %v2389_v8 = vpop.f32.mrf.mxu1  ;;  %v4977_v40 = vpop.f32.mrf.mxu0  ;;  %v2754_v24 = vadd.f32 %v2753_v14, %v2752_v9  ;;  %v2853_v56 = vadd.f32 %v2852_v23, %v2851_v44  ;;  %v4999_v49 = vadd.f32 %v5272_v61, %v2108_v32  ;;  %v2858_v13 = vsel %vm766_vm1, %v2821_v1, 0.0  ;;  %v5275_v32 = vld [vmem:[#allocation7_spill] sm:$0xff]  ;;  %v5276_v44 = vld [vmem:[#allocation36_spill] sm:$0xff] }
 0x1ff   : > { %v2692_v10 = vadd.f32 %v3610_v62, %v2494_v19  ;;  %v2492_v12 = vadd.f32 %v2389_v8, %v4910_v30  ;;  %2719 = vst.msk [vmem:[%s4876_s25 + $0x28] sm:$0xff] %vm766_vm1, %v2687_v18  ;;  %v2755_v63 = vsel %vm766_vm1, %v2687_v18, 0.0  ;;  %v2820_v41 = vmul.f32 %v2687_v18, %v2687_v18  ;;  %v5279_v61 = vld [vmem:[#allocation8_spill] sm:$0xff] }
 0x200   : > { %v3577_v57 = vpop.f32.mrf.mxu1  ;;  %v3615_v48 = vpop.f32.mrf.mxu0  ;;  %v2855_v6 = vadd.f32 %v2854_v3, %v2853_v56  ;;  %v2756_v62 = vadd.f32 %v2755_v63, %v2754_v24  ;;  %v2822_v30 = vmul.f32 %v2689_v38, %v2689_v38  ;;  %v2759_v33 = vsel %vm766_vm1, %v2689_v38, 0.0 }
 0x201   : > { %2724 = vst.msk [vmem:[%s4876_s25 + $0x50] sm:$0xff] %vm766_vm1, %v2692_v10  ;;  %v2856_v35 = vsel %vm766_vm1, %v2820_v41, 0.0  ;;  %v2690_v25 = vadd.f32 %v4934_v59, %v2492_v12  ;;  %v2495_v28 = vadd.f32 %v3577_v57, %v4913_v27  ;;  %v2109_v46 = vadd.f32 %v5274_v31, %v5273_v54 }
 0x202   : > { %v2392_v0 = vpop.f32.mrf.mxu1  ;;  %v4995_v11 = vpop.f32.mrf.mxu0  ;;  %v2758_v52 = vadd.f32 %v2757_v42, %v2756_v62  ;;  %v2857_v21 = vadd.f32 %v2856_v35, %v2855_v6  ;;  %v2114_v38 = vadd.f32 %v5276_v44, %v5275_v32  ;;  %v2860_v9 = vsel %vm766_vm1, %v2822_v30, 0.0 }
 0x203   : > { %v2493_v34 = vadd.f32 %v2392_v0, %v4918_v16  ;;  %2722 = vst.msk [vmem:[%s4876_s25 + $0x40] sm:$0xff] %vm766_vm1, %v2690_v25  ;;  %v2823_v59 = vmul.f32 %v2690_v25, %v2690_v25  ;;  %v2693_v27 = vadd.f32 %v4948_v47, %v2495_v28  ;;  %v2761_v19 = vsel %vm766_vm1, %v2690_v25, 0.0 }
 0x204   : > { %v3580_v15 = vpop.f32.mrf.mxu1  ;;  %v5006_v60 = vpop.f32.mrf.mxu0  ;;  %v2859_v4 = vadd.f32 %v2858_v13, %v2857_v21  ;;  %v2760_v20 = vadd.f32 %v2759_v33, %v2758_v52  ;;  %v2825_v8 = vmul.f32 %v2692_v10, %v2692_v10  ;;  %v2765_v17 = vsel %vm766_vm1, %v2692_v10, 0.0  ;;  %v5278_v21 = vld [vmem:[#allocation27_spill] sm:$0xff] }
 0x205   : > { %v2691_v16 = vadd.f32 %v2590_v39, %v2493_v34  ;;  %v2498_v45 = vadd.f32 %v3580_v15, %v4921_v5  ;;  %2725 = vst.msk [vmem:[%s4876_s25 + $0x58] sm:$0xff] %vm766_vm1, %v2693_v27  ;;  %v2862_v51 = vsel %vm766_vm1, %v2823_v59, 0.0  ;;  %v2826_v43 = vmul.f32 %v2693_v27, %v2693_v27 }
 0x206   : > { %v2405_v47 = vpop.f32.mrf.mxu1  ;;  %v2619_v23 = vpop.f32.mrf.mxu0  ;;  %v2762_v14 = vadd.f32 %v2761_v19, %v2760_v20  ;;  %v2861_v18 = vadd.f32 %v2860_v9, %v2859_v4  ;;  %v2767_v10 = vsel %vm766_vm1, %v2693_v27, 0.0  ;;  %v5042_v34 = vadd.f32 %v5278_v21, %v2109_v46 }
 0x207   : > { %2723 = vst.msk [vmem:[%s4876_s25 + $0x48] sm:$0xff] %vm766_vm1, %v2691_v16  ;;  %v2763_v5 = vsel %vm766_vm1, %v2691_v16, 0.0  ;;  %v2824_v39 = vmul.f32 %v2691_v16, %v2691_v16  ;;  %v2696_v24 = vadd.f32 %v4968_v26, %v2498_v45  ;;  %v2496_v56 = vadd.f32 %v2405_v47, %v4926_v2  ;;  %v5277_v2 = vld [vmem:[#allocation25_spill] sm:$0xff] }
 0x208   : > { %v3581_v12 = vpop.f32.mrf.mxu1  ;;  %v5023_v1 = vpop.f32.mrf.mxu0  ;;  %v2863_v3 = vadd.f32 %v2862_v51, %v2861_v18  ;;  %v2764_v63 = vadd.f32 %v2763_v5, %v2762_v14  ;;  %v5034_v62 = vadd.f32 %v5277_v2, %v2111_v37  ;;  %v5280_v37 = vld [vmem:[#allocation38_spill] sm:$0xff]  ;;  %v2868_v27 = vsel %vm766_vm1, %v2826_v43, 0.0 }
 0x209   : > { %v2864_v41 = vsel %vm766_vm1, %v2824_v39, 0.0  ;;  %v2499_v57 = vadd.f32 %v3581_v12, %v4929_v7  ;;  %2728 = vst.msk [vmem:[%s4876_s25 + $0x70] sm:$0xff] %vm766_vm1, %v2696_v24  ;;  %v2694_v42 = vadd.f32 %v4977_v40, %v2496_v56  ;;  %v2866_v7 = vsel %vm766_vm1, %v2825_v8, 0.0  ;;  %v5283_v39 = vld [vmem:[#allocation40_spill] sm:$0xff] }
 0x20a   : > { %v2408_v26 = vpop.f32.mrf.mxu1  ;;  %v5031_v6 = vpop.f32.mrf.mxu0  ;;  %v2766_v30 = vadd.f32 %v2765_v17, %v2764_v63  ;;  %v2865_v35 = vadd.f32 %v2864_v41, %v2863_v3  ;;  %v2112_v13 = vadd.f32 %v5280_v37, %v5279_v61  ;;  %v2829_v54 = vmul.f32 %v2696_v24, %v2696_v24  ;;  %v5287_v61 = vld [vmem:[#allocation33_spill] sm:$0xff] }
 0x20b   : > { %v2697_v25 = vadd.f32 %v3615_v48, %v2499_v57  ;;  %v2497_v28 = vadd.f32 %v2408_v26, %v4932_v50  ;;  %2726 = vst.msk [vmem:[%s4876_s25 + $0x60] sm:$0xff] %vm766_vm1, %v2694_v42  ;;  %v2827_v0 = vmul.f32 %v2694_v42, %v2694_v42  ;;  %v5281_v50 = vld [vmem:[#allocation29_spill] sm:$0xff]  ;;  %v2769_v15 = vsel %vm766_vm1, %v2694_v42, 0.0 }
 0x20c   : > { %v3584_v40 = vpop.f32.mrf.mxu1  ;;  %v3622_v52 = vpop.f32.mrf.mxu0  ;;  %v2867_v33 = vadd.f32 %v2866_v7, %v2865_v35  ;;  %v2768_v48 = vadd.f32 %v2767_v10, %v2766_v30  ;;  %v5049_v59 = vadd.f32 %v5281_v50, %v2114_v38  ;;  %v2773_v51 = vsel %vm766_vm1, %v2696_v24, 0.0  ;;  %v5285_v30 = vld [vmem:[#allocation10_spill] sm:$0xff] }
 0x20d   : > { %2729 = vst.msk [vmem:[%s4876_s25 + $0x78] sm:$0xff] %vm766_vm1, %v2697_v25  ;;  %v2695_v4 = vadd.f32 %v4995_v11, %v2497_v28  ;;  %v2502_v20 = vadd.f32 %v3584_v40, %v4937_v36  ;;  %v2870_v44 = vsel %vm766_vm1, %v2827_v0, 0.0  ;;  %v2830_v56 = vmul.f32 %v2697_v25, %v2697_v25  ;;  %v5286_v35 = vld [vmem:[#allocation42_spill] sm:$0xff] }
 0x20e   : > { %v2421_v16 = vpop.f32.mrf.mxu1  ;;  %v5055_v45 = vpop.f32.mrf.mxu0  ;;  %v2770_v31 = vadd.f32 %v2769_v15, %v2768_v48  ;;  %v2869_v46 = vadd.f32 %v2868_v27, %v2867_v33  ;;  %v2874_v63 = vsel %vm766_vm1, %v2829_v54, 0.0  ;;  %v2775_v17 = vsel %vm766_vm1, %v2697_v25, 0.0 }
 0x20f   : > { %v2500_v32 = vadd.f32 %v2421_v16, %v4940_v53  ;;  %2727 = vst.msk [vmem:[%s4876_s25 + $0x68] sm:$0xff] %vm766_vm1, %v2695_v4  ;;  %v2771_v38 = vsel %vm766_vm1, %v2695_v4, 0.0  ;;  %v2828_v9 = vmul.f32 %v2695_v4, %v2695_v4  ;;  %v2700_v11 = vadd.f32 %v5006_v60, %v2502_v20  ;;  %v5282_v53 = vld [vmem:[#allocation9_spill] sm:$0xff]  ;;  %v5289_v16 = vld [vmem:[#allocation44_spill] sm:$0xff] }
 0x210   : > { %v3585_v19 = vpop.f32.mrf.mxu1  ;;  %v5063_v36 = vpop.f32.mrf.mxu0  ;;  %v2871_v47 = vadd.f32 %v2870_v44, %v2869_v46  ;;  %v2772_v14 = vadd.f32 %v2771_v38, %v2770_v31  ;;  %v2115_v8 = vadd.f32 %v5283_v39, %v5282_v53  ;;  %v2113_v28 = vadd.f32 %v5286_v35, %v5285_v30 }
 0x211   : > { %v2698_v18 = vadd.f32 %v2619_v23, %v2500_v32  ;;  %v2503_v5 = vadd.f32 %v3585_v19, %v4951_v55  ;;  %v2872_v12 = vsel %vm766_vm1, %v2828_v9, 0.0  ;;  %2732 = vst.msk [vmem:[%s4876_s25 + $0x90] sm:$0xff] %vm766_vm1, %v2700_v11  ;;  %v5284_v55 = vld [vmem:[#allocation31_spill] sm:$0xff]  ;;  %v2876_v40 = vsel %vm766_vm1, %v2830_v56, 0.0 }
 0x212   : > { %v2424_v60 = vpop.f32.mrf.mxu1  ;;  %v2638_v3 = vpop.f32.mrf.mxu0  ;;  %v2774_v41 = vadd.f32 %v2773_v51, %v2772_v14  ;;  %v2873_v57 = vadd.f32 %v2872_v12, %v2871_v47  ;;  %v5076_v23 = vadd.f32 %v5284_v55, %v2112_v13  ;;  %v2313_v37 = vadd.f32 %v5287_v61, %v2115_v8  ;;  %v5293_v55 = vld [vmem:[#allocation13_spill] sm:$0xff] }
 0x213   : > { %2730 = vst.msk [vmem:[%s4876_s25 + $0x80] sm:$0xff] %vm766_vm1, %v2698_v18  ;;  %v2831_v24 = vmul.f32 %v2698_v18, %v2698_v18  ;;  %v2701_v43 = vadd.f32 %v5023_v1, %v2503_v5  ;;  %v2501_v42 = vadd.f32 %v2424_v60, %v4964_v29  ;;  %v2777_v21 = vsel %vm766_vm1, %v2698_v18, 0.0  ;;  %v5290_v5 = vld [vmem:[#allocation35_spill] sm:$0xff] }
 0x214   : > { %v3588_v26 = vpop.f32.mrf.mxu1  ;;  %v3626_v2 = vpop.f32.mrf.mxu0  ;;  %v2875_v7 = vadd.f32 %v2874_v63, %v2873_v57  ;;  %v2776_v10 = vadd.f32 %v2775_v17, %v2774_v41  ;;  %v2833_v27 = vmul.f32 %v2700_v11, %v2700_v11  ;;  %v2781_v31 = vsel %vm766_vm1, %v2700_v11, 0.0  ;;  %v5291_v63 = vld [vmem:[#allocation12_spill] sm:$0xff]  ;;  %v5292_v41 = vld [vmem:[#allocation45_spill] sm:$0xff]  ;;  %v5294_v17 = vld [vmem:[#allocation46_spill] sm:$0xff] }
 0x215   : > { %v2506_v0 = vadd.f32 %v3588_v26, %v4980_v58  ;;  %2733 = vst.msk [vmem:[%s4876_s25 + $0x98] sm:$0xff] %vm766_vm1, %v2701_v43  ;;  %v2699_v1 = vadd.f32 %v5031_v6, %v2501_v42  ;;  %v2878_v58 = vsel %vm766_vm1, %v2831_v24, 0.0  ;;  %v5288_v6 = vld [vmem:[#allocation11_spill] sm:$0xff]  ;;  %v2311_v11 = vadd.f32 %v5290_v5, %v2113_v28 }
 0x216   : > { %v2437_v25 = vpop.f32.mrf.mxu1  ;;  %v2651_v29 = vpop.f32.mrf.mxu0  ;;  %v2778_v13 = vadd.f32 %v2777_v21, %v2776_v10  ;;  %v2877_v33 = vadd.f32 %v2876_v40, %v2875_v7  ;;  %v2118_v54 = vadd.f32 %v5289_v16, %v5288_v6  ;;  %v2882_v53 = vsel %vm766_vm1, %v2833_v27, 0.0 }
 0x217   : > { %v2704_v48 = vadd.f32 %v3622_v52, %v2506_v0  ;;  %v2504_v50 = vadd.f32 %v2437_v25, %v4999_v49  ;;  %2731 = vst.msk [vmem:[%s4876_s25 + $0x88] sm:$0xff] %vm766_vm1, %v2699_v1  ;;  %v2779_v15 = vsel %vm766_vm1, %v2699_v1, 0.0  ;;  %v2832_v4 = vmul.f32 %v2699_v1, %v2699_v1 }
 0x218   : > { %v3589_v20 = vpop.f32.mrf.mxu1  ;;  %v2879_v46 = vadd.f32 %v2878_v58, %v2877_v33  ;;  %v2780_v32 = vadd.f32 %v2779_v15, %v2778_v13  ;;  %v3627_v49 = vpop.f32.mrf.mxu0  ;;  %v2834_v52 = vmul.f32 %v2701_v43, %v2701_v43  ;;  %v2783_v39 = vsel %vm766_vm1, %v2701_v43, 0.0  ;;  %v5295_v58 = vld [vmem:[#allocation37_spill] sm:$0xff] }
 0x219   : > { %2736 = vst.msk [vmem:[%s4876_s25 + $0xb0] sm:$0xff] %vm766_vm1, %v2704_v48  ;;  %v2880_v44 = vsel %vm766_vm1, %v2832_v4, 0.0  ;;  %v2702_v38 = vadd.f32 %v5055_v45, %v2504_v50  ;;  %v2507_v9 = vadd.f32 %v3589_v20, %v5034_v62  ;;  %v2116_v57 = vadd.f32 %v5292_v41, %v5291_v63 }
 0x21a   : > { %v2440_v19 = vpop.f32.mrf.mxu1  ;;  %v2782_v47 = vadd.f32 %v2781_v31, %v2780_v32  ;;  %v2881_v14 = vadd.f32 %v2880_v44, %v2879_v46  ;;  %v2119_v24 = vadd.f32 %v5294_v17, %v5293_v55  ;;  %v2884_v43 = vsel %vm766_vm1, %v2834_v52, 0.0  ;;  %v5296_v31 = vld [vmem:[#allocation39_spill] sm:$0xff]  ;;  %v5297_v32 = vld [vmem:[#allocation14_spill] sm:$0xff]  ;;  %v5298_v44 = vld [vmem:[#allocation41_spill] sm:$0xff] }
 0x21b   : > { %v2505_v18 = vadd.f32 %v2440_v19, %v5042_v34  ;;  %2734 = vst.msk [vmem:[%s4876_s25 + $0xa0] sm:$0xff] %vm766_vm1, %v2702_v38  ;;  %v2835_v8 = vmul.f32 %v2702_v38, %v2702_v38  ;;  %v2705_v45 = vadd.f32 %v5063_v36, %v2507_v9  ;;  %v2654_v34 = vpop.f32.mrf.mxu0  ;;  %v2785_v42 = vsel %vm766_vm1, %v2702_v38, 0.0  ;;  %v5299_v17 = vld [vmem:[#allocation43_spill] sm:$0xff] }
 0x21c   : > { %v3592_v51 = vpop.f32.mrf.mxu1  ;;  %v2883_v62 = vadd.f32 %v2882_v53, %v2881_v14  ;;  %v2784_v56 = vadd.f32 %v2783_v39, %v2782_v47  ;;  %v2837_v35 = vmul.f32 %v2704_v48, %v2704_v48  ;;  %v2789_v13 = vsel %vm766_vm1, %v2704_v48, 0.0 }
 0x21d   : > { %v2703_v12 = vadd.f32 %v2638_v3, %v2505_v18  ;;  %v2510_v60 = vadd.f32 %v3592_v51, %v5049_v59  ;;  %2737 = vst.msk [vmem:[%s4876_s25 + $0xb8] sm:$0xff] %vm766_vm1, %v2705_v45  ;;  %v2886_v28 = vsel %vm766_vm1, %v2835_v8, 0.0  ;;  %v3630_v61 = vpop.f32.mrf.mxu0  ;;  %v2838_v33 = vmul.f32 %v2705_v45, %v2705_v45 }
 0x21e   : > { %v2453_v36 = vpop.f32.mrf.mxu1  ;;  %v2786_v26 = vadd.f32 %v2785_v42, %v2784_v56  ;;  %v2885_v30 = vadd.f32 %v2884_v43, %v2883_v62  ;;  %v2890_v6 = vsel %vm766_vm1, %v2837_v35, 0.0  ;;  %v2791_v16 = vsel %vm766_vm1, %v2705_v45, 0.0 }
 0x21f   : > { %2735 = vst.msk [vmem:[%s4876_s25 + $0xa8] sm:$0xff] %vm766_vm1, %v2703_v12  ;;  %v2787_v59 = vsel %vm766_vm1, %v2703_v12, 0.0  ;;  %v2836_v3 = vmul.f32 %v2703_v12, %v2703_v12  ;;  %v2708_v7 = vadd.f32 %v3626_v2, %v2510_v60  ;;  %v2508_v10 = vadd.f32 %v2453_v36, %v5076_v23 }
 0x220   : > { %v3593_v0 = vpop.f32.mrf.mxu1  ;;  %v2887_v40 = vadd.f32 %v2886_v28, %v2885_v30  ;;  %v2788_v21 = vadd.f32 %v2787_v59, %v2786_v26  ;;  %v2316_v2 = vadd.f32 %v5295_v58, %v2118_v54  ;;  %v2314_v46 = vadd.f32 %v5296_v31, %v2116_v57 }
 0x221   : > { %v2888_v1 = vsel %vm766_vm1, %v2836_v3, 0.0  ;;  %v2511_v25 = vadd.f32 %v3593_v0, %v2313_v37  ;;  %2740 = vst.msk [vmem:[%s4876_s25 + $0xd0] sm:$0xff] %vm766_vm1, %v2708_v7  ;;  %v2706_v50 = vadd.f32 %v2651_v29, %v2508_v10  ;;  %v2117_v29 = vadd.f32 %v4858_v22, %v5297_v32 }
 0x222   : > { %v2456_v27 = vpop.f32.mrf.mxu1  ;;  %v2790_v15 = vadd.f32 %v2789_v13, %v2788_v21  ;;  %v2889_v23 = vadd.f32 %v2888_v1, %v2887_v40  ;;  %v2317_v38 = vadd.f32 %v5298_v44, %v2119_v24  ;;  %v2892_v9 = vsel %vm766_vm1, %v2838_v33, 0.0 }
 0x223   : > { %v2709_v4 = vadd.f32 %v3627_v49, %v2511_v25  ;;  %v2509_v20 = vadd.f32 %v2456_v27, %v2311_v11  ;;  %2738 = vst.msk [vmem:[%s4876_s25 + $0xc0] sm:$0xff] %vm766_vm1, %v2706_v50  ;;  %v2839_v37 = vmul.f32 %v2706_v50, %v2706_v50  ;;  %v2667_v49 = vpop.f32.mrf.mxu0  ;;  %v2793_v19 = vsel %vm766_vm1, %v2706_v50, 0.0 }
 0x224   : > { %v3596_v48 = vpop.f32.mrf.mxu1  ;;  %v2891_v52 = vadd.f32 %v2890_v6, %v2889_v23  ;;  %v2792_v54 = vadd.f32 %v2791_v16, %v2790_v15  ;;  %v2841_v5 = vmul.f32 %v2708_v7, %v2708_v7  ;;  %v2797_v41 = vsel %vm766_vm1, %v2708_v7, 0.0 }
 0x225   : > { %2741 = vst.msk [vmem:[%s4876_s25 + $0xd8] sm:$0xff] %vm766_vm1, %v2709_v4  ;;  %v2707_v47 = vadd.f32 %v2654_v34, %v2509_v20  ;;  %v2514_v14 = vadd.f32 %v3596_v48, %v2316_v2  ;;  %v2894_v39 = vsel %vm766_vm1, %v2839_v37, 0.0  ;;  %v3631_v34 = vpop.f32.mrf.mxu0  ;;  %v2842_v57 = vmul.f32 %v2709_v4, %v2709_v4 }
 0x226   : > { %v2469_v18 = vpop.f32.mrf.mxu1  ;;  %v2794_v11 = vadd.f32 %v2793_v19, %v2792_v54  ;;  %v2893_v53 = vadd.f32 %v2892_v9, %v2891_v52  ;;  %v2315_v24 = vadd.f32 %v5299_v17, %v2117_v29  ;;  %v2898_v42 = vsel %vm766_vm1, %v2841_v5, 0.0 }
 0x227   : > { %v2512_v22 = vadd.f32 %v2469_v18, %v2314_v46  ;;  %2739 = vst.msk [vmem:[%s4876_s25 + $0xc8] sm:$0xff] %vm766_vm1, %v2707_v47  ;;  %v2795_v8 = vsel %vm766_vm1, %v2707_v47, 0.0  ;;  %v2840_v45 = vmul.f32 %v2707_v47, %v2707_v47  ;;  %v2712_v51 = vadd.f32 %v3630_v61, %v2514_v14  ;;  %v2670_v10 = vpop.f32.mrf.mxu0 }
 0x228   : > { %v3597_v62 = vpop.f32.mrf.mxu1  ;;  %v2895_v56 = vadd.f32 %v2894_v39, %v2893_v53  ;;  %v2796_v12 = vadd.f32 %v2795_v8, %v2794_v11  ;;  %v2799_v30 = vsel %vm766_vm1, %v2709_v4, 0.0  ;;  %v2900_v0 = vsel %vm766_vm1, %v2842_v57, 0.0 }
 0x229   : > { %v2710_v60 = vadd.f32 %v2667_v49, %v2512_v22  ;;  %v2515_v63 = vadd.f32 %v3597_v62, %v2317_v38  ;;  %v2896_v55 = vsel %vm766_vm1, %v2840_v45, 0.0  ;;  %2744 = vst.msk [vmem:[%s4876_s25 + $0xf0] sm:$0xff] %vm766_vm1, %v2712_v51  ;;  %v2845_v61 = vmul.f32 %v2712_v51, %v2712_v51 }
 0x22a   : > { %v2472_v43 = vpop.f32.mrf.mxu1  ;;  %v2798_v36 = vadd.f32 %v2797_v41, %v2796_v12  ;;  %v2897_v26 = vadd.f32 %v2896_v55, %v2895_v56  ;;  %v2805_v2 = vsel %vm766_vm1, %v2712_v51, 0.0 }
 0x22b   : > { %2742 = vst.msk [vmem:[%s4876_s25 + $0xe0] sm:$0xff] %vm766_vm1, %v2710_v60  ;;  %v2843_v59 = vmul.f32 %v2710_v60, %v2710_v60  ;;  %v2713_v3 = vadd.f32 %v3631_v34, %v2515_v63  ;;  %v2513_v35 = vadd.f32 %v2472_v43, %v2315_v24  ;;  %v2801_v40 = vsel %vm766_vm1, %v2710_v60, 0.0 }
 0x22c   : > { %v2899_v28 = vadd.f32 %v2898_v42, %v2897_v26  ;;  %v2800_v7 = vadd.f32 %v2799_v30, %v2798_v36  ;;  %v2906_v6 = vsel %vm766_vm1, %v2845_v61, 0.0 }
 0x22d   : > { %2745 = vst.msk [vmem:[%s4876_s25 + $0xf8] sm:$0xff] %vm766_vm1, %v2713_v3  ;;  %v2711_v21 = vadd.f32 %v2670_v10, %v2513_v35  ;;  %v2902_v13 = vsel %vm766_vm1, %v2843_v59, 0.0  ;;  %v2846_v15 = vmul.f32 %v2713_v3, %v2713_v3  ;;  %v2807_v16 = vsel %vm766_vm1, %v2713_v3, 0.0 }
 0x22e   : > { %v2802_v1 = vadd.f32 %v2801_v40, %v2800_v7  ;;  %v2901_v25 = vadd.f32 %v2900_v0, %v2899_v28 }
 0x22f   : > { %2743 = vst.msk [vmem:[%s4876_s25 + $0xe8] sm:$0xff] %vm766_vm1, %v2711_v21  ;;  %v2803_v33 = vsel %vm766_vm1, %v2711_v21, 0.0  ;;  %v2844_v50 = vmul.f32 %v2711_v21, %v2711_v21  ;;  %v2908_v31 = vsel %vm766_vm1, %v2846_v15, 0.0 }
 0x230   : > { %v2903_v27 = vadd.f32 %v2902_v13, %v2901_v25  ;;  %v2804_v58 = vadd.f32 %v2803_v33, %v2802_v1 }
 0x231   : > { %v2904_v23 = vsel %vm766_vm1, %v2844_v50, 0.0 }
 0x232   : > { %v2806_v4 = vadd.f32 %v2805_v2, %v2804_v58  ;;  %v2905_v20 = vadd.f32 %v2904_v23, %v2903_v27 }
 0x234   : > { %v2808_v37 = vadd.f32 %v2807_v16, %v2806_v4  ;;  %v2907_v48 = vadd.f32 %v2906_v6, %v2905_v20 }
 0x236   : > { %v2809_v46 = vrot.slane %v2808_v37, 4  ;;  %v2909_v32 = vadd.f32 %v2908_v31, %v2907_v48 }
 0x238   : > { %v2810_v29 = vadd.f32 %v2809_v46, %v2808_v37  ;;  %v2910_v52 = vrot.slane %v2909_v32, 4 }
 0x23a   : > { %v2811_v54 = vrot.slane %v2810_v29, 2  ;;  %v2911_v49 = vadd.f32 %v2910_v52, %v2909_v32 }
 0x23c   : > { %v2812_v44 = vadd.f32 %v2811_v54, %v2810_v29  ;;  %v2912_v38 = vrot.slane %v2911_v49, 2 }
 0x23e   : > { %v2813_v9 = vrot.slane %v2812_v44, 1  ;;  %v2913_v19 = vadd.f32 %v2912_v38, %v2911_v49 }
 0x240   : > { %v2914_v47 = vrot.slane %v2913_v19, 1  ;;  %v2814_v14 = vadd.f32 %v2813_v9, %v2812_v44 }
 0x242   : > { %v2915_v18 = vadd.f32 %v2914_v47, %v2913_v19 }
 0x244   : > { %v2917_v5 = vsel %vm539_vm2, %v2814_v14, %v2915_v18 }
 0x245   : > { %v2919_v11 = vsel %vm2918_vm7, %v2917_v5, 0.0 }
 0x246   : > { %2920 = vst.msk [vmem:[%s235_s29] sm:$0xff] %vm766_vm1, %v2919_v11 }
 0x247 PF: > { %s16_s18 = sadd.s32 1, %s3659_s18  }
 0x248   : > { %p13_p4 = scmp.ge.s32.totalorder %s16_s18, 4  }
 0x24a   :  { %15 = sbr.rel (!%p13_p4) target bundleno = 1 (0x1), region = 86 }

// kernel: conv_block_forward.2
= control target key start
LH: loop header
LB: loop body
LE: loop exit
PB: predicated region body
PF: predicated region fallthrough
CT: control target
= control target key end

     0   :  { %s3580_s18 = smov 0   ;;  %s4962_s0 = inlined_call_operand.vmem [shape: f32[2,16,16,8], index: 0, kind: input, shape index: {}]   ;;  %s4963_s1 = inlined_call_operand.vmem [shape: f32[1,8], index: 1, kind: input, shape index: {}]   ;;  %s4964_s2 = inlined_call_operand.vmem [shape: f32[1,8], index: 2, kind: input, shape index: {}]   ;;  %s4965_s3 = inlined_call_operand.vmem [shape: bf16[9,8,8], index: 3, kind: input, shape index: {}]   ;;  %s4966_s4 = inlined_call_operand.vmem [shape: f32[2,16,16,8], index: 4, kind: output, shape index: {0}]   ;;  %s4967_s5 = inlined_call_operand.vmem [shape: f32[2,8,8], index: 5, kind: output, shape index: {1}]  }
   0x1 LB: > { %s2897_s1 = sadd.s32 4294967295, %s3547_s18   ;;  %p2901_p0 = scmp.ge.s32.totalorder %s3547_s18, 1  ;;  %s3547_s18 = sphi %s3580_s18, %s16_s18  }
   0x2   : > { %p190_p1 = scmp.lt.s32.totalorder %s3547_s18, 3 }
   0x4   : > { %p191_p2 = pnand %p2901_p0, %p190_p1 }
   0x6   : > { %194 = sbr.rel (%p191_p2) target bundleno = 559 (0x22f), region = 36 }
   0xb   : > { %v2907_v0 = vld [vmem:[%s4965_s3 + $0x4] sm:$0xf]  ;;  %vm705_vm0 = vcmask 1043456   ;;  %vm656_vm1 = vcmask 64512   ;;  %p222_p3 = scmp.lt.s32.totalorder %s2897_s1, 1  ;;  %v3549_v2 = vmov 0  }
   0xc   : > { %3522 = vmatprep.subr.msk.bf16.mxu0 %vm705_vm0, %v2907_v0  ;;  %3523 = vmatprep.subr.msk.bf16.mxu1 %vm705_vm0, %v2907_v0  ;;  %v707_v1 = vsel %vm705_vm0, %v2907_v0, 0  ;;  %v3595_v3 = vrot.slane %v3549_v2, 1  ;;  %v464_v4 = vld [vmem:[%s4965_s3] sm:$0xf]  ;;  %v2939_v5 = vld [vmem:[%s4965_s3 + $0x8] sm:$0xf] }
   0xd   : > { %3215 = vmatpush3.bf16.msra.mxu0 %v707_v1  ;;  %3521 = vmatpush3.bf16.msra.mxu1 %v707_v1  ;;  %s5080_s1 = smov (!%p222_p3, %s2897_s1), 1  ;;  %vm429_vm2 = vcmask 1040384   ;;  %vm430_vm3 = vsmask.f32 256  ;;  %v3627_v20 = vsel %vm705_vm0, %v464_v4, 0  ;;  %v3633_v28 = vsel %vm705_vm0, %v2939_v5, 0 }
   0xe   : > { %4971 = vst [vmem:[#allocation2_spill] sm:$0xff] %v3595_v3  ;;  %3216 = vmatprep.mubr.msk.bf16.mxu0 %vm656_vm1, %v3595_v3  ;;  %3524 = vmatprep.subr.msk.bf16.mxu1 %vm705_vm0, %v464_v4  ;;  %s3059_s24 = sshll.u32 %s5080_s1, 8  ;;  %vm465_vm4 = vsmask.f32 7424  ;;  %vm3639_vm5 = vmand %vm429_vm2, %vm430_vm3  ;;  %vm1097_vm6 = vcmask 1046528   ;;  %s2906_s2 = sshll.u32 %s5080_s1, 3 }
   0xf   : > { %3525 = vmatprep.subr.msk.bf16.mxu0 %vm705_vm0, %v2939_v5  ;;  %s3615_s27 = scalar_lea.vmem %s4962_s0, %s3059_s24  ;;  %s4698_s17 = scalar_lea.vmem %s4966_s4, %s3059_s24  ;;  %vm2808_vm7 = vcmask 1041408  }
  0x10   : > { %v237_v6 = vld [vmem:[%s3615_s27] sm:$0xff]  ;;  %v238_v7 = vld [vmem:[%s3615_s27 + $0x8] sm:$0xff]  ;;  %v251_v8 = vld [vmem:[%s3615_s27 + $0x70] sm:$0xff]  ;;  %s235_s21 = scalar_lea.vmem %s4967_s5, %s2906_s2 }
  0x11   : > { %v269_v9 = vpack.c.bf16 %v238_v7, %v237_v6  ;;  %v252_v10 = vld [vmem:[%s3615_s27 + $0x78] sm:$0xff]  ;;  %v253_v11 = vld [vmem:[%s3615_s27 + $0x80] sm:$0xff]  ;;  %v254_v12 = vld [vmem:[%s3615_s27 + $0x88] sm:$0xff] }
  0x12   : > { %v276_v13 = vpack.c.bf16 %v252_v10, %v251_v8  ;;  %v277_v14 = vpack.c.bf16 %v254_v12, %v253_v11  ;;  %v239_v15 = vld [vmem:[%s3615_s27 + $0x10] sm:$0xff]  ;;  %v240_v16 = vld [vmem:[%s3615_s27 + $0x18] sm:$0xff]  ;;  %v241_v17 = vld [vmem:[%s3615_s27 + $0x20] sm:$0xff] }
  0x13   : > { %v286_v18 = vshrl.u32 %v269_v9, 16  ;;  %v289_v19 = vshll.u32 %v269_v9, 16  ;;  %v270_v21 = vpack.c.bf16 %v240_v16, %v239_v15  ;;  %v242_v22 = vld [vmem:[%s3615_s27 + $0x28] sm:$0xff]  ;;  %v255_v23 = vld [vmem:[%s3615_s27 + $0x90] sm:$0xff]  ;;  %v256_v24 = vld [vmem:[%s3615_s27 + $0x98] sm:$0xff] }
  0x14   : > { %v335_v25 = vshrl.u32 %v276_v13, 16  ;;  %v338_v26 = vshll.u32 %v276_v13, 16  ;;  %v342_v27 = vshrl.u32 %v277_v14, 16  ;;  %v257_v29 = vld [vmem:[%s3615_s27 + $0xa0] sm:$0xff]  ;;  %v258_v30 = vld [vmem:[%s3615_s27 + $0xa8] sm:$0xff]  ;;  %v345_v32 = vshll.u32 %v277_v14, 16 }
  0x15   : > { %v288_v31 = vrot.slane %v286_v18, 7  ;;  %v293_v33 = vshrl.u32 %v270_v21, 16  ;;  %v271_v34 = vpack.c.bf16 %v242_v22, %v241_v17  ;;  %v296_v38 = vshll.u32 %v270_v21, 16  ;;  %v3701_v18 = vld [vmem:[%s4965_s3 + $0xc] sm:$0xf] }
  0x16   : > { %v337_v36 = vrot.slane %v335_v25, 7  ;;  %v344_v37 = vrot.slane %v342_v27, 7  ;;  %v3643_v39 = vpack.c.bf16 %v256_v24, %v255_v23  ;;  %v3649_v43 = vpack.c.bf16 %v258_v30, %v257_v29  ;;  %v243_v25 = vld [vmem:[%s3615_s27 + $0x30] sm:$0xff]  ;;  %v245_v27 = vld [vmem:[%s3615_s27 + $0x40] sm:$0xff] }
  0x17   : > { %v291_v40 = vor.u32 %v289_v19, %v288_v31  ;;  %v3647_v41 = vsel %vm3639_vm5, %v288_v31, 0  ;;  %v295_v42 = vrot.slane %v293_v33, 7  ;;  %v300_v47 = vshrl.u32 %v271_v34, 16  ;;  %v3706_v19 = vld [vmem:[%s4965_s3 + $0x10] sm:$0xf]  ;;  %v246_v33 = vld [vmem:[%s3615_s27 + $0x48] sm:$0xff] }
  0x18   : > { %v482_v44 = vshll.u32 %v3647_v41, 16  ;;  %v340_v45 = vor.u32 %v338_v26, %v337_v36  ;;  %v3654_v46 = vsel %vm3639_vm5, %v337_v36, 0  ;;  %v347_v50 = vor.u32 %v345_v32, %v344_v37  ;;  %v244_v26 = vld [vmem:[%s3615_s27 + $0x38] sm:$0xff] }
  0x19   : > { %v3658_v48 = vsel %vm3639_vm5, 0, %v291_v40  ;;  %v566_v49 = vshll.u32 %v3654_v46, 16  ;;  %v3663_v51 = vsel %vm3639_vm5, %v344_v37, 0  ;;  %v298_v1 = vor.u32 %v296_v38, %v295_v42  ;;  %v260_v36 = vld [vmem:[%s3615_s27 + $0xb8] sm:$0xff] }
  0x1a   : > { %v475_v52 = vshrl.u32 %v3658_v48, 16  ;;  %v477_v53 = vshll.u32 %v3658_v48, 16  ;;  %v484_v54 = vrot.slane %v482_v44, 1  ;;  %v3669_v55 = vsel %vm3639_vm5, 0, %v340_v45 }
  0x1b   : > { %v559_v56 = vshrl.u32 %v3669_v55, 16  ;;  %v561_v57 = vshll.u32 %v3669_v55, 16  ;;  %v568_v58 = vrot.slane %v566_v49, 1  ;;  %v3675_v59 = vsel %vm3639_vm5, 0, %v347_v50 }
  0x1c   : > { %v479_v60 = vrot.slane %v477_v53, 1  ;;  %v571_v61 = vshrl.u32 %v3675_v59, 16  ;;  %v573_v62 = vshll.u32 %v3675_v59, 16  ;;  %v578_v63 = vshll.u32 %v3663_v51, 16 }
  0x1d   : > { %v563_v0 = vrot.slane %v561_v57, 1  ;;  %v3682_v4 = vsel %vm3639_vm5, %v295_v42, 0  ;;  %v302_v5 = vrot.slane %v300_v47, 7  ;;  %v3687_v11 = vsel %vm3639_vm5, 0, %v298_v1 }
  0x1e   : > { %v480_v6 = vor.u32 %v479_v60, %v475_v52  ;;  %v575_v7 = vrot.slane %v573_v62, 1  ;;  %v580_v8 = vrot.slane %v578_v63, 1  ;;  %v494_v9 = vshll.u32 %v3682_v4, 16 }
  0x1f   : > { %v564_v10 = vor.u32 %v563_v0, %v559_v56  ;;  %v303_v12 = vshll.u32 %v271_v34, 16  ;;  %v3691_v13 = vsel %vm3639_vm5, %v302_v5, 0  ;;  %v487_v16 = vshrl.u32 %v3687_v11, 16  ;;  %v259_v34 = vld [vmem:[%s3615_s27 + $0xb0] sm:$0xff] }
  0x20   : > { %v3694_v14 = vsel %vm465_vm4, %v480_v6, %v484_v54  ;;  %v576_v15 = vor.u32 %v575_v7, %v571_v61  ;;  %v489_v17 = vshll.u32 %v3687_v11, 16  ;;  %v496_v22 = vrot.slane %v494_v9, 1  ;;  %v262_v9 = vld [vmem:[%s3615_s27 + $0xc8] sm:$0xff] }
  0x21   : > { %3217 = vmatmul.mubr.msk.bf16.vlgmr.msra.gmra.mxu0 %vm656_vm1, %v3694_v14  ;;  %v3711_v21 = vsel %vm465_vm4, %v564_v10, %v568_v58  ;;  %v305_v23 = vor.u32 %v303_v12, %v302_v5  ;;  %v506_v24 = vshll.u32 %v3691_v13, 16  ;;  %v349_v31 = vshrl.u32 %v3643_v39, 16 }
  0x22   : > { %3232 = vmatprep.mubr.msk.bf16.mxu1 %vm656_vm1, %v3711_v21  ;;  %v3720_v29 = vsel %vm465_vm4, %v576_v15, %v580_v8  ;;  %3283 = vmatpush3.bf16.msra.mxu0 %v3633_v28  ;;  %v491_v30 = vrot.slane %v489_v17, 1  ;;  %v352_v32 = vshll.u32 %v3643_v39, 16  ;;  %v356_v40 = vshrl.u32 %v3649_v43, 16  ;;  %v261_v8 = vld [vmem:[%s3615_s27 + $0xc0] sm:$0xff] }
  0x23   : > { %3233 = vmatmul.mubr.msk.bf16.vlgmr.msra.gmra.mxu1 %vm656_vm1, %v3720_v29  ;;  %v3732_v37 = vsel %vm3639_vm5, 0, %v305_v23  ;;  %v508_v38 = vrot.slane %v506_v24, 1  ;;  %v359_v28 = vshll.u32 %v3649_v43, 16  ;;  %3527 = vmatprep.subr.msk.bf16.mxu0 %vm705_vm0, %v3706_v19  ;;  %v351_v45 = vrot.slane %v349_v31, 7 }
  0x24   : > { %3249 = vmatpush3.bf16.msra.mxu1 %v3627_v20  ;;  %v492_v39 = vor.u32 %v491_v30, %v487_v16  ;;  %v499_v42 = vshrl.u32 %v3732_v37, 16  ;;  %v501_v44 = vshll.u32 %v3732_v37, 16  ;;  %v358_v47 = vrot.slane %v356_v40, 7 }
  0x25   : > { %v272_v49 = vpack.c.bf16 %v244_v26, %v243_v25  ;;  %v273_v50 = vpack.c.bf16 %v246_v33, %v245_v27  ;;  %v280_v52 = vpack.c.bf16 %v260_v36, %v259_v34  ;;  %3526 = vmatprep.subr.msk.bf16.mxu1 %vm705_vm0, %v3701_v18  ;;  %v354_v54 = vor.u32 %v352_v32, %v351_v45 }
  0x26   : > { %v3744_v43 = vsel %vm465_vm4, %v492_v39, %v496_v22  ;;  %v503_v53 = vrot.slane %v501_v44, 1  ;;  %v3748_v20 = vsel %vm3639_vm5, %v351_v45, 0  ;;  %v361_v57 = vor.u32 %v359_v28, %v358_v47 }
  0x27   : > { %3220 = vmatprep.mubr.msk.bf16.mxu0 %vm656_vm1, %v3744_v43  ;;  %v590_v56 = vshll.u32 %v3748_v20, 16  ;;  %v3755_v58 = vsel %vm3639_vm5, %v358_v47, 0  ;;  %v307_v60 = vshrl.u32 %v272_v49, 16  ;;  %v3759_v62 = vsel %vm3639_vm5, 0, %v354_v54 }
  0x28   : > { %v504_v61 = vor.u32 %v503_v53, %v499_v42  ;;  %v602_v63 = vshll.u32 %v3755_v58, 16  ;;  %v310_v0 = vshll.u32 %v272_v49, 16  ;;  %v583_v1 = vshrl.u32 %v3759_v62, 16 }
  0x29   : > { %v585_v5 = vshll.u32 %v3759_v62, 16  ;;  %v592_v6 = vrot.slane %v590_v56, 1  ;;  %v3766_v7 = vsel %vm3639_vm5, 0, %v361_v57  ;;  %v309_v22 = vrot.slane %v307_v60, 7 }
  0x2a   : > { %v3771_v10 = vsel %vm465_vm4, %v504_v61, %v508_v38  ;;  %v595_v12 = vshrl.u32 %v3766_v7, 16  ;;  %v597_v15 = vshll.u32 %v3766_v7, 16  ;;  %v604_v16 = vrot.slane %v602_v63, 1 }
  0x2b   : > { %3221 = vmatmul.mubr.msk.bf16.gmra.mxu0 %vm656_vm1, %v3771_v10  ;;  %v587_v17 = vrot.slane %v585_v5, 1  ;;  %v314_v23 = vshrl.u32 %v273_v50, 16  ;;  %v317_v24 = vshll.u32 %v273_v50, 16  ;;  %v363_v26 = vshrl.u32 %v280_v52, 16  ;;  %v248_v5 = vld [vmem:[%s3615_s27 + $0x58] sm:$0xff] }
  0x2c   : > { %v599_v25 = vrot.slane %v597_v15, 1  ;;  %v366_v27 = vshll.u32 %v280_v52, 16  ;;  %v281_v30 = vpack.c.bf16 %v262_v9, %v261_v8  ;;  %v312_v32 = vor.u32 %v310_v0, %v309_v22 }
  0x2d   : > { %v588_v31 = vor.u32 %v587_v17, %v583_v1  ;;  %v3779_v33 = vsel %vm3639_vm5, %v309_v22, 0  ;;  %v316_v34 = vrot.slane %v314_v23, 7  ;;  %v365_v40 = vrot.slane %v363_v26, 7  ;;  %v247_v1 = vld [vmem:[%s3615_s27 + $0x50] sm:$0xff]  ;;  %v249_v23 = vld [vmem:[%s3615_s27 + $0x60] sm:$0xff] }
  0x2e   : > { %v600_v36 = vor.u32 %v599_v25, %v595_v12  ;;  %v518_v38 = vshll.u32 %v3779_v33, 16  ;;  %v370_v28 = vshrl.u32 %v281_v30, 16  ;;  %v3787_v42 = vsel %vm3639_vm5, 0, %v312_v32 }
  0x2f   : > { %v3783_v39 = vsel %vm465_vm4, %v588_v31, %v592_v6  ;;  %v319_v44 = vor.u32 %v317_v24, %v316_v34  ;;  %v3791_v45 = vsel %vm3639_vm5, %v316_v34, 0  ;;  %v511_v49 = vshrl.u32 %v3787_v42, 16  ;;  %v250_v24 = vld [vmem:[%s3615_s27 + $0x68] sm:$0xff] }
  0x30   : > { %3236 = vmatprep.mubr.msk.bf16.mxu1 %vm656_vm1, %v3783_v39  ;;  %v3796_v47 = vsel %vm465_vm4, %v600_v36, %v604_v16  ;;  %v513_v50 = vshll.u32 %v3787_v42, 16  ;;  %v520_v52 = vrot.slane %v518_v38, 1  ;;  %v530_v54 = vshll.u32 %v3791_v45, 16  ;;  %v263_v38 = vld [vmem:[%s3615_s27 + $0xd0] sm:$0xff] }
  0x31   : > { %3237 = vmatmul.mubr.msk.bf16.gmra.mxu1 %vm656_vm1, %v3796_v47  ;;  %v3804_v53 = vsel %vm3639_vm5, 0, %v319_v44  ;;  %v368_v56 = vor.u32 %v366_v27, %v365_v40  ;;  %v3809_v57 = vsel %vm3639_vm5, %v365_v40, 0  ;;  %v372_v9 = vrot.slane %v370_v28, 7 }
  0x32   : > { %v515_v60 = vrot.slane %v513_v50, 1  ;;  %v523_v61 = vshrl.u32 %v3804_v53, 16  ;;  %v525_v63 = vshll.u32 %v3804_v53, 16  ;;  %v614_v0 = vshll.u32 %v3809_v57, 16  ;;  %v264_v50 = vld [vmem:[%s3615_s27 + $0xd8] sm:$0xff] }
  0x33   : > { %v532_v6 = vrot.slane %v530_v54, 1  ;;  %v3818_v8 = vsel %vm3639_vm5, 0, %v368_v56  ;;  %v373_v12 = vshll.u32 %v281_v30, 16  ;;  %v3826_v27 = vsel %vm3639_vm5, %v372_v9, 0  ;;  %v265_v54 = vld [vmem:[%s3615_s27 + $0xe0] sm:$0xff]  ;;  %v266_v56 = vld [vmem:[%s3615_s27 + $0xe8] sm:$0xff] }
  0x34   : > { %v516_v15 = vor.u32 %v515_v60, %v511_v49  ;;  %v527_v16 = vrot.slane %v525_v63, 1  ;;  %v607_v17 = vshrl.u32 %v3818_v8, 16  ;;  %v609_v22 = vshll.u32 %v3818_v8, 16 }
  0x35   : > { %v616_v25 = vrot.slane %v614_v0, 1  ;;  %v375_v26 = vor.u32 %v373_v12, %v372_v9  ;;  %v274_v31 = vpack.c.bf16 %v248_v5, %v247_v1  ;;  %v626_v36 = vshll.u32 %v3826_v27, 16 }
  0x36   : > { %v3829_v30 = vsel %vm465_vm4, %v516_v15, %v520_v52  ;;  %v528_v32 = vor.u32 %v527_v16, %v523_v61  ;;  %v611_v34 = vrot.slane %v609_v22, 1  ;;  %v275_v49 = vpack.c.bf16 %v250_v24, %v249_v23 }
  0x37   : > { %3224 = vmatprep.mubr.msk.bf16.mxu0 %vm656_vm1, %v3829_v30  ;;  %v3837_v40 = vsel %vm3639_vm5, 0, %v375_v26  ;;  %v321_v28 = vshrl.u32 %v274_v31, 16  ;;  %v324_v44 = vshll.u32 %v274_v31, 16  ;;  %v628_v0 = vrot.slane %v626_v36, 1 }
  0x38   : > { %v3843_v52 = vsel %vm465_vm4, %v528_v32, %v532_v6  ;;  %v612_v60 = vor.u32 %v611_v34, %v607_v17  ;;  %v619_v61 = vshrl.u32 %v3837_v40, 16  ;;  %v621_v63 = vshll.u32 %v3837_v40, 16 }
  0x39   : > { %3225 = vmatmul.mubr.msk.bf16.gmra.mxu0 %vm656_vm1, %v3843_v52  ;;  %v323_v1 = vrot.slane %v321_v28, 7  ;;  %v328_v5 = vshrl.u32 %v275_v49, 16  ;;  %v331_v9 = vshll.u32 %v275_v49, 16  ;;  %v282_v16 = vpack.c.bf16 %v264_v50, %v263_v38 }
  0x3a   : > { %v3850_v12 = vsel %vm465_vm4, %v612_v60, %v616_v25  ;;  %v623_v15 = vrot.slane %v621_v63, 1  ;;  %v283_v22 = vpack.c.bf16 %v266_v56, %v265_v54 }
  0x3b   : > { %3240 = vmatprep.mubr.msk.bf16.mxu1 %vm656_vm1, %v3850_v12  ;;  %v326_v6 = vor.u32 %v324_v44, %v323_v1  ;;  %v3856_v17 = vsel %vm3639_vm5, %v323_v1, 0  ;;  %v330_v23 = vrot.slane %v328_v5, 7  ;;  %v377_v31 = vshrl.u32 %v282_v16, 16 }
  0x3c   : > { %v624_v24 = vor.u32 %v623_v15, %v619_v61  ;;  %v542_v26 = vshll.u32 %v3856_v17, 16  ;;  %v380_v32 = vshll.u32 %v282_v16, 16  ;;  %v384_v38 = vshrl.u32 %v283_v22, 16 }
  0x3d   : > { %v3861_v25 = vsel %vm3639_vm5, 0, %v326_v6  ;;  %v333_v34 = vor.u32 %v331_v9, %v330_v23  ;;  %v3865_v36 = vsel %vm3639_vm5, %v330_v23, 0  ;;  %v379_v60 = vrot.slane %v377_v31, 7 }
  0x3e   : > { %v3868_v28 = vsel %vm465_vm4, %v624_v24, %v628_v0  ;;  %v535_v44 = vshrl.u32 %v3861_v25, 16  ;;  %v537_v49 = vshll.u32 %v3861_v25, 16  ;;  %v544_v50 = vrot.slane %v542_v26, 1 }
  0x3f   : > { %3241 = vmatmul.mubr.msk.bf16.gmra.mxu1 %vm656_vm1, %v3868_v28  ;;  %v3876_v54 = vsel %vm3639_vm5, 0, %v333_v34  ;;  %v554_v56 = vshll.u32 %v3865_v36, 16  ;;  %v386_v61 = vrot.slane %v384_v38, 7  ;;  %v387_v5 = vshll.u32 %v283_v22, 16 }
  0x40   : > { %v539_v63 = vrot.slane %v537_v49, 1  ;;  %v547_v0 = vshrl.u32 %v3876_v54, 16  ;;  %v549_v1 = vshll.u32 %v3876_v54, 16  ;;  %v382_v15 = vor.u32 %v380_v32, %v379_v60 }
  0x41   : > { %v556_v9 = vrot.slane %v554_v56, 1  ;;  %v3883_v16 = vsel %vm3639_vm5, %v379_v60, 0  ;;  %v3887_v6 = vsel %vm3639_vm5, %v386_v61, 0  ;;  %v389_v31 = vor.u32 %v387_v5, %v386_v61 }
  0x42   : > { %v540_v23 = vor.u32 %v539_v63, %v535_v44  ;;  %v551_v24 = vrot.slane %v549_v1, 1  ;;  %v638_v26 = vshll.u32 %v3883_v16, 16  ;;  %v3892_v34 = vsel %vm3639_vm5, 0, %v382_v15 }
  0x43   : > { %v650_v22 = vshll.u32 %v3887_v6, 16  ;;  %v631_v49 = vshrl.u32 %v3892_v34, 16  ;;  %v633_v56 = vshll.u32 %v3892_v34, 16  ;;  %v3904_v60 = vsel %vm3639_vm5, 0, %v389_v31 }
  0x44   : > { %v3896_v32 = vsel %vm465_vm4, %v540_v23, %v544_v50  ;;  %v552_v38 = vor.u32 %v551_v24, %v547_v0  ;;  %v640_v44 = vrot.slane %v638_v26, 1  ;;  %v643_v50 = vshrl.u32 %v3904_v60, 16 }
  0x45   : > { %3228 = vmatprep.mubr.msk.bf16.mxu0 %vm656_vm1, %v3896_v32  ;;  %v635_v63 = vrot.slane %v633_v56, 1  ;;  %v645_v0 = vshll.u32 %v3904_v60, 16  ;;  %v1101_v1 = vrot.slane %v3647_v41, 1  ;;  %v652_v23 = vrot.slane %v650_v22, 1  ;;  %v3941_v56 = vld [vmem:[%s4965_s3 + $0x18] sm:$0xf] }
  0x46   : > { %v3907_v61 = vsel %vm465_vm4, %v552_v38, %v556_v9  ;;  %v1100_v24 = vrot.slane %v3658_v48, 1  ;;  %v1103_v9 = vrot.slane %v3687_v11, 1  ;;  %v1104_v26 = vrot.slane %v3682_v4, 1 }
  0x47   : > { %3229 = vmatmul.mubr.msk.bf16.gmra.mxu0 %vm656_vm1, %v3907_v61  ;;  %v636_v5 = vor.u32 %v635_v63, %v631_v49  ;;  %v647_v15 = vrot.slane %v645_v0, 1  ;;  %v1609_v49 = vsel %vm705_vm0, %v3706_v19, 0  ;;  %v1107_v19 = vrot.slane %v3691_v13, 1 }
  0x48   : > { %3284 = vmatprep.mubr.msk.bf16.mxu0 %vm656_vm1, %v3595_v3  ;;  %v3928_v22 = vsel %vm1097_vm6, %v1100_v24, %v1101_v1  ;;  %v3935_v4 = vsel %vm1097_vm6, %v1103_v9, %v1104_v26  ;;  %v1109_v63 = vrot.slane %v3787_v42, 1  ;;  %v1397_v0 = vsel %vm705_vm0, %v3701_v18, 0 }
  0x49   : > { %v3920_v31 = vsel %vm465_vm4, %v636_v5, %v640_v44  ;;  %v648_v41 = vor.u32 %v647_v15, %v643_v50  ;;  %v1106_v44 = vrot.slane %v3732_v37, 1  ;;  %v1110_v50 = vrot.slane %v3779_v33, 1  ;;  %v3961_v5 = vld [vmem:[%s4965_s3 + $0x14] sm:$0xf] }
  0x4a   : > { %3244 = vmatprep.mubr.msk.bf16.mxu1 %vm656_vm1, %v3920_v31  ;;  %v1112_v18 = vrot.slane %v3804_v53, 1  ;;  %v1113_v33 = vrot.slane %v3791_v45, 1  ;;  %v1115_v15 = vrot.slane %v3861_v25, 1  ;;  %v1118_v45 = vrot.slane %v3876_v54, 1 }
  0x4b   : > { %v3925_v38 = vsel %vm465_vm4, %v648_v41, %v652_v23  ;;  %v3956_v1 = vsel %vm1097_vm6, %v1106_v44, %v1107_v19  ;;  %v3966_v13 = vsel %vm1097_vm6, %v1109_v63, %v1110_v50  ;;  %v1116_v23 = vrot.slane %v3856_v17, 1 }
  0x4c   : > { %3245 = vmatmul.mubr.msk.bf16.gmra.mxu1 %vm656_vm1, %v3925_v38  ;;  %v3981_v24 = vsel %vm1097_vm6, %v1112_v18, %v1113_v33  ;;  %v1119_v17 = vrot.slane %v3865_v36, 1  ;;  %v1121_v26 = vrot.slane %v3669_v55, 1  ;;  %v1122_v41 = vrot.slane %v3654_v46, 1 }
  0x4d   : > { %3250 = vmatprep.mubr.bf16.mxu1 %v3549_v2  ;;  %v3986_v9 = vsel %vm1097_vm6, %v1115_v15, %v1116_v23  ;;  %v1124_v46 = vrot.slane %v3675_v59, 1  ;;  %v1125_v36 = vrot.slane %v3663_v51, 1  ;;  %v1127_v19 = vrot.slane %v3759_v62, 1 }
  0x4e   : > { %v4004_v44 = vsel %vm1097_vm6, %v1121_v26, %v1122_v41  ;;  %v1128_v63 = vrot.slane %v3748_v20, 1  ;;  %v1130_v51 = vrot.slane %v3766_v7, 1  ;;  %v1131_v20 = vrot.slane %v3755_v58, 1 }
  0x4f   : > { %3285 = vmatmul.mubr.msk.bf16.vlgmr.msra.gmra.mxu0 %vm656_vm1, %v3928_v22  ;;  %v4017_v50 = vsel %vm1097_vm6, %v1124_v46, %v1125_v36  ;;  %v1133_v18 = vrot.slane %v3818_v8, 1  ;;  %v1134_v33 = vrot.slane %v3809_v57, 1  ;;  %v1136_v58 = vrot.slane %v3837_v40, 1  ;;  %v3040_v36 = vld [vmem:[%s4965_s3 + $0x20] sm:$0xf] }
  0x50   : > { %3351 = vmatpush3.bf16.msra.mxu0 %v1609_v49  ;;  %3288 = vmatprep.mubr.msk.bf16.mxu0 %vm656_vm1, %v3935_v4  ;;  %v3999_v49 = vsel %vm1097_vm6, %v1118_v45, %v1119_v17  ;;  %v4035_v15 = vsel %vm1097_vm6, %v1130_v51, %v1131_v20  ;;  %v1137_v57 = vrot.slane %v3826_v27, 1  ;;  %v1139_v45 = vrot.slane %v3892_v34, 1 }
  0x51   : > { %3529 = vmatprep.subr.msk.bf16.mxu0 %vm705_vm0, %v3941_v56  ;;  %v4040_v23 = vsel %vm1097_vm6, %v1133_v18, %v1134_v33  ;;  %v1140_v17 = vrot.slane %v3883_v16, 1  ;;  %v1142_v27 = vrot.slane %v3904_v60, 1  ;;  %v1143_v16 = vrot.slane %v3887_v6, 1 }
  0x52   : > { %v4053_v26 = vsel %vm1097_vm6, %v1136_v58, %v1137_v57  ;;  %v2013_v6 = vsel %vm705_vm0, %v3941_v56, 0  ;;  %v267_v56 = vld [vmem:[%s3615_s27 + $0xf0] sm:$0xff] }
  0x53   : > { %v4058_v41 = vsel %vm1097_vm6, %v1139_v45, %v1140_v17  ;;  %v4069_v46 = vsel %vm1097_vm6, %v1142_v27, %v1143_v16 }
  0x54   : > { %3251 = vmatmul.mubr.msk.bf16.vlgmr.msra.gmra.mxu1 %vm656_vm1, %v3658_v48 }
  0x55   : > { %3317 = vmatpush3.bf16.msra.mxu1 %v1397_v0  ;;  %3254 = vmatprep.mubr.msk.bf16.mxu1 %vm656_vm1, %v3687_v11  ;;  %v4022_v0 = vsel %vm1097_vm6, %v1127_v19, %v1128_v63 }
  0x56   : > { %3528 = vmatprep.subr.msk.bf16.mxu1 %vm705_vm0, %v3961_v5 }
  0x57   : > { %3289 = vmatmul.mubr.msk.bf16.gmra.mxu0 %vm656_vm1, %v3956_v1 }
  0x58   : > { %3292 = vmatprep.mubr.msk.bf16.mxu0 %vm656_vm1, %v3966_v13 }
  0x5c   : > { %3255 = vmatmul.mubr.msk.bf16.gmra.mxu1 %vm656_vm1, %v3732_v37 }
  0x5d   : > { %3258 = vmatprep.mubr.msk.bf16.mxu1 %vm656_vm1, %v3787_v42 }
  0x5f   : > { %3293 = vmatmul.mubr.msk.bf16.gmra.mxu0 %vm656_vm1, %v3981_v24 }
  0x60   : > { %3296 = vmatprep.mubr.msk.bf16.mxu0 %vm656_vm1, %v3986_v9 }
  0x64   : > { %3259 = vmatmul.mubr.msk.bf16.gmra.mxu1 %vm656_vm1, %v3804_v53 }
  0x65   : > { %3262 = vmatprep.mubr.msk.bf16.mxu1 %vm656_vm1, %v3861_v25 }
  0x67   : > { %3297 = vmatmul.mubr.msk.bf16.gmra.mxu0 %vm656_vm1, %v3999_v49 }
  0x68   : > { %3300 = vmatprep.mubr.msk.bf16.mxu0 %vm656_vm1, %v4004_v44 }
  0x6c   : > { %3263 = vmatmul.mubr.msk.bf16.gmra.mxu1 %vm656_vm1, %v3876_v54 }
  0x6d   : > { %3266 = vmatprep.mubr.msk.bf16.mxu1 %vm656_vm1, %v3669_v55 }
  0x6f   : > { %3301 = vmatmul.mubr.msk.bf16.gmra.mxu0 %vm656_vm1, %v4017_v50 }
  0x70   : > { %3304 = vmatprep.mubr.msk.bf16.mxu0 %vm656_vm1, %v4022_v0 }
  0x74   : > { %3267 = vmatmul.mubr.msk.bf16.gmra.mxu1 %vm656_vm1, %v3675_v59 }
  0x75   : > { %3270 = vmatprep.mubr.msk.bf16.mxu1 %vm656_vm1, %v3759_v62 }
  0x77   : > { %3305 = vmatmul.mubr.msk.bf16.gmra.mxu0 %vm656_vm1, %v4035_v15 }
  0x78   : > { %3308 = vmatprep.mubr.msk.bf16.mxu0 %vm656_vm1, %v4040_v23 }
  0x7c   : > { %3271 = vmatmul.mubr.msk.bf16.gmra.mxu1 %vm656_vm1, %v3766_v7 }
  0x7d   : > { %3274 = vmatprep.mubr.msk.bf16.mxu1 %vm656_vm1, %v3818_v8 }
  0x7f   : > { %3309 = vmatmul.mubr.msk.bf16.gmra.mxu0 %vm656_vm1, %v4053_v26 }
  0x80   : > { %3312 = vmatprep.mubr.msk.bf16.mxu0 %vm656_vm1, %v4058_v41 }
  0x84   : > { %3275 = vmatmul.mubr.msk.bf16.gmra.mxu1 %vm656_vm1, %v3837_v40 }
  0x85   : > { %3278 = vmatprep.mubr.msk.bf16.mxu1 %vm656_vm1, %v3892_v34 }
  0x87   : > { %3313 = vmatmul.mubr.msk.bf16.gmra.mxu0 %vm656_vm1, %v4069_v46 }
  0x88   : > { %3352 = vmatprep.mubr.msk.bf16.mxu0 %vm656_vm1, %v3694_v14  ;;  %v1815_v14 = vsel %vm705_vm0, %v3961_v5, 0  ;;  %v268_v5 = vld [vmem:[%s3615_s27 + $0xf8] sm:$0xff] }
  0x89   : > { %v284_v19 = vpack.c.bf16 %v268_v5, %v267_v56 }
  0x8b   : > { %v391_v63 = vshrl.u32 %v284_v19, 16  ;;  %v394_v20 = vshll.u32 %v284_v19, 16 }
  0x8c   : > { %3279 = vmatmul.mubr.msk.bf16.gmra.mxu1 %vm656_vm1, %v3904_v60 }
  0x8d   : > { %3318 = vmatprep.mubr.msk.bf16.mxu1 %vm656_vm1, %v3658_v48  ;;  %v3023_v48 = vld [vmem:[%s4965_s3 + $0x1c] sm:$0xf]  ;;  %v393_v51 = vrot.slane %v391_v63, 7 }
  0x8e   : > { %v2211_v56 = vsel %vm705_vm0, %v3023_v48, 0 }
  0x8f   : > { %3353 = vmatmul.mubr.msk.bf16.vlgmr.msra.gmra.mxu0 %vm656_vm1, %v3744_v43  ;;  %v396_v18 = vor.u32 %v394_v20, %v393_v51  ;;  %v4148_v57 = vsel %vm3639_vm5, %v393_v51, 0 }
  0x90   : > { %3419 = vmatpush3.bf16.msra.mxu0 %v2013_v6  ;;  %3356 = vmatprep.mubr.msk.bf16.mxu0 %vm656_vm1, %v3771_v10  ;;  %v1599_v27 = vshll.u32 %v4148_v57, 16 }
  0x91   : > { %3531 = vmatprep.subr.msk.bf16.mxu0 %vm705_vm0, %v3040_v36  ;;  %v4137_v33 = vsel %vm3639_vm5, 0, %v396_v18 }
  0x92   : > { %v1594_v58 = vshll.u32 %v4137_v33, 16  ;;  %v1592_v45 = vshrl.u32 %v4137_v33, 16  ;;  %v1601_v16 = vrot.slane %v1599_v27, 1 }
  0x94   : > { %3319 = vmatmul.mubr.msk.bf16.vlgmr.msra.gmra.mxu1 %vm656_vm1, %v3687_v11  ;;  %v1596_v17 = vrot.slane %v1594_v58, 1 }
  0x95   : > { %3385 = vmatpush3.bf16.msra.mxu1 %v1815_v14  ;;  %3322 = vmatprep.mubr.msk.bf16.mxu1 %vm656_vm1, %v3732_v37  ;;  %v2409_v14 = vsel %vm705_vm0, %v3040_v36, 0 }
  0x96   : > { %3530 = vmatprep.subr.msk.bf16.mxu1 %vm705_vm0, %v3023_v48  ;;  %v1597_v35 = vor.u32 %v1596_v17, %v1592_v45  ;;  %v1807_v45 = vrot.slane %v4148_v57, 1 }
  0x97   : > { %3357 = vmatmul.mubr.msk.bf16.gmra.mxu0 %vm656_vm1, %v3829_v30 }
  0x98   : > { %3360 = vmatprep.mubr.msk.bf16.mxu0 %vm656_vm1, %v3843_v52  ;;  %v4161_v6 = vsel %vm465_vm4, %v1597_v35, %v1601_v16 }
  0x99   : > { %4974 = vst [vmem:[#allocation3_spill] sm:$0xff] %v4161_v6 }
  0x9c   : > { %3323 = vmatmul.mubr.msk.bf16.gmra.mxu1 %vm656_vm1, %v3787_v42 }
  0x9d   : > { %3326 = vmatprep.mubr.msk.bf16.mxu1 %vm656_vm1, %v3804_v53 }
  0x9f   : > { %3361 = vmatmul.mubr.msk.bf16.gmra.mxu0 %vm656_vm1, %v3896_v32 }
  0xa0   : > { %3364 = vmatprep.mubr.msk.bf16.mxu0 %vm656_vm1, %v3907_v61 }
  0xa4   : > { %3327 = vmatmul.mubr.msk.bf16.gmra.mxu1 %vm656_vm1, %v3861_v25 }
  0xa5   : > { %3330 = vmatprep.mubr.msk.bf16.mxu1 %vm656_vm1, %v3876_v54 }
  0xa7   : > { %3365 = vmatmul.mubr.msk.bf16.gmra.mxu0 %vm656_vm1, %v3711_v21 }
  0xa8   : > { %3368 = vmatprep.mubr.msk.bf16.mxu0 %vm656_vm1, %v3720_v29 }
  0xac   : > { %3331 = vmatmul.mubr.msk.bf16.gmra.mxu1 %vm656_vm1, %v3669_v55 }
  0xad   : > { %3334 = vmatprep.mubr.msk.bf16.mxu1 %vm656_vm1, %v3675_v59 }
  0xaf   : > { %3369 = vmatmul.mubr.msk.bf16.gmra.mxu0 %vm656_vm1, %v3783_v39 }
  0xb0   : > { %3372 = vmatprep.mubr.msk.bf16.mxu0 %vm656_vm1, %v3796_v47 }
  0xb4   : > { %3335 = vmatmul.mubr.msk.bf16.gmra.mxu1 %vm656_vm1, %v3759_v62 }
  0xb5   : > { %3338 = vmatprep.mubr.msk.bf16.mxu1 %vm656_vm1, %v3766_v7 }
  0xb7   : > { %3373 = vmatmul.mubr.msk.bf16.gmra.mxu0 %vm656_vm1, %v3850_v12 }
  0xb8   : > { %3376 = vmatprep.mubr.msk.bf16.mxu0 %vm656_vm1, %v3868_v28 }
  0xbc   : > { %3339 = vmatmul.mubr.msk.bf16.gmra.mxu1 %vm656_vm1, %v3818_v8 }
  0xbd   : > { %3342 = vmatprep.mubr.msk.bf16.mxu1 %vm656_vm1, %v3837_v40 }
  0xbf   : > { %3377 = vmatmul.mubr.msk.bf16.gmra.mxu0 %vm656_vm1, %v3920_v31 }
  0xc0   : > { %3380 = vmatprep.mubr.msk.bf16.mxu0 %vm656_vm1, %v3925_v38 }
  0xc4   : > { %3343 = vmatmul.mubr.msk.bf16.gmra.mxu1 %vm656_vm1, %v3892_v34 }
  0xc5   : > { %3346 = vmatprep.mubr.msk.bf16.mxu1 %vm656_vm1, %v3904_v60 }
  0xc7   : > { %3381 = vmatmul.mubr.msk.bf16.gmra.mxu0 %vm656_vm1, %v4161_v6 }
  0xc8   : > { %3420 = vmatprep.mubr.msk.bf16.mxu0 %vm656_vm1, %v3687_v11 }
  0xcc   : > { %3347 = vmatmul.mubr.msk.bf16.gmra.mxu1 %vm656_vm1, %v4137_v33 }
  0xcd   : > { %3386 = vmatprep.mubr.msk.bf16.mxu1 %vm656_vm1, %v3928_v22 }
  0xcf   : > { %3421 = vmatmul.mubr.msk.bf16.vlgmr.msra.gmra.mxu0 %vm656_vm1, %v3732_v37 }
  0xd0   : > { %3487 = vmatpush3.bf16.msra.mxu0 %v2409_v14  ;;  %3424 = vmatprep.mubr.msk.bf16.mxu0 %vm656_vm1, %v3787_v42 }
  0xd4   : > { %3387 = vmatmul.mubr.msk.bf16.vlgmr.msra.gmra.mxu1 %vm656_vm1, %v3935_v4 }
  0xd5   : > { %3453 = vmatpush3.bf16.msra.mxu1 %v2211_v56  ;;  %3390 = vmatprep.mubr.msk.bf16.mxu1 %vm656_vm1, %v3956_v1 }
  0xd7   : > { %3425 = vmatmul.mubr.msk.bf16.gmra.mxu0 %vm656_vm1, %v3804_v53 }
  0xd8   : > { %3428 = vmatprep.mubr.msk.bf16.mxu0 %vm656_vm1, %v3861_v25 }
  0xdc   : > { %3391 = vmatmul.mubr.msk.bf16.gmra.mxu1 %vm656_vm1, %v3966_v13 }
  0xdd   : > { %3394 = vmatprep.mubr.msk.bf16.mxu1 %vm656_vm1, %v3981_v24 }
  0xdf   : > { %3429 = vmatmul.mubr.msk.bf16.gmra.mxu0 %vm656_vm1, %v3876_v54 }
  0xe0   : > { %3432 = vmatprep.mubr.msk.bf16.mxu0 %vm656_vm1, %v3669_v55 }
  0xe1   : > { %v4197_v11 = vpop.f32.mrf.mxu0 }
  0xe3   : > { %v4199_v37 = vpop.f32.mrf.mxu1  ;;  %v4201_v42 = vpop.f32.mrf.mxu0 }
  0xe4   : > { %3395 = vmatmul.mubr.msk.bf16.gmra.mxu1 %vm656_vm1, %v3986_v9 }
  0xe5   : > { %v4205_v53 = vpop.f32.mrf.mxu1  ;;  %v4207_v25 = vpop.f32.mrf.mxu0  ;;  %3398 = vmatprep.mubr.msk.bf16.mxu1 %vm656_vm1, %v3999_v49 }
  0xe7   : > { %3433 = vmatmul.mubr.msk.bf16.gmra.mxu0 %vm656_vm1, %v3675_v59  ;;  %v4213_v55 = vpop.f32.mrf.mxu0  ;;  %v4217_v54 = vpop.f32.mrf.mxu1 }
  0xe8   : > { %3436 = vmatprep.mubr.msk.bf16.mxu0 %vm656_vm1, %v3759_v62 }
  0xe9   : > { %v4223_v36 = vpop.f32.mrf.mxu1 }
  0xeb   : > { %v4219_v22 = vpop.f32.mrf.mxu0 }
  0xec   : > { %3399 = vmatmul.mubr.msk.bf16.gmra.mxu1 %vm656_vm1, %v4004_v44 }
  0xed   : > { %v4225_v48 = vpop.f32.mrf.mxu0  ;;  %3402 = vmatprep.mubr.msk.bf16.mxu1 %vm656_vm1, %v4017_v50 }
  0xef   : > { %3437 = vmatmul.mubr.msk.bf16.gmra.mxu0 %vm656_vm1, %v3766_v7  ;;  %v4235_v62 = vpop.f32.mrf.mxu0 }
  0xf0   : > { %3440 = vmatprep.mubr.msk.bf16.mxu0 %vm656_vm1, %v3818_v8 }
  0xf1   : > { %v4233_v59 = vpop.f32.mrf.mxu1  ;;  %v4241_v19 = vpop.f32.mrf.mxu0 }
  0xf3   : > { %v4237_v5 = vpop.f32.mrf.mxu1 }
  0xf4   : > { %3403 = vmatmul.mubr.msk.bf16.gmra.mxu1 %vm656_vm1, %v4022_v0 }
  0xf5   : > { %3406 = vmatprep.mubr.msk.bf16.mxu1 %vm656_vm1, %v4035_v15  ;;  %v4247_v7 = vpop.f32.mrf.mxu1 }
  0xf7   : > { %3441 = vmatmul.mubr.msk.bf16.gmra.mxu0 %vm656_vm1, %v3837_v40  ;;  %v4253_v63 = vpop.f32.mrf.mxu1 }
  0xf8   : > { %3444 = vmatprep.mubr.msk.bf16.mxu0 %vm656_vm1, %v3892_v34 }
  0xf9   : > { %v4251_v8 = vpop.f32.mrf.mxu0 }
  0xfb   : > { %v4255_v51 = vpop.f32.mrf.mxu0 }
  0xfc   : > { %3407 = vmatmul.mubr.msk.bf16.gmra.mxu1 %vm656_vm1, %v4040_v23 }
  0xfd   : > { %3410 = vmatprep.mubr.msk.bf16.mxu1 %vm656_vm1, %v4053_v26  ;;  %v4265_v20 = vpop.f32.mrf.mxu0 }
  0xff   : > { %3445 = vmatmul.mubr.msk.bf16.gmra.mxu0 %vm656_vm1, %v3904_v60  ;;  %v4263_v40 = vpop.f32.mrf.mxu1  ;;  %v4271_v18 = vpop.f32.mrf.mxu0  ;;  %v1806_v60 = vrot.slane %v4137_v33, 1 }
 0x100   : > { %3448 = vmatprep.mubr.msk.bf16.mxu0 %vm656_vm1, %v4137_v33 }
 0x101   : > { %v4269_v34 = vpop.f32.mrf.mxu1  ;;  %v4291_v16 = vsel %vm1097_vm6, %v1806_v60, %v1807_v45 }
 0x102   : > { %4975 = vst [vmem:[#allocation4_spill] sm:$0xff] %v4269_v34 }
 0x103   : > { %v4275_v58 = vpop.f32.mrf.mxu1 }
 0x104   : > { %3411 = vmatmul.mubr.msk.bf16.gmra.mxu1 %vm656_vm1, %v4058_v41  ;;  %4976 = vst [vmem:[#allocation5_spill] sm:$0xff] %v4275_v58 }
 0x105   : > { %3414 = vmatprep.mubr.msk.bf16.mxu1 %vm656_vm1, %v4069_v46  ;;  %v4286_v27 = vpop.f32.mrf.mxu1 }
 0x106   : > { %4977 = vst [vmem:[#allocation6_spill] sm:$0xff] %v4286_v27 }
 0x107   : > { %v4281_v17 = vpop.f32.mrf.mxu0  ;;  %3449 = vmatmul.mubr.bf16.gmra.mxu0 %v3549_v2 }
 0x108   : > { %3488 = vmatprep.mubr.msk.bf16.mxu0 %vm656_vm1, %v3935_v4 }
 0x109   : > { %v4288_v35 = vpop.f32.mrf.mxu0 }
 0x10b   : > { %v4293_v14 = vpop.f32.mrf.mxu0 }
 0x10c   : > { %v4295_v56 = vpop.f32.mrf.mxu1  ;;  %3415 = vmatmul.mubr.msk.bf16.gmra.mxu1 %vm656_vm1, %v4291_v16 }
 0x10d   : > { %4978 = vst [vmem:[#allocation7_spill] sm:$0xff] %v4295_v56  ;;  %v4299_v33 = vpop.f32.mrf.mxu0  ;;  %3454 = vmatprep.mubr.msk.bf16.mxu1 %vm656_vm1, %v3744_v43 }
 0x10e   : > { %v4303_v2 = vpop.f32.mrf.mxu1 }
 0x10f   : > { %4979 = vst [vmem:[#allocation8_spill] sm:$0xff] %v4303_v2  ;;  %v3286_v4 = vpop.f32.mrf.mxu0  ;;  %3489 = vmatmul.mubr.msk.bf16.vlgmr.msra.gmra.mxu0 %vm656_vm1, %v3956_v1 }
 0x110   : > { %3492 = vmatprep.mubr.msk.bf16.mxu0 %vm656_vm1, %v3966_v13  ;;  %v4309_v57 = vpop.f32.mrf.mxu1 }
 0x111   : > { %4980 = vst [vmem:[#allocation9_spill] sm:$0xff] %v4309_v57  ;;  %v1232_v60 = vpop.f32.mrf.mxu0 }
 0x112   : > { %v4311_v45 = vpop.f32.mrf.mxu1 }
 0x113   : > { %4981 = vst [vmem:[#allocation10_spill] sm:$0xff] %v4311_v45  ;;  %v3287_v56 = vpop.f32.mrf.mxu0 }
 0x114   : > { %v3252_v27 = vpop.f32.mrf.mxu1  ;;  %3455 = vmatmul.mubr.msk.bf16.vlgmr.msra.gmra.mxu1 %vm656_vm1, %v3771_v10 }
 0x115   : > { %v1235_v43 = vpop.f32.mrf.mxu0  ;;  %v948_v2 = vadd.f32 %v3252_v27, %v4197_v11  ;;  %3458 = vmatprep.mubr.msk.bf16.mxu1 %vm656_vm1, %v3829_v30 }
 0x116   : > { %v939_v1 = vpop.f32.mrf.mxu1 }
 0x117   : > { %v3290_v58 = vpop.f32.mrf.mxu0  ;;  %3493 = vmatmul.mubr.msk.bf16.gmra.mxu0 %vm656_vm1, %v3981_v24  ;;  %v940_v13 = vadd.f32 %v939_v1, %v4201_v42  ;;  %v4323_v45 = vadd.f32 %v3286_v4, %v948_v2 }
 0x118   : > { %3496 = vmatprep.mubr.msk.bf16.mxu0 %vm656_vm1, %v3986_v9  ;;  %v3253_v57 = vpop.f32.mrf.mxu1 }
 0x119   : > { %v1248_v10 = vpop.f32.mrf.mxu0  ;;  %v951_v34 = vadd.f32 %v3253_v57, %v4207_v25  ;;  %v4326_v11 = vadd.f32 %v1232_v60, %v940_v13 }
 0x11a   : > { %v942_v27 = vpop.f32.mrf.mxu1 }
 0x11b   : > { %v3291_v30 = vpop.f32.mrf.mxu0  ;;  %v943_v3 = vadd.f32 %v942_v27, %v4213_v55  ;;  %v4329_v6 = vadd.f32 %v3287_v56, %v951_v34 }
 0x11c   : > { %v3256_v24 = vpop.f32.mrf.mxu1  ;;  %3459 = vmatmul.mubr.msk.bf16.gmra.mxu1 %vm656_vm1, %v3843_v52 }
 0x11d   : > { %v1251_v42 = vpop.f32.mrf.mxu0  ;;  %v964_v9 = vadd.f32 %v3256_v24, %v4219_v22  ;;  %3462 = vmatprep.mubr.msk.bf16.mxu1 %vm656_vm1, %v3896_v32  ;;  %v4336_v2 = vadd.f32 %v1235_v43, %v943_v3 }
 0x11e   : > { %v955_v25 = vpop.f32.mrf.mxu1 }
 0x11f   : > { %v3294_v4 = vpop.f32.mrf.mxu0  ;;  %3497 = vmatmul.mubr.msk.bf16.gmra.mxu0 %vm656_vm1, %v3999_v49  ;;  %v956_v55 = vadd.f32 %v955_v25, %v4225_v48  ;;  %v4343_v34 = vadd.f32 %v3290_v58, %v964_v9 }
 0x120   : > { %3500 = vmatprep.mubr.msk.bf16.mxu0 %vm656_vm1, %v4004_v44  ;;  %v3257_v52 = vpop.f32.mrf.mxu1 }
 0x121   : > { %v1264_v56 = vpop.f32.mrf.mxu0  ;;  %v967_v22 = vadd.f32 %v3257_v52, %v4235_v62  ;;  %v4346_v57 = vadd.f32 %v1248_v10, %v956_v55 }
 0x122   : > { %v958_v3 = vpop.f32.mrf.mxu1 }
 0x123   : > { %v3295_v32 = vpop.f32.mrf.mxu0  ;;  %v959_v60 = vadd.f32 %v958_v3, %v4241_v19  ;;  %v4349_v43 = vadd.f32 %v3291_v30, %v967_v22 }
 0x124   : > { %v3260_v49 = vpop.f32.mrf.mxu1  ;;  %3463 = vmatmul.mubr.msk.bf16.gmra.mxu1 %vm656_vm1, %v3907_v61 }
 0x125   : > { %v1267_v48 = vpop.f32.mrf.mxu0  ;;  %v980_v44 = vadd.f32 %v3260_v49, %v4251_v8  ;;  %3466 = vmatprep.mubr.msk.bf16.mxu1 %vm656_vm1, %v3711_v21  ;;  %v4356_v58 = vadd.f32 %v1251_v42, %v959_v60 }
 0x126   : > { %v971_v62 = vpop.f32.mrf.mxu1 }
 0x127   : > { %v3298_v1 = vpop.f32.mrf.mxu0  ;;  %3501 = vmatmul.mubr.msk.bf16.gmra.mxu0 %vm656_vm1, %v4017_v50  ;;  %v972_v19 = vadd.f32 %v971_v62, %v4255_v51  ;;  %v4363_v13 = vadd.f32 %v3294_v4, %v980_v44 }
 0x128   : > { %3504 = vmatprep.mubr.msk.bf16.mxu0 %vm656_vm1, %v4022_v0  ;;  %v3261_v61 = vpop.f32.mrf.mxu1 }
 0x129   : > { %v1280_v10 = vpop.f32.mrf.mxu0  ;;  %v983_v8 = vadd.f32 %v3261_v61, %v4265_v20  ;;  %v4366_v27 = vadd.f32 %v1264_v56, %v972_v19 }
 0x12a   : > { %v974_v21 = vpop.f32.mrf.mxu1 }
 0x12b   : > { %v3299_v30 = vpop.f32.mrf.mxu0  ;;  %v975_v24 = vadd.f32 %v974_v21, %v4271_v18  ;;  %v4369_v42 = vadd.f32 %v3295_v32, %v983_v8 }
 0x12c   : > { %v3264_v50 = vpop.f32.mrf.mxu1  ;;  %3467 = vmatmul.mubr.msk.bf16.gmra.mxu1 %vm656_vm1, %v3720_v29 }
 0x12d   : > { %v1283_v51 = vpop.f32.mrf.mxu0  ;;  %v996_v0 = vadd.f32 %v3264_v50, %v4281_v17  ;;  %3470 = vmatprep.mubr.msk.bf16.mxu1 %vm656_vm1, %v3783_v39  ;;  %v4376_v9 = vadd.f32 %v1267_v48, %v975_v24 }
 0x12e   : > { %v987_v20 = vpop.f32.mrf.mxu1 }
 0x12f   : > { %v3302_v25 = vpop.f32.mrf.mxu0  ;;  %3505 = vmatmul.mubr.msk.bf16.gmra.mxu0 %vm656_vm1, %v4035_v15  ;;  %v988_v18 = vadd.f32 %v987_v20, %v4288_v35  ;;  %v4383_v4 = vadd.f32 %v3298_v1, %v996_v0  ;;  %v4982_v0 = vld [vmem:[#allocation3_spill] sm:$0xff] }
 0x130   : > { %3508 = vmatprep.mubr.msk.bf16.mxu0 %vm656_vm1, %v4040_v23  ;;  %v3265_v29 = vpop.f32.mrf.mxu1 }
 0x131   : > { %v1296_v55 = vpop.f32.mrf.mxu0  ;;  %v999_v17 = vadd.f32 %v3265_v29, %v4293_v14  ;;  %v4386_v52 = vadd.f32 %v1280_v10, %v988_v18  ;;  %v4983_v18 = vld [vmem:[#allocation2_spill] sm:$0xff] }
 0x132   : > { %v990_v39 = vpop.f32.mrf.mxu1 }
 0x133   : > { %v3303_v56 = vpop.f32.mrf.mxu0  ;;  %v991_v22 = vadd.f32 %v990_v39, %v4299_v33  ;;  %v4389_v3 = vadd.f32 %v3299_v30, %v999_v17 }
 0x134   : > { %v3268_v15 = vpop.f32.mrf.mxu1  ;;  %3471 = vmatmul.mubr.msk.bf16.gmra.mxu1 %vm656_vm1, %v3796_v47 }
 0x135   : > { %v1299_v35 = vpop.f32.mrf.mxu0  ;;  %v1012_v23 = vadd.f32 %v3268_v15, %v4199_v37  ;;  %3474 = vmatprep.mubr.msk.bf16.mxu1 %vm656_vm1, %v3850_v12  ;;  %v4396_v32 = vadd.f32 %v1283_v51, %v991_v22 }
 0x136   : > { %v1003_v14 = vpop.f32.mrf.mxu1 }
 0x137   : > { %v3306_v60 = vpop.f32.mrf.mxu0  ;;  %3509 = vmatmul.mubr.msk.bf16.gmra.mxu0 %vm656_vm1, %v4053_v26  ;;  %v1004_v33 = vadd.f32 %v1003_v14, %v4205_v53  ;;  %v4403_v49 = vadd.f32 %v3302_v25, %v1012_v23 }
 0x138   : > { %3512 = vmatprep.mubr.msk.bf16.mxu0 %vm656_vm1, %v4058_v41  ;;  %v3269_v47 = vpop.f32.mrf.mxu1 }
 0x139   : > { %v1312_v48 = vpop.f32.mrf.mxu0  ;;  %v1015_v37 = vadd.f32 %v3269_v47, %v4217_v54  ;;  %v4406_v44 = vadd.f32 %v1296_v55, %v1004_v33  ;;  %v4987_v47 = vld [vmem:[#allocation7_spill] sm:$0xff] }
 0x13a   : > { %v1006_v12 = vpop.f32.mrf.mxu1 }
 0x13b   : > { %v3307_v62 = vpop.f32.mrf.mxu0  ;;  %v1007_v1 = vadd.f32 %v1006_v12, %v4223_v36  ;;  %v4409_v19 = vadd.f32 %v3303_v56, %v1015_v37 }
 0x13c   : > { %v3272_v26 = vpop.f32.mrf.mxu1  ;;  %3475 = vmatmul.mubr.msk.bf16.gmra.mxu1 %vm656_vm1, %v3868_v28 }
 0x13d   : > { %v1315_v53 = vpop.f32.mrf.mxu0  ;;  %v1028_v41 = vadd.f32 %v3272_v26, %v4233_v59  ;;  %3478 = vmatprep.mubr.msk.bf16.mxu1 %vm656_vm1, %v3920_v31  ;;  %v4416_v61 = vadd.f32 %v1299_v35, %v1007_v1  ;;  %v4986_v35 = vld [vmem:[#allocation6_spill] sm:$0xff]  ;;  %v4988_v1 = vld [vmem:[#allocation8_spill] sm:$0xff] }
 0x13e   : > { %v1019_v54 = vpop.f32.mrf.mxu1 }
 0x13f   : > { %v3310_v10 = vpop.f32.mrf.mxu0  ;;  %3513 = vmatmul.mubr.msk.bf16.gmra.mxu0 %vm656_vm1, %v4069_v46  ;;  %v1020_v36 = vadd.f32 %v1019_v54, %v4237_v5  ;;  %v4423_v8 = vadd.f32 %v3306_v60, %v1028_v41 }
 0x140   : > { %3516 = vmatprep.mubr.msk.bf16.mxu0 %vm656_vm1, %v4291_v16  ;;  %v3273_v28 = vpop.f32.mrf.mxu1 }
 0x141   : > { %v1328_v21 = vpop.f32.mrf.mxu0  ;;  %v1031_v59 = vadd.f32 %v3273_v28, %v4247_v7  ;;  %v4426_v30 = vadd.f32 %v1312_v48, %v1020_v36 }
 0x142   : > { %v1022_v31 = vpop.f32.mrf.mxu1 }
 0x143   : > { %v3311_v24 = vpop.f32.mrf.mxu0  ;;  %v1023_v50 = vadd.f32 %v1022_v31, %v4253_v63  ;;  %v4429_v51 = vadd.f32 %v3307_v62, %v1031_v59  ;;  %v4984_v63 = vld [vmem:[#allocation4_spill] sm:$0xff]  ;;  %v4990_v31 = vld [vmem:[#allocation10_spill] sm:$0xff] }
 0x144   : > { %v3276_v46 = vpop.f32.mrf.mxu1  ;;  %3479 = vmatmul.mubr.msk.bf16.gmra.mxu1 %vm656_vm1, %v3925_v38  ;;  %v4985_v38 = vld [vmem:[#allocation5_spill] sm:$0xff] }
 0x145   : > { %v1331_v5 = vpop.f32.mrf.mxu0  ;;  %v1044_v16 = vadd.f32 %v3276_v46, %v4263_v40  ;;  %3482 = vmatprep.mubr.msk.bf16.mxu1 %vm656_vm1, %v4982_v0  ;;  %v4436_v20 = vadd.f32 %v1315_v53, %v1023_v50 }
 0x146   : > { %v1035_v7 = vpop.f32.mrf.mxu1 }
 0x147   : > { %v3314_v25 = vpop.f32.mrf.mxu0  ;;  %3517 = vmatmul.mubr.msk.bf16.gmra.mxu0 %vm656_vm1, %v4983_v18  ;;  %v1036_v29 = vadd.f32 %v1035_v7, %v4984_v63  ;;  %v4441_v55 = vadd.f32 %v3310_v10, %v1044_v16  ;;  %v4989_v10 = vld [vmem:[#allocation9_spill] sm:$0xff] }
 0x148   : > { %v3277_v17 = vpop.f32.mrf.mxu1 }
 0x149   : > { %v1344_v39 = vpop.f32.mrf.mxu0  ;;  %v1047_v56 = vadd.f32 %v3277_v17, %v4985_v38  ;;  %v4444_v22 = vadd.f32 %v1328_v21, %v1036_v29 }
 0x14a   : > { %v1038_v40 = vpop.f32.mrf.mxu1 }
 0x14b   : > { %v3315_v15 = vpop.f32.mrf.mxu0  ;;  %v1039_v23 = vadd.f32 %v1038_v40, %v4986_v35  ;;  %v4447_v14 = vadd.f32 %v3311_v24, %v1047_v56 }
 0x14c   : > { %v3280_v60 = vpop.f32.mrf.mxu1  ;;  %3483 = vmatmul.mubr.msk.bf16.gmra.mxu1 %vm656_vm1, %v4983_v18 }
 0x14d   : > { %v1347_v33 = vpop.f32.mrf.mxu0  ;;  %v1060_v48 = vadd.f32 %v3280_v60, %v4987_v47  ;;  %v4452_v37 = vadd.f32 %v1331_v5, %v1039_v23 }
 0x14e   : > { %v1051_v12 = vpop.f32.mrf.mxu1 }
 0x14f   : > { %v3354_v62 = vpop.f32.mrf.mxu0  ;;  %v1052_v26 = vadd.f32 %v1051_v12, %v4988_v1  ;;  %v4455_v53 = vadd.f32 %v3314_v25, %v1060_v48 }
 0x150   : > { %v3281_v41 = vpop.f32.mrf.mxu1 }
 0x151   : > { %v1645_v54 = vpop.f32.mrf.mxu0  ;;  %v1063_v36 = vadd.f32 %v3281_v41, %v4989_v10  ;;  %v4458_v28 = vadd.f32 %v1344_v39, %v1052_v26 }
 0x152   : > { %v1054_v21 = vpop.f32.mrf.mxu1 }
 0x153   : > { %v3355_v59 = vpop.f32.mrf.mxu0  ;;  %v1055_v24 = vadd.f32 %v1054_v21, %v4990_v31  ;;  %v4461_v50 = vadd.f32 %v3315_v15, %v1063_v36 }
 0x154   : > { %v3320_v46 = vpop.f32.mrf.mxu1 }
 0x155   : > { %v1648_v5 = vpop.f32.mrf.mxu0  ;;  %v1562_v16 = vadd.f32 %v3320_v46, %v4323_v45  ;;  %v4464_v0 = vadd.f32 %v1347_v33, %v1055_v24 }
 0x156   : > { %v1433_v7 = vpop.f32.mrf.mxu1 }
 0x157   : > { %v3358_v25 = vpop.f32.mrf.mxu0  ;;  %v1560_v18 = vadd.f32 %v1433_v7, %v4326_v11  ;;  %v4467_v63 = vadd.f32 %v3354_v62, %v1562_v16 }
 0x158   : > { %v3321_v29 = vpop.f32.mrf.mxu1 }
 0x159   : > { %v1661_v17 = vpop.f32.mrf.mxu0  ;;  %v1563_v39 = vadd.f32 %v3321_v29, %v4329_v6  ;;  %v4470_v38 = vadd.f32 %v1645_v54, %v1560_v18 }
 0x15a   : > { %v1436_v56 = vpop.f32.mrf.mxu1 }
 0x15b   : > { %v3359_v40 = vpop.f32.mrf.mxu0  ;;  %v1561_v15 = vadd.f32 %v1436_v56, %v4336_v2  ;;  %v4473_v35 = vadd.f32 %v3355_v59, %v1563_v39 }
 0x15c   : > { %v3324_v45 = vpop.f32.mrf.mxu1 }
 0x15d   : > { %v1664_v23 = vpop.f32.mrf.mxu0  ;;  %v1566_v60 = vadd.f32 %v3324_v45, %v4343_v34  ;;  %v4476_v33 = vadd.f32 %v1648_v5, %v1561_v15 }
 0x15e   : > { %v1449_v11 = vpop.f32.mrf.mxu1 }
 0x15f   : > { %v3362_v47 = vpop.f32.mrf.mxu0  ;;  %v1564_v48 = vadd.f32 %v1449_v11, %v4346_v57  ;;  %v4479_v12 = vadd.f32 %v3358_v25, %v1566_v60 }
 0x160   : > { %v3325_v6 = vpop.f32.mrf.mxu1 }
 0x161   : > { %v1677_v62 = vpop.f32.mrf.mxu0  ;;  %v1567_v1 = vadd.f32 %v3325_v6, %v4349_v43  ;;  %v4482_v26 = vadd.f32 %v1661_v17, %v1564_v48 }
 0x162   : > { %v1452_v2 = vpop.f32.mrf.mxu1 }
 0x163   : > { %v3363_v41 = vpop.f32.mrf.mxu0  ;;  %v1565_v54 = vadd.f32 %v1452_v2, %v4356_v58  ;;  %v4485_v10 = vadd.f32 %v3359_v40, %v1567_v1 }
 0x164   : > { %v3328_v34 = vpop.f32.mrf.mxu1 }
 0x165   : > { %v1680_v36 = vpop.f32.mrf.mxu0  ;;  %v1570_v21 = vadd.f32 %v3328_v34, %v4363_v13  ;;  %v4488_v59 = vadd.f32 %v1664_v23, %v1565_v54 }
 0x166   : > { %v1465_v57 = vpop.f32.mrf.mxu1 }
 0x167   : > { %v3366_v31 = vpop.f32.mrf.mxu0  ;;  %v1568_v24 = vadd.f32 %v1465_v57, %v4366_v27  ;;  %v4491_v46 = vadd.f32 %v3362_v47, %v1570_v21 }
 0x168   : > { %v3329_v43 = vpop.f32.mrf.mxu1 }
 0x169   : > { %v1693_v5 = vpop.f32.mrf.mxu0  ;;  %v1571_v16 = vadd.f32 %v3329_v43, %v4369_v42  ;;  %v4494_v7 = vadd.f32 %v1677_v62, %v1568_v24 }
 0x16a   : > { %v1468_v58 = vpop.f32.mrf.mxu1 }
 0x16b   : > { %v3367_v25 = vpop.f32.mrf.mxu0  ;;  %v1569_v18 = vadd.f32 %v1468_v58, %v4376_v9  ;;  %v4497_v29 = vadd.f32 %v3363_v41, %v1571_v16 }
 0x16c   : > { %v3332_v13 = vpop.f32.mrf.mxu1 }
 0x16d   : > { %v1696_v17 = vpop.f32.mrf.mxu0  ;;  %v1574_v39 = vadd.f32 %v3332_v13, %v4383_v4  ;;  %v4500_v56 = vadd.f32 %v1680_v36, %v1569_v18 }
 0x16e   : > { %v1481_v27 = vpop.f32.mrf.mxu1 }
 0x16f   : > { %v3370_v40 = vpop.f32.mrf.mxu0  ;;  %v1572_v15 = vadd.f32 %v1481_v27, %v4386_v52  ;;  %v4503_v45 = vadd.f32 %v3366_v31, %v1574_v39 }
 0x170   : > { %v3333_v42 = vpop.f32.mrf.mxu1 }
 0x171   : > { %v1709_v23 = vpop.f32.mrf.mxu0  ;;  %v1575_v60 = vadd.f32 %v3333_v42, %v4389_v3  ;;  %v4506_v11 = vadd.f32 %v1693_v5, %v1572_v15 }
 0x172   : > { %v1484_v9 = vpop.f32.mrf.mxu1 }
 0x173   : > { %v3371_v47 = vpop.f32.mrf.mxu0  ;;  %v1573_v48 = vadd.f32 %v1484_v9, %v4396_v32  ;;  %v4509_v6 = vadd.f32 %v3367_v25, %v1575_v60 }
 0x174   : > { %v3336_v4 = vpop.f32.mrf.mxu1 }
 0x175   : > { %v1712_v62 = vpop.f32.mrf.mxu0  ;;  %v1578_v1 = vadd.f32 %v3336_v4, %v4403_v49  ;;  %v4512_v2 = vadd.f32 %v1696_v17, %v1573_v48 }
 0x176   : > { %v1497_v52 = vpop.f32.mrf.mxu1 }
 0x177   : > { %v3374_v41 = vpop.f32.mrf.mxu0  ;;  %v1576_v54 = vadd.f32 %v1497_v52, %v4406_v44  ;;  %v4515_v34 = vadd.f32 %v3370_v40, %v1578_v1 }
 0x178   : > { %v3337_v3 = vpop.f32.mrf.mxu1 }
 0x179   : > { %v1725_v36 = vpop.f32.mrf.mxu0  ;;  %v1579_v21 = vadd.f32 %v3337_v3, %v4409_v19  ;;  %v4518_v57 = vadd.f32 %v1709_v23, %v1576_v54 }
 0x17a   : > { %v1500_v32 = vpop.f32.mrf.mxu1 }
 0x17b   : > { %v3375_v31 = vpop.f32.mrf.mxu0  ;;  %v1577_v24 = vadd.f32 %v1500_v32, %v4416_v61  ;;  %v4521_v43 = vadd.f32 %v3371_v47, %v1579_v21 }
 0x17c   : > { %v3340_v49 = vpop.f32.mrf.mxu1 }
 0x17d   : > { %v1728_v5 = vpop.f32.mrf.mxu0  ;;  %v1582_v16 = vadd.f32 %v3340_v49, %v4423_v8  ;;  %v4524_v58 = vadd.f32 %v1712_v62, %v1577_v24 }
 0x17e   : > { %v1513_v44 = vpop.f32.mrf.mxu1 }
 0x17f   : > { %4991 = vst [vmem:[#allocation3_spill] sm:$0xff] %v4524_v58  ;;  %v3378_v25 = vpop.f32.mrf.mxu0  ;;  %v1580_v18 = vadd.f32 %v1513_v44, %v4426_v30  ;;  %v4527_v13 = vadd.f32 %v3374_v41, %v1582_v16 }
 0x180   : > { %v3341_v19 = vpop.f32.mrf.mxu1 }
 0x181   : > { %4992 = vst [vmem:[#allocation2_spill] sm:$0xff] %v4527_v13  ;;  %v1741_v17 = vpop.f32.mrf.mxu0  ;;  %v1583_v39 = vadd.f32 %v3341_v19, %v4429_v51  ;;  %v4530_v27 = vadd.f32 %v1725_v36, %v1580_v18 }
 0x182   : > { %v1516_v61 = vpop.f32.mrf.mxu1 }
 0x183   : > { %4993 = vst [vmem:[#allocation4_spill] sm:$0xff] %v4530_v27  ;;  %v3379_v40 = vpop.f32.mrf.mxu0  ;;  %v1581_v15 = vadd.f32 %v1516_v61, %v4436_v20  ;;  %v4533_v42 = vadd.f32 %v3375_v31, %v1583_v39 }
 0x184   : > { %v3344_v8 = vpop.f32.mrf.mxu1 }
 0x185   : > { %4994 = vst [vmem:[#allocation5_spill] sm:$0xff] %v4533_v42  ;;  %v1744_v23 = vpop.f32.mrf.mxu0  ;;  %v1586_v60 = vadd.f32 %v3344_v8, %v4441_v55  ;;  %v4536_v9 = vadd.f32 %v1728_v5, %v1581_v15 }
 0x186   : > { %v1529_v30 = vpop.f32.mrf.mxu1 }
 0x187   : > { %4995 = vst [vmem:[#allocation6_spill] sm:$0xff] %v4536_v9  ;;  %v3382_v47 = vpop.f32.mrf.mxu0  ;;  %v1584_v48 = vadd.f32 %v1529_v30, %v4444_v22  ;;  %v4539_v4 = vadd.f32 %v3378_v25, %v1586_v60 }
 0x188   : > { %v3345_v51 = vpop.f32.mrf.mxu1 }
 0x189   : > { %4996 = vst [vmem:[#allocation7_spill] sm:$0xff] %v4539_v4  ;;  %v1757_v62 = vpop.f32.mrf.mxu0  ;;  %v1587_v1 = vadd.f32 %v3345_v51, %v4447_v14  ;;  %v4542_v52 = vadd.f32 %v1741_v17, %v1584_v48 }
 0x18a   : > { %v1532_v20 = vpop.f32.mrf.mxu1 }
 0x18b   : > { %4997 = vst [vmem:[#allocation8_spill] sm:$0xff] %v4542_v52  ;;  %v3383_v41 = vpop.f32.mrf.mxu0  ;;  %v1585_v54 = vadd.f32 %v1532_v20, %v4452_v37  ;;  %v4545_v3 = vadd.f32 %v3379_v40, %v1587_v1 }
 0x18c   : > { %v3348_v55 = vpop.f32.mrf.mxu1 }
 0x18d   : > { %4998 = vst [vmem:[#allocation9_spill] sm:$0xff] %v4545_v3  ;;  %v1760_v36 = vpop.f32.mrf.mxu0  ;;  %v1590_v21 = vadd.f32 %v3348_v55, %v4455_v53  ;;  %v4548_v32 = vadd.f32 %v1744_v23, %v1585_v54 }
 0x18e   : > { %v1545_v22 = vpop.f32.mrf.mxu1 }
 0x18f   : > { %4999 = vst [vmem:[#allocation10_spill] sm:$0xff] %v4548_v32  ;;  %v4550_v31 = vpop.f32.mrf.mxu0  ;;  %v1588_v24 = vadd.f32 %v1545_v22, %v4458_v28  ;;  %v4553_v14 = vadd.f32 %v3382_v47, %v1590_v21 }
 0x190   : > { %v3349_v49 = vpop.f32.mrf.mxu1 }
 0x191   : > { %5000 = vst [vmem:[#allocation11_spill] sm:$0xff] %v4553_v14  ;;  %v4555_v5 = vpop.f32.mrf.mxu0  ;;  %v1591_v37 = vadd.f32 %v3349_v49, %v4461_v50  ;;  %v4558_v16 = vadd.f32 %v1757_v62, %v1588_v24 }
 0x192   : > { %v1548_v44 = vpop.f32.mrf.mxu1 }
 0x193   : > { %5001 = vst [vmem:[#allocation12_spill] sm:$0xff] %v4558_v16  ;;  %v4560_v25 = vpop.f32.mrf.mxu0  ;;  %v1589_v53 = vadd.f32 %v1548_v44, %v4464_v0  ;;  %v4563_v18 = vadd.f32 %v3383_v41, %v1591_v37 }
 0x194   : > { %v3388_v19 = vpop.f32.mrf.mxu1 }
 0x195   : > { %5002 = vst [vmem:[#allocation13_spill] sm:$0xff] %v4563_v18  ;;  %v4565_v17 = vpop.f32.mrf.mxu0  ;;  %v4567_v28 = vadd.f32 %v1760_v36, %v1589_v53 }
 0x196   : > { %v1851_v39 = vpop.f32.mrf.mxu1 }
 0x197   : > { %5003 = vst [vmem:[#allocation14_spill] sm:$0xff] %v4567_v28  ;;  %v4569_v61 = vpop.f32.mrf.mxu0 }
 0x198   : > { %v3389_v40 = vpop.f32.mrf.mxu1 }
 0x199   : > { %v4571_v15 = vpop.f32.mrf.mxu0 }
 0x19a   : > { %v1854_v50 = vpop.f32.mrf.mxu1 }
 0x19b   : > { %v4573_v8 = vpop.f32.mrf.mxu0 }
 0x19c   : > { %v3392_v23 = vpop.f32.mrf.mxu1 }
 0x19d   : > { %v4575_v60 = vpop.f32.mrf.mxu0 }
 0x19e   : > { %v1867_v0 = vpop.f32.mrf.mxu1 }
 0x19f   : > { %v4577_v30 = vpop.f32.mrf.mxu0 }
 0x1a0   : > { %v4579_v47 = vpop.f32.mrf.mxu1 }
 0x1a1   : > { %v4581_v48 = vpop.f32.mrf.mxu0 }
 0x1a2   : > { %v4583_v51 = vpop.f32.mrf.mxu1 }
 0x1a3   : > { %v4585_v62 = vpop.f32.mrf.mxu0 }
 0x1a4   : > { %v4587_v1 = vpop.f32.mrf.mxu1 }
 0x1a5   : > { %v4589_v20 = vpop.f32.mrf.mxu0 }
 0x1a6   : > { %v4591_v41 = vpop.f32.mrf.mxu1 }
 0x1a7   : > { %v4593_v54 = vpop.f32.mrf.mxu0 }
 0x1a8   : > { %v4595_v55 = vpop.f32.mrf.mxu1 }
 0x1a9   : > { %v4597_v36 = vpop.f32.mrf.mxu0 }
 0x1aa   : > { %5004 = vst [vmem:[#allocation15_spill] sm:$0xff] %v4597_v36  ;;  %v4599_v21 = vpop.f32.mrf.mxu1 }
 0x1ab   : > { %v4601_v22 = vpop.f32.mrf.mxu0 }
 0x1ac   : > { %5005 = vst [vmem:[#allocation16_spill] sm:$0xff] %v4601_v22  ;;  %v4603_v24 = vpop.f32.mrf.mxu1  ;;  %v1982_v22 = vadd.f32 %v1867_v0, %v4482_v26 }
 0x1ad   : > { %v4605_v49 = vpop.f32.mrf.mxu0 }
 0x1ae   : > { %5006 = vst [vmem:[#allocation17_spill] sm:$0xff] %v4605_v49  ;;  %v4607_v37 = vpop.f32.mrf.mxu1 }
 0x1af   : > { %v4609_v44 = vpop.f32.mrf.mxu0 }
 0x1b0   : > { %5007 = vst [vmem:[#allocation18_spill] sm:$0xff] %v4609_v44  ;;  %v4611_v53 = vpop.f32.mrf.mxu1 }
 0x1b1   : > { %v4613_v28 = vpop.f32.mrf.mxu0 }
 0x1b2   : > { %5008 = vst [vmem:[#allocation19_spill] sm:$0xff] %v4613_v28  ;;  %v4615_v18 = vpop.f32.mrf.mxu1 }
 0x1b3   : > { %v4617_v16 = vpop.f32.mrf.mxu0  ;;  %v5036_v0 = vld [vmem:[#allocation16_spill] sm:$0xff] }
 0x1b4   : > { %5009 = vst [vmem:[#allocation20_spill] sm:$0xff] %v4617_v16  ;;  %v4619_v14 = vpop.f32.mrf.mxu1 }
 0x1b5   : > { %v4621_v32 = vpop.f32.mrf.mxu0 }
 0x1b6   : > { %5010 = vst [vmem:[#allocation21_spill] sm:$0xff] %v4621_v32  ;;  %v4623_v3 = vpop.f32.mrf.mxu1 }
 0x1b7   : > { %v4625_v52 = vpop.f32.mrf.mxu0 }
 0x1b8   : > { %5011 = vst [vmem:[#allocation22_spill] sm:$0xff] %v4625_v52  ;;  %v4627_v4 = vpop.f32.mrf.mxu1 }
 0x1b9   : > { %v4629_v9 = vpop.f32.mrf.mxu0 }
 0x1ba   : > { %5012 = vst [vmem:[#allocation23_spill] sm:$0xff] %v4629_v9  ;;  %v4631_v42 = vpop.f32.mrf.mxu1 }
 0x1bb   : > { %5013 = vst [vmem:[#allocation24_spill] sm:$0xff] %v4631_v42  ;;  %v4633_v27 = vpop.f32.mrf.mxu0 }
 0x1bc   : > { %5014 = vst [vmem:[#allocation25_spill] sm:$0xff] %v4633_v27  ;;  %v4635_v13 = vpop.f32.mrf.mxu1 }
 0x1bd   : > { %5015 = vst [vmem:[#allocation26_spill] sm:$0xff] %v4635_v13  ;;  %v4637_v58 = vpop.f32.mrf.mxu0 }
 0x1be   : > { %5016 = vst [vmem:[#allocation27_spill] sm:$0xff] %v4637_v58  ;;  %v4639_v16 = vpop.f32.mrf.mxu1 }
 0x1bf   : > { %5017 = vst [vmem:[#allocation28_spill] sm:$0xff] %v4639_v16  ;;  %v4641_v28 = vpop.f32.mrf.mxu0 }
 0x1c0   : > { %5018 = vst [vmem:[#allocation29_spill] sm:$0xff] %v4641_v28  ;;  %v4643_v32 = vpop.f32.mrf.mxu1 }
 0x1c1   : > { %5019 = vst [vmem:[#allocation30_spill] sm:$0xff] %v4643_v32  ;;  %v4645_v44 = vpop.f32.mrf.mxu0 }
 0x1c2   : > { %5020 = vst [vmem:[#allocation31_spill] sm:$0xff] %v4645_v44  ;;  %v4647_v52 = vpop.f32.mrf.mxu1 }
 0x1c3   : > { %5021 = vst [vmem:[#allocation32_spill] sm:$0xff] %v4647_v52  ;;  %v4649_v49 = vpop.f32.mrf.mxu0 }
 0x1c4   : > { %5022 = vst [vmem:[#allocation33_spill] sm:$0xff] %v4649_v49  ;;  %v4651_v9 = vpop.f32.mrf.mxu1 }
 0x1c5   : > { %5023 = vst [vmem:[#allocation34_spill] sm:$0xff] %v4651_v9  ;;  %v4653_v42 = vpop.f32.mrf.mxu0 }
 0x1c6   : > { %5024 = vst [vmem:[#allocation35_spill] sm:$0xff] %v4653_v42  ;;  %v4655_v27 = vpop.f32.mrf.mxu1  ;;  %v1980_v42 = vadd.f32 %v3388_v19, %v4467_v63 }
 0x1c7   : > { %5025 = vst [vmem:[#allocation36_spill] sm:$0xff] %v4655_v27  ;;  %v4657_v13 = vpop.f32.mrf.mxu0 }
 0x1c8   : > { %5026 = vst [vmem:[#allocation37_spill] sm:$0xff] %v4657_v13  ;;  %v4659_v58 = vpop.f32.mrf.mxu1 }
 0x1c9   : > { %5027 = vst [vmem:[#allocation38_spill] sm:$0xff] %v4659_v58  ;;  %v4661_v16 = vpop.f32.mrf.mxu0  ;;  %v1978_v58 = vadd.f32 %v1851_v39, %v4470_v38  ;;  %v2180_v39 = vadd.f32 %v4571_v15, %v1982_v22 }
 0x1ca   : > { %5028 = vst [vmem:[#allocation39_spill] sm:$0xff] %v4661_v16  ;;  %v4663_v28 = vpop.f32.mrf.mxu1  ;;  %v1981_v16 = vadd.f32 %v3389_v40, %v4473_v35 }
 0x1cb   : > { %5029 = vst [vmem:[#allocation40_spill] sm:$0xff] %v4663_v28  ;;  %v4665_v32 = vpop.f32.mrf.mxu0  ;;  %v1979_v28 = vadd.f32 %v1854_v50, %v4476_v33  ;;  %v2176_v36 = vadd.f32 %v4555_v5, %v1978_v58  ;;  %v1985_v33 = vadd.f32 %v4579_v47, %v4485_v10  ;;  %v1986_v10 = vadd.f32 %v4591_v41, %v4494_v7  ;;  %v5039_v41 = vld [vmem:[#allocation19_spill] sm:$0xff] }
 0x1cc   : > { %5030 = vst [vmem:[#allocation41_spill] sm:$0xff] %v4665_v32  ;;  %v4667_v44 = vpop.f32.mrf.mxu1  ;;  %v1984_v32 = vadd.f32 %v3392_v23, %v4479_v12  ;;  %v2179_v38 = vadd.f32 %v4560_v25, %v1981_v16  ;;  %v1983_v12 = vadd.f32 %v4583_v51, %v4488_v59  ;;  %v1989_v59 = vadd.f32 %v4595_v55, %v4497_v29  ;;  %v5035_v23 = vld [vmem:[#allocation15_spill] sm:$0xff] }
 0x1cd   : > { %5031 = vst [vmem:[#allocation42_spill] sm:$0xff] %v4667_v44  ;;  %v4669_v52 = vpop.f32.mrf.mxu0  ;;  %v2177_v35 = vadd.f32 %v4565_v17, %v1979_v28  ;;  %v1992_v25 = vadd.f32 %v4603_v24, %v4503_v45  ;;  %v1990_v17 = vadd.f32 %v4607_v37, %v4506_v11  ;;  %v1993_v7 = vadd.f32 %v4611_v53, %v4509_v6  ;;  %v5040_v55 = vld [vmem:[#allocation3_spill] sm:$0xff] }
 0x1ce   : > { %5032 = vst [vmem:[#allocation43_spill] sm:$0xff] %v4669_v52  ;;  %v4671_v49 = vpop.f32.mrf.mxu1  ;;  %v1991_v29 = vadd.f32 %v4615_v18, %v4512_v2  ;;  %v1996_v45 = vadd.f32 %v4619_v14, %v4515_v34  ;;  %v1994_v11 = vadd.f32 %v4623_v3, %v4518_v57  ;;  %v2183_v40 = vadd.f32 %v4573_v8, %v1985_v33 }
 0x1cf   : > { %5033 = vst [vmem:[#allocation44_spill] sm:$0xff] %v4671_v49  ;;  %v3490_v9 = vpop.f32.mrf.mxu0  ;;  %v2178_v49 = vadd.f32 %v4550_v31, %v1980_v42  ;;  %v1988_v42 = vadd.f32 %v4587_v1, %v4491_v46  ;;  %v2182_v31 = vadd.f32 %v4569_v61, %v1984_v32  ;;  %v1987_v46 = vadd.f32 %v4599_v21, %v4500_v56  ;;  %v5038_v1 = vld [vmem:[#allocation18_spill] sm:$0xff] }
 0x1d0   : > { %v4674_v27 = vpop.f32.mrf.mxu1  ;;  %v2181_v6 = vadd.f32 %v4575_v60, %v1983_v12  ;;  %v4731_v34 = vadd.f32 %v4585_v62, %v1989_v59  ;;  %v1997_v57 = vadd.f32 %v4627_v4, %v4521_v43  ;;  %v4739_v8 = vadd.f32 %v4593_v54, %v1992_v25  ;;  %v5037_v43 = vld [vmem:[#allocation17_spill] sm:$0xff]  ;;  %v5043_v12 = vld [vmem:[#allocation2_spill] sm:$0xff] }
 0x1d1   : > { %5034 = vst [vmem:[#allocation45_spill] sm:$0xff] %v4674_v27  ;;  %v2445_v13 = vpop.f32.mrf.mxu0  ;;  %v2186_v18 = vadd.f32 %v4577_v30, %v1988_v42  ;;  %v4736_v50 = vadd.f32 %v4589_v20, %v1987_v46  ;;  %v4744_v60 = vadd.f32 %v5035_v23, %v1990_v17  ;;  %v4747_v30 = vadd.f32 %v5036_v0, %v1993_v7  ;;  %v5044_v42 = vld [vmem:[#allocation26_spill] sm:$0xff] }
 0x1d2   : > { %v4680_v44 = vpop.f32.mrf.mxu1  ;;  %v4750_v4 = vadd.f32 %v5037_v43, %v1991_v29  ;;  %v4753_v20 = vadd.f32 %v5038_v1, %v1996_v45  ;;  %v4756_v54 = vadd.f32 %v5039_v41, %v1994_v11 }
 0x1d3   : > { %v3491_v52 = vpop.f32.mrf.mxu0 }
 0x1d4   : > { %v3456_v63 = vpop.f32.mrf.mxu1 }
 0x1d5   : > { %v2448_v19 = vpop.f32.mrf.mxu0  ;;  %v2376_v27 = vadd.f32 %v3456_v63, %v2178_v49 }
 0x1d6   : > { %v2247_v26 = vpop.f32.mrf.mxu1 }
 0x1d7   : > { %v3494_v58 = vpop.f32.mrf.mxu0  ;;  %v2574_v5 = vadd.f32 %v3490_v9, %v2376_v27  ;;  %v2374_v16 = vadd.f32 %v2247_v26, %v2176_v36  ;;  %v5041_v36 = vld [vmem:[#allocation24_spill] sm:$0xff]  ;;  %v2000_v26 = vadd.f32 %v5044_v42, %v5043_v12 }
 0x1d8   : > { %v3457_v28 = vpop.f32.mrf.mxu1  ;;  %v1995_v21 = vadd.f32 %v5041_v36, %v5040_v55 }
 0x1d9   : > { %v2461_v32 = vpop.f32.mrf.mxu0  ;;  %2606 = vst.msk [vmem:[%s4698_s17 + $0x10] sm:$0xff] %vm656_vm1, %v2574_v5  ;;  %v2572_v56 = vadd.f32 %v2445_v13, %v2374_v16  ;;  %v2377_v27 = vadd.f32 %v3457_v28, %v2179_v38  ;;  %v4728_v13 = vadd.f32 %v4581_v48, %v1986_v10  ;;  %v2707_v22 = vmul.f32 %v2574_v5, %v2574_v5 }
 0x1da   : > { %v2250_v9 = vpop.f32.mrf.mxu1 }
 0x1db   : > { %v3495_v61 = vpop.f32.mrf.mxu0  ;;  %2604 = vst.msk [vmem:[%s4698_s17] sm:$0xff] %vm656_vm1, %v2572_v56  ;;  %v2575_v2 = vadd.f32 %v3491_v52, %v2377_v27  ;;  %v2375_v3 = vadd.f32 %v2250_v9, %v2177_v35  ;;  %v2705_v47 = vmul.f32 %v2572_v56, %v2572_v56  ;;  %v2636_v37 = vsel %vm656_vm1, %v2572_v56, 0.0  ;;  %v5042_v35 = vld [vmem:[#allocation20_spill] sm:$0xff] }
 0x1dc   : > { %v3460_v14 = vpop.f32.mrf.mxu1  ;;  %v4765_v33 = vadd.f32 %v5042_v35, %v1997_v57 }
 0x1dd   : > { %v2464_v15 = vpop.f32.mrf.mxu0  ;;  %2607 = vst.msk [vmem:[%s4698_s17 + $0x18] sm:$0xff] %vm656_vm1, %v2575_v2  ;;  %v2380_v52 = vadd.f32 %v3460_v14, %v2182_v31  ;;  %v2573_v48 = vadd.f32 %v2448_v19, %v2375_v3  ;;  %v2639_v31 = vsel %vm656_vm1, %v2574_v5, 0.0  ;;  %v2737_v59 = vsel %vm656_vm1, %v2705_v47, 0.0  ;;  %v5045_v5 = vld [vmem:[#allocation21_spill] sm:$0xff]  ;;  %v5047_v3 = vld [vmem:[#allocation28_spill] sm:$0xff] }
 0x1de   : > { %v2263_v51 = vpop.f32.mrf.mxu1  ;;  %v2708_v16 = vmul.f32 %v2575_v2, %v2575_v2  ;;  %v4778_v56 = vadd.f32 %v5045_v5, %v1995_v21 }
 0x1df   : > { %v3498_v62 = vpop.f32.mrf.mxu0  ;;  %v2578_v24 = vadd.f32 %v3494_v58, %v2380_v52  ;;  %v2378_v49 = vadd.f32 %v2263_v51, %v2180_v39  ;;  %2605 = vst.msk [vmem:[%s4698_s17 + $0x8] sm:$0xff] %vm656_vm1, %v2573_v48  ;;  %v2637_v53 = vsel %vm656_vm1, %v2573_v48, 0.0  ;;  %v2706_v63 = vmul.f32 %v2573_v48, %v2573_v48 }
 0x1e0   : > { %v3461_v19 = vpop.f32.mrf.mxu1  ;;  %v2638_v58 = vadd.f32 %v2637_v53, %v2636_v37  ;;  %v2740_v39 = vsel %vm656_vm1, %v2707_v22, 0.0  ;;  %v2742_v43 = vsel %vm656_vm1, %v2708_v16, 0.0  ;;  %v5049_v53 = vld [vmem:[#allocation5_spill] sm:$0xff] }
 0x1e1   : > { %v2477_v38 = vpop.f32.mrf.mxu0  ;;  %2610 = vst.msk [vmem:[%s4698_s17 + $0x30] sm:$0xff] %vm656_vm1, %v2578_v24  ;;  %v2576_v10 = vadd.f32 %v2461_v32, %v2378_v49  ;;  %v2738_v46 = vsel %vm656_vm1, %v2706_v63, 0.0  ;;  %v2381_v25 = vadd.f32 %v3461_v19, %v2183_v40  ;;  %v2641_v32 = vsel %vm656_vm1, %v2575_v2, 0.0  ;;  %v5046_v40 = vld [vmem:[#allocation4_spill] sm:$0xff]  ;;  %v5050_v63 = vld [vmem:[#allocation30_spill] sm:$0xff] }
 0x1e2   : > { %v2266_v17 = vpop.f32.mrf.mxu1  ;;  %v2640_v7 = vadd.f32 %v2639_v31, %v2638_v58  ;;  %v2739_v29 = vadd.f32 %v2738_v46, %v2737_v59  ;;  %v1998_v14 = vadd.f32 %v5047_v3, %v5046_v40  ;;  %v2711_v21 = vmul.f32 %v2578_v24, %v2578_v24  ;;  %v5054_v3 = vld [vmem:[#allocation7_spill] sm:$0xff] }
 0x1e3   : > { %v3499_v28 = vpop.f32.mrf.mxu0  ;;  %2608 = vst.msk [vmem:[%s4698_s17 + $0x20] sm:$0xff] %vm656_vm1, %v2576_v10  ;;  %v2709_v27 = vmul.f32 %v2576_v10, %v2576_v10  ;;  %v2579_v45 = vadd.f32 %v3495_v61, %v2381_v25  ;;  %v2379_v11 = vadd.f32 %v2266_v17, %v2181_v6  ;;  %v2643_v47 = vsel %vm656_vm1, %v2576_v10, 0.0  ;;  %v5048_v61 = vld [vmem:[#allocation22_spill] sm:$0xff]  ;;  %v5051_v25 = vld [vmem:[#allocation23_spill] sm:$0xff] }
 0x1e4   : > { %v3464_v9 = vpop.f32.mrf.mxu1  ;;  %v2741_v52 = vadd.f32 %v2740_v39, %v2739_v29  ;;  %v2642_v23 = vadd.f32 %v2641_v32, %v2640_v7  ;;  %v4788_v6 = vadd.f32 %v5048_v61, %v2000_v26  ;;  %v2001_v19 = vadd.f32 %v5050_v63, %v5049_v53 }
 0x1e5   : > { %v2480_v57 = vpop.f32.mrf.mxu0  ;;  %v2384_v0 = vadd.f32 %v3464_v9, %v2186_v18  ;;  %2611 = vst.msk [vmem:[%s4698_s17 + $0x38] sm:$0xff] %vm656_vm1, %v2579_v45  ;;  %v2577_v48 = vadd.f32 %v2464_v15, %v2379_v11  ;;  %v2744_v18 = vsel %vm656_vm1, %v2709_v27, 0.0  ;;  %v2647_v35 = vsel %vm656_vm1, %v2578_v24, 0.0  ;;  %v5052_v11 = vld [vmem:[#allocation6_spill] sm:$0xff]  ;;  %v5053_v9 = vld [vmem:[#allocation32_spill] sm:$0xff] }
 0x1e6   : > { %v2279_v2 = vpop.f32.mrf.mxu1  ;;  %v2644_v1 = vadd.f32 %v2643_v47, %v2642_v23  ;;  %v2743_v41 = vadd.f32 %v2742_v43, %v2741_v52  ;;  %v4804_v17 = vadd.f32 %v5051_v25, %v1998_v14  ;;  %v2748_v24 = vsel %vm656_vm1, %v2711_v21, 0.0  ;;  %v5055_v14 = vld [vmem:[#allocation34_spill] sm:$0xff] }
 0x1e7   : > { %v3502_v51 = vpop.f32.mrf.mxu0  ;;  %v2582_v55 = vadd.f32 %v3498_v62, %v2384_v0  ;;  %v2382_v36 = vadd.f32 %v2279_v2, %v4728_v13  ;;  %2609 = vst.msk [vmem:[%s4698_s17 + $0x28] sm:$0xff] %vm656_vm1, %v2577_v48  ;;  %v2645_v22 = vsel %vm656_vm1, %v2577_v48, 0.0  ;;  %v2710_v49 = vmul.f32 %v2577_v48, %v2577_v48 }
 0x1e8   : > { %v3465_v15 = vpop.f32.mrf.mxu1  ;;  %v2745_v12 = vadd.f32 %v2744_v18, %v2743_v41  ;;  %v2646_v62 = vadd.f32 %v2645_v22, %v2644_v1  ;;  %v2712_v13 = vmul.f32 %v2579_v45, %v2579_v45  ;;  %v2649_v39 = vsel %vm656_vm1, %v2579_v45, 0.0 }
 0x1e9   : > { %v2493_v37 = vpop.f32.mrf.mxu0  ;;  %2614 = vst.msk [vmem:[%s4698_s17 + $0x50] sm:$0xff] %vm656_vm1, %v2582_v55  ;;  %v2746_v42 = vsel %vm656_vm1, %v2710_v49, 0.0  ;;  %v2580_v26 = vadd.f32 %v2477_v38, %v2382_v36  ;;  %v2385_v31 = vadd.f32 %v3465_v15, %v4731_v34  ;;  %v1999_v40 = vadd.f32 %v5053_v9, %v5052_v11 }
 0x1ea   : > { %v2282_v58 = vpop.f32.mrf.mxu1  ;;  %v2648_v59 = vadd.f32 %v2647_v35, %v2646_v62  ;;  %v2747_v16 = vadd.f32 %v2746_v42, %v2745_v12  ;;  %v2004_v52 = vadd.f32 %v5055_v14, %v5054_v3  ;;  %v2750_v45 = vsel %vm656_vm1, %v2712_v13, 0.0 }
 0x1eb   : > { %v3503_v10 = vpop.f32.mrf.mxu0  ;;  %v2383_v46 = vadd.f32 %v2282_v58, %v4736_v50  ;;  %2612 = vst.msk [vmem:[%s4698_s17 + $0x40] sm:$0xff] %vm656_vm1, %v2580_v26  ;;  %v2713_v7 = vmul.f32 %v2580_v26, %v2580_v26  ;;  %v2583_v38 = vadd.f32 %v3499_v28, %v2385_v31  ;;  %v2651_v23 = vsel %vm656_vm1, %v2580_v26, 0.0 }
 0x1ec   : > { %v3468_v34 = vpop.f32.mrf.mxu1  ;;  %v2749_v5 = vadd.f32 %v2748_v24, %v2747_v16  ;;  %v2650_v32 = vadd.f32 %v2649_v39, %v2648_v59  ;;  %v2715_v48 = vmul.f32 %v2582_v55, %v2582_v55  ;;  %v2655_v15 = vsel %vm656_vm1, %v2582_v55, 0.0  ;;  %v5057_v59 = vld [vmem:[#allocation27_spill] sm:$0xff] }
 0x1ed   : > { %v2496_v29 = vpop.f32.mrf.mxu0  ;;  %v2581_v27 = vadd.f32 %v2480_v57, %v2383_v46  ;;  %v2388_v50 = vadd.f32 %v3468_v34, %v4739_v8  ;;  %2615 = vst.msk [vmem:[%s4698_s17 + $0x58] sm:$0xff] %vm656_vm1, %v2583_v38  ;;  %v2752_v2 = vsel %vm656_vm1, %v2713_v7, 0.0  ;;  %v2716_v53 = vmul.f32 %v2583_v38, %v2583_v38  ;;  %v5058_v46 = vld [vmem:[#allocation8_spill] sm:$0xff] }
 0x1ee   : > { %v2295_v28 = vpop.f32.mrf.mxu1  ;;  %v2652_v43 = vadd.f32 %v2651_v23, %v2650_v32  ;;  %v2751_v47 = vadd.f32 %v2750_v45, %v2749_v5  ;;  %v2756_v31 = vsel %vm656_vm1, %v2715_v48, 0.0  ;;  %v4838_v16 = vadd.f32 %v5057_v59, %v1999_v40 }
 0x1ef   : > { %v3506_v0 = vpop.f32.mrf.mxu0  ;;  %2613 = vst.msk [vmem:[%s4698_s17 + $0x48] sm:$0xff] %vm656_vm1, %v2581_v27  ;;  %v2653_v8 = vsel %vm656_vm1, %v2581_v27, 0.0  ;;  %v2714_v57 = vmul.f32 %v2581_v27, %v2581_v27  ;;  %v2586_v61 = vadd.f32 %v3502_v51, %v2388_v50  ;;  %v2386_v1 = vadd.f32 %v2295_v28, %v4744_v60  ;;  %v5056_v51 = vld [vmem:[#allocation25_spill] sm:$0xff] }
 0x1f0   : > { %v3469_v41 = vpop.f32.mrf.mxu1  ;;  %v2753_v21 = vadd.f32 %v2752_v2, %v2751_v47  ;;  %v2654_v18 = vadd.f32 %v2653_v8, %v2652_v43  ;;  %v4830_v60 = vadd.f32 %v5056_v51, %v2001_v19  ;;  %v5059_v19 = vld [vmem:[#allocation36_spill] sm:$0xff]  ;;  %v2758_v7 = vsel %vm656_vm1, %v2716_v53, 0.0  ;;  %v5061_v8 = vld [vmem:[#allocation9_spill] sm:$0xff]  ;;  %v5064_v51 = vld [vmem:[#allocation10_spill] sm:$0xff] }
 0x1f1   : > { %v2509_v36 = vpop.f32.mrf.mxu0  ;;  %v2754_v22 = vsel %vm656_vm1, %v2714_v57, 0.0  ;;  %v2389_v49 = vadd.f32 %v3469_v41, %v4747_v30  ;;  %2618 = vst.msk [vmem:[%s4698_s17 + $0x70] sm:$0xff] %vm656_vm1, %v2586_v61  ;;  %v2584_v63 = vadd.f32 %v2493_v37, %v2386_v1  ;;  %v2657_v30 = vsel %vm656_vm1, %v2583_v38, 0.0  ;;  %v5062_v57 = vld [vmem:[#allocation38_spill] sm:$0xff] }
 0x1f2   : > { %v2298_v35 = vpop.f32.mrf.mxu1  ;;  %v2656_v62 = vadd.f32 %v2655_v15, %v2654_v18  ;;  %v2755_v13 = vadd.f32 %v2754_v22, %v2753_v21  ;;  %v2002_v25 = vadd.f32 %v5059_v19, %v5058_v46  ;;  %v2719_v50 = vmul.f32 %v2586_v61, %v2586_v61 }
 0x1f3   : > { %v3507_v12 = vpop.f32.mrf.mxu0  ;;  %v2587_v42 = vadd.f32 %v3503_v10, %v2389_v49  ;;  %v2387_v26 = vadd.f32 %v2298_v35, %v4750_v4  ;;  %2616 = vst.msk [vmem:[%s4698_s17 + $0x60] sm:$0xff] %vm656_vm1, %v2584_v63  ;;  %v2717_v55 = vmul.f32 %v2584_v63, %v2584_v63  ;;  %v5060_v4 = vld [vmem:[#allocation29_spill] sm:$0xff]  ;;  %v2659_v38 = vsel %vm656_vm1, %v2584_v63, 0.0 }
 0x1f4   : > { %v3472_v58 = vpop.f32.mrf.mxu1  ;;  %v2757_v24 = vadd.f32 %v2756_v31, %v2755_v13  ;;  %v2658_v10 = vadd.f32 %v2657_v30, %v2656_v62  ;;  %v4845_v39 = vadd.f32 %v5060_v4, %v2004_v52  ;;  %v2663_v48 = vsel %vm656_vm1, %v2586_v61, 0.0  ;;  %v5065_v62 = vld [vmem:[#allocation40_spill] sm:$0xff] }
 0x1f5   : > { %v2512_v37 = vpop.f32.mrf.mxu0  ;;  %2619 = vst.msk [vmem:[%s4698_s17 + $0x78] sm:$0xff] %vm656_vm1, %v2587_v42  ;;  %v2585_v34 = vadd.f32 %v2496_v29, %v2387_v26  ;;  %v2392_v5 = vadd.f32 %v3472_v58, %v4753_v20  ;;  %v2760_v3 = vsel %vm656_vm1, %v2717_v55, 0.0  ;;  %v2720_v2 = vmul.f32 %v2587_v42, %v2587_v42 }
 0x1f6   : > { %v2311_v32 = vpop.f32.mrf.mxu1  ;;  %v2660_v11 = vadd.f32 %v2659_v38, %v2658_v10  ;;  %v2759_v9 = vadd.f32 %v2758_v7, %v2757_v24  ;;  %v2764_v21 = vsel %vm656_vm1, %v2719_v50, 0.0  ;;  %v2665_v49 = vsel %vm656_vm1, %v2587_v42, 0.0 }
 0x1f7   : > { %v3510_v27 = vpop.f32.mrf.mxu0  ;;  %v2390_v40 = vadd.f32 %v2311_v32, %v4756_v54  ;;  %2617 = vst.msk [vmem:[%s4698_s17 + $0x68] sm:$0xff] %vm656_vm1, %v2585_v34  ;;  %v2661_v14 = vsel %vm656_vm1, %v2585_v34, 0.0  ;;  %v2718_v52 = vmul.f32 %v2585_v34, %v2585_v34  ;;  %v2590_v45 = vadd.f32 %v3506_v0, %v2392_v5  ;;  %v5067_v5 = vld [vmem:[#allocation11_spill] sm:$0xff]  ;;  %v5068_v32 = vld [vmem:[#allocation42_spill] sm:$0xff] }
 0x1f8   : > { %v3473_v23 = vpop.f32.mrf.mxu1  ;;  %v2761_v20 = vadd.f32 %v2760_v3, %v2759_v9  ;;  %v2662_v28 = vadd.f32 %v2661_v14, %v2660_v11  ;;  %v2005_v54 = vadd.f32 %v5062_v57, %v5061_v8  ;;  %v2003_v13 = vadd.f32 %v5065_v62, %v5064_v51 }
 0x1f9   : > { %v2525_v29 = vpop.f32.mrf.mxu0  ;;  %v2588_v43 = vadd.f32 %v2509_v36, %v2390_v40  ;;  %v2393_v47 = vadd.f32 %v3473_v23, %v4765_v33  ;;  %v2762_v1 = vsel %vm656_vm1, %v2718_v52, 0.0  ;;  %2622 = vst.msk [vmem:[%s4698_s17 + $0x90] sm:$0xff] %vm656_vm1, %v2590_v45  ;;  %v5063_v33 = vld [vmem:[#allocation31_spill] sm:$0xff]  ;;  %v2766_v55 = vsel %vm656_vm1, %v2720_v2, 0.0 }
 0x1fa   : > { %v2314_v41 = vpop.f32.mrf.mxu1  ;;  %v2664_v18 = vadd.f32 %v2663_v48, %v2662_v28  ;;  %v2763_v22 = vadd.f32 %v2762_v1, %v2761_v20  ;;  %v4866_v36 = vadd.f32 %v5063_v33, %v2002_v25  ;;  %v2723_v4 = vmul.f32 %v2590_v45, %v2590_v45  ;;  %v5072_v33 = vld [vmem:[#allocation13_spill] sm:$0xff] }
 0x1fb   : > { %v3511_v0 = vpop.f32.mrf.mxu0  ;;  %2620 = vst.msk [vmem:[%s4698_s17 + $0x80] sm:$0xff] %vm656_vm1, %v2588_v43  ;;  %v2721_v61 = vmul.f32 %v2588_v43, %v2588_v43  ;;  %v2591_v15 = vadd.f32 %v3507_v12, %v2393_v47  ;;  %v2391_v53 = vadd.f32 %v2314_v41, %v4778_v56  ;;  %v2667_v58 = vsel %vm656_vm1, %v2588_v43, 0.0  ;;  %v5066_v56 = vld [vmem:[#allocation33_spill] sm:$0xff]  ;;  %v5069_v47 = vld [vmem:[#allocation35_spill] sm:$0xff] }
 0x1fc   : > { %v3476_v63 = vpop.f32.mrf.mxu1  ;;  %v2765_v26 = vadd.f32 %v2764_v21, %v2763_v22  ;;  %v2666_v31 = vadd.f32 %v2665_v49, %v2664_v18  ;;  %v2203_v46 = vadd.f32 %v5066_v56, %v2005_v54  ;;  %v2008_v50 = vadd.f32 %v5068_v32, %v5067_v5  ;;  %v5071_v18 = vld [vmem:[#allocation44_spill] sm:$0xff]  ;;  %v5073_v49 = vld [vmem:[#allocation45_spill] sm:$0xff] }
 0x1fd   : > { %v2528_v35 = vpop.f32.mrf.mxu0  ;;  %v2396_v30 = vadd.f32 %v3476_v63, %v4788_v6  ;;  %2623 = vst.msk [vmem:[%s4698_s17 + $0x98] sm:$0xff] %vm656_vm1, %v2591_v15  ;;  %v2589_v42 = vadd.f32 %v2512_v37, %v2391_v53  ;;  %v2768_v6 = vsel %vm656_vm1, %v2721_v61, 0.0  ;;  %v2671_v11 = vsel %vm656_vm1, %v2590_v45, 0.0 }
 0x1fe   : > { %v2327_v12 = vpop.f32.mrf.mxu1  ;;  %v2668_v19 = vadd.f32 %v2667_v58, %v2666_v31  ;;  %v2767_v25 = vadd.f32 %v2766_v55, %v2765_v26  ;;  %v2201_v8 = vadd.f32 %v5069_v47, %v2003_v13  ;;  %v2772_v45 = vsel %vm656_vm1, %v2723_v4, 0.0 }
 0x1ff   : > { %v3514_v59 = vpop.f32.mrf.mxu0  ;;  %v2594_v24 = vadd.f32 %v3510_v27, %v2396_v30  ;;  %v2394_v10 = vadd.f32 %v2327_v12, %v4804_v17  ;;  %2621 = vst.msk [vmem:[%s4698_s17 + $0x88] sm:$0xff] %vm656_vm1, %v2589_v42  ;;  %v2669_v7 = vsel %vm656_vm1, %v2589_v42, 0.0  ;;  %v2722_v38 = vmul.f32 %v2589_v42, %v2589_v42 }
 0x200   : > { %v3477_v34 = vpop.f32.mrf.mxu1  ;;  %v2769_v9 = vadd.f32 %v2768_v6, %v2767_v25  ;;  %v2670_v27 = vadd.f32 %v2669_v7, %v2668_v19  ;;  %v2724_v17 = vmul.f32 %v2591_v15, %v2591_v15  ;;  %v2673_v57 = vsel %vm656_vm1, %v2591_v15, 0.0  ;;  %v5074_v6 = vld [vmem:[#allocation37_spill] sm:$0xff] }
 0x201   : > { %v2541_v37 = vpop.f32.mrf.mxu0  ;;  %2626 = vst.msk [vmem:[%s4698_s17 + $0xb0] sm:$0xff] %vm656_vm1, %v2594_v24  ;;  %v2770_v40 = vsel %vm656_vm1, %v2722_v38, 0.0  ;;  %v2592_v3 = vadd.f32 %v2525_v29, %v2394_v10  ;;  %v2397_v14 = vadd.f32 %v3477_v34, %v4830_v60  ;;  %v2009_v61 = vadd.f32 %v5073_v49, %v5072_v33  ;;  %v5078_v49 = vld [vmem:[#allocation43_spill] sm:$0xff] }
 0x202   : > { %v2330_v52 = vpop.f32.mrf.mxu1  ;;  %v2672_v20 = vadd.f32 %v2671_v11, %v2670_v27  ;;  %v2771_v28 = vadd.f32 %v2770_v40, %v2769_v9  ;;  %v2774_v15 = vsel %vm656_vm1, %v2724_v17, 0.0  ;;  %v2727_v62 = vmul.f32 %v2594_v24, %v2594_v24  ;;  %v5075_v11 = vld [vmem:[#allocation39_spill] sm:$0xff]  ;;  %v5076_v27 = vld [vmem:[#allocation14_spill] sm:$0xff] }
 0x203   : > { %v3515_v23 = vpop.f32.mrf.mxu0  ;;  %v2395_v43 = vadd.f32 %v2330_v52, %v4838_v16  ;;  %2624 = vst.msk [vmem:[%s4698_s17 + $0xa0] sm:$0xff] %vm656_vm1, %v2592_v3  ;;  %v2725_v54 = vmul.f32 %v2592_v3, %v2592_v3  ;;  %v2595_v29 = vadd.f32 %v3511_v0, %v2397_v14  ;;  %v5070_v16 = vld [vmem:[#allocation12_spill] sm:$0xff]  ;;  %v2675_v53 = vsel %vm656_vm1, %v2592_v3, 0.0  ;;  %v5077_v3 = vld [vmem:[#allocation41_spill] sm:$0xff] }
 0x204   : > { %v3480_v48 = vpop.f32.mrf.mxu1  ;;  %v2773_v60 = vadd.f32 %v2772_v45, %v2771_v28  ;;  %v2674_v2 = vadd.f32 %v2673_v57, %v2672_v20  ;;  %v2006_v22 = vadd.f32 %v5071_v18, %v5070_v16  ;;  %v2679_v19 = vsel %vm656_vm1, %v2594_v24, 0.0 }
 0x205   : > { %v2593_v1 = vadd.f32 %v2528_v35, %v2395_v43  ;;  %v2400_v41 = vadd.f32 %v3480_v48, %v4845_v39  ;;  %v2544_v21 = vpop.f32.mrf.mxu0  ;;  %2627 = vst.msk [vmem:[%s4698_s17 + $0xb8] sm:$0xff] %vm656_vm1, %v2595_v29  ;;  %v2776_v13 = vsel %vm656_vm1, %v2725_v54, 0.0  ;;  %v2728_v25 = vmul.f32 %v2595_v29, %v2595_v29 }
 0x206   : > { %v2343_v0 = vpop.f32.mrf.mxu1  ;;  %v2676_v63 = vadd.f32 %v2675_v53, %v2674_v2  ;;  %v2775_v51 = vadd.f32 %v2774_v15, %v2773_v60  ;;  %v2780_v5 = vsel %vm656_vm1, %v2727_v62, 0.0  ;;  %v2681_v32 = vsel %vm656_vm1, %v2595_v29, 0.0 }
 0x207   : > { %2625 = vst.msk [vmem:[%s4698_s17 + $0xa8] sm:$0xff] %vm656_vm1, %v2593_v1  ;;  %v2677_v39 = vsel %vm656_vm1, %v2593_v1, 0.0  ;;  %v2726_v35 = vmul.f32 %v2593_v1, %v2593_v1  ;;  %v2598_v26 = vadd.f32 %v3514_v59, %v2400_v41  ;;  %v2398_v31 = vadd.f32 %v2343_v0, %v4866_v36  ;;  %v3518_v56 = vpop.f32.mrf.mxu0 }
 0x208   : > { %v3481_v30 = vpop.f32.mrf.mxu1  ;;  %v2777_v55 = vadd.f32 %v2776_v13, %v2775_v51  ;;  %v2678_v58 = vadd.f32 %v2677_v39, %v2676_v63  ;;  %v2206_v59 = vadd.f32 %v5074_v6, %v2008_v50  ;;  %v2204_v9 = vadd.f32 %v5075_v11, %v2006_v22 }
 0x209   : > { %v2778_v42 = vsel %vm656_vm1, %v2726_v35, 0.0  ;;  %v2401_v12 = vadd.f32 %v3481_v30, %v2203_v46  ;;  %2630 = vst.msk [vmem:[%s4698_s17 + $0xd0] sm:$0xff] %vm656_vm1, %v2598_v26  ;;  %v2596_v10 = vadd.f32 %v2541_v37, %v2398_v31  ;;  %v2007_v37 = vadd.f32 %v4680_v44, %v5076_v27  ;;  %v2557_v40 = vpop.f32.mrf.mxu0 }
 0x20a   : > { %v2346_v4 = vpop.f32.mrf.mxu1  ;;  %v2680_v7 = vadd.f32 %v2679_v19, %v2678_v58  ;;  %v2779_v36 = vadd.f32 %v2778_v42, %v2777_v55  ;;  %v2207_v14 = vadd.f32 %v5077_v3, %v2009_v61  ;;  %v2782_v52 = vsel %vm656_vm1, %v2728_v25, 0.0 }
 0x20b   : > { %v2599_v38 = vadd.f32 %v3515_v23, %v2401_v12  ;;  %v2399_v34 = vadd.f32 %v2346_v4, %v2201_v8  ;;  %2628 = vst.msk [vmem:[%s4698_s17 + $0xc0] sm:$0xff] %vm656_vm1, %v2596_v10  ;;  %v2729_v46 = vmul.f32 %v2596_v10, %v2596_v10  ;;  %v2683_v23 = vsel %vm656_vm1, %v2596_v10, 0.0 }
 0x20c   : > { %v3484_v24 = vpop.f32.mrf.mxu1  ;;  %v2781_v17 = vadd.f32 %v2780_v5, %v2779_v36  ;;  %v2682_v50 = vadd.f32 %v2681_v32, %v2680_v7  ;;  %v2731_v47 = vmul.f32 %v2598_v26, %v2598_v26  ;;  %v2687_v18 = vsel %vm656_vm1, %v2598_v26, 0.0 }
 0x20d   : > { %2631 = vst.msk [vmem:[%s4698_s17 + $0xd8] sm:$0xff] %vm656_vm1, %v2599_v38  ;;  %v2597_v20 = vadd.f32 %v2544_v21, %v2399_v34  ;;  %v2404_v28 = vadd.f32 %v3484_v24, %v2206_v59  ;;  %v2784_v57 = vsel %vm656_vm1, %v2729_v46, 0.0  ;;  %v3519_v21 = vpop.f32.mrf.mxu0  ;;  %v2732_v22 = vmul.f32 %v2599_v38, %v2599_v38 }
 0x20e   : > { %v2359_v43 = vpop.f32.mrf.mxu1  ;;  %v2684_v8 = vadd.f32 %v2683_v23, %v2682_v50  ;;  %v2783_v45 = vadd.f32 %v2782_v52, %v2781_v17  ;;  %v2205_v61 = vadd.f32 %v5078_v49, %v2007_v37  ;;  %v2788_v53 = vsel %vm656_vm1, %v2731_v47, 0.0 }
 0x20f   : > { %v2402_v44 = vadd.f32 %v2359_v43, %v2204_v9  ;;  %2629 = vst.msk [vmem:[%s4698_s17 + $0xc8] sm:$0xff] %vm656_vm1, %v2597_v20  ;;  %v2685_v54 = vsel %vm656_vm1, %v2597_v20, 0.0  ;;  %v2730_v29 = vmul.f32 %v2597_v20, %v2597_v20  ;;  %v2602_v48 = vadd.f32 %v3518_v56, %v2404_v28  ;;  %v2560_v31 = vpop.f32.mrf.mxu0 }
 0x210   : > { %v3485_v60 = vpop.f32.mrf.mxu1  ;;  %v2785_v2 = vadd.f32 %v2784_v57, %v2783_v45  ;;  %v2686_v1 = vadd.f32 %v2685_v54, %v2684_v8  ;;  %v2689_v51 = vsel %vm656_vm1, %v2599_v38, 0.0  ;;  %v2790_v30 = vsel %vm656_vm1, %v2732_v22, 0.0 }
 0x211   : > { %v2600_v41 = vadd.f32 %v2557_v40, %v2402_v44  ;;  %v2405_v16 = vadd.f32 %v3485_v60, %v2207_v14  ;;  %v2786_v33 = vsel %vm656_vm1, %v2730_v29, 0.0  ;;  %2634 = vst.msk [vmem:[%s4698_s17 + $0xf0] sm:$0xff] %vm656_vm1, %v2602_v48  ;;  %v2735_v56 = vmul.f32 %v2602_v48, %v2602_v48 }
 0x212   : > { %v2362_v15 = vpop.f32.mrf.mxu1  ;;  %v2688_v0 = vadd.f32 %v2687_v18, %v2686_v1  ;;  %v2787_v63 = vadd.f32 %v2786_v33, %v2785_v2  ;;  %v2695_v59 = vsel %vm656_vm1, %v2602_v48, 0.0 }
 0x213   : > { %2632 = vst.msk [vmem:[%s4698_s17 + $0xe0] sm:$0xff] %vm656_vm1, %v2600_v41  ;;  %v2733_v39 = vmul.f32 %v2600_v41, %v2600_v41  ;;  %v2603_v35 = vadd.f32 %v3519_v21, %v2405_v16  ;;  %v2403_v62 = vadd.f32 %v2362_v15, %v2205_v61  ;;  %v2691_v55 = vsel %vm656_vm1, %v2600_v41, 0.0 }
 0x214   : > { %v2789_v13 = vadd.f32 %v2788_v53, %v2787_v63  ;;  %v2690_v26 = vadd.f32 %v2689_v51, %v2688_v0  ;;  %v2796_v5 = vsel %vm656_vm1, %v2735_v56, 0.0 }
 0x215   : > { %2635 = vst.msk [vmem:[%s4698_s17 + $0xf8] sm:$0xff] %vm656_vm1, %v2603_v35  ;;  %v2601_v58 = vadd.f32 %v2560_v31, %v2403_v62  ;;  %v2792_v19 = vsel %vm656_vm1, %v2733_v39, 0.0  ;;  %v2736_v7 = vmul.f32 %v2603_v35, %v2603_v35  ;;  %v2697_v32 = vsel %vm656_vm1, %v2603_v35, 0.0 }
 0x216   : > { %v2692_v42 = vadd.f32 %v2691_v55, %v2690_v26  ;;  %v2791_v12 = vadd.f32 %v2790_v30, %v2789_v13 }
 0x217   : > { %2633 = vst.msk [vmem:[%s4698_s17 + $0xe8] sm:$0xff] %vm656_vm1, %v2601_v58  ;;  %v2693_v25 = vsel %vm656_vm1, %v2601_v58, 0.0  ;;  %v2734_v10 = vmul.f32 %v2601_v58, %v2601_v58  ;;  %v2798_v11 = vsel %vm656_vm1, %v2736_v7, 0.0 }
 0x218   : > { %v2793_v4 = vadd.f32 %v2792_v19, %v2791_v12  ;;  %v2694_v6 = vadd.f32 %v2693_v25, %v2692_v42 }
 0x219   : > { %v2794_v36 = vsel %vm656_vm1, %v2734_v10, 0.0 }
 0x21a   : > { %v2696_v38 = vadd.f32 %v2695_v59, %v2694_v6  ;;  %v2795_v34 = vadd.f32 %v2794_v36, %v2793_v4 }
 0x21c   : > { %v2698_v46 = vadd.f32 %v2697_v32, %v2696_v38  ;;  %v2797_v24 = vadd.f32 %v2796_v5, %v2795_v34 }
 0x21e   : > { %v2699_v9 = vrot.slane %v2698_v46, 4  ;;  %v2799_v27 = vadd.f32 %v2798_v11, %v2797_v24 }
 0x220   : > { %v2700_v37 = vadd.f32 %v2699_v9, %v2698_v46  ;;  %v2800_v17 = vrot.slane %v2799_v27, 4 }
 0x222   : > { %v2701_v50 = vrot.slane %v2700_v37, 2  ;;  %v2801_v40 = vadd.f32 %v2800_v17, %v2799_v27 }
 0x224   : > { %v2702_v3 = vadd.f32 %v2701_v50, %v2700_v37  ;;  %v2802_v14 = vrot.slane %v2801_v40, 2 }
 0x226   : > { %v2703_v52 = vrot.slane %v2702_v3, 1  ;;  %v2803_v23 = vadd.f32 %v2802_v14, %v2801_v40 }
 0x228   : > { %v2804_v20 = vrot.slane %v2803_v23, 1  ;;  %v2704_v28 = vadd.f32 %v2703_v52, %v2702_v3 }
 0x22a   : > { %v2805_v43 = vadd.f32 %v2804_v20, %v2803_v23 }
 0x22c   : > { %v2807_v47 = vsel %vm429_vm2, %v2704_v28, %v2805_v43 }
 0x22d   : > { %v2809_v8 = vsel %vm2808_vm7, %v2807_v47, 0.0 }
 0x22e   : > { %2810 = vst.msk [vmem:[%s235_s21] sm:$0xff] %vm656_vm1, %v2809_v8 }
 0x22f PF: > { %s16_s18 = sadd.s32 1, %s3547_s18  }
 0x230   : > { %p13_p4 = scmp.ge.s32.totalorder %s16_s18, 4  }
 0x232   :  { %15 = sbr.rel (!%p13_p4) target bundleno = 1 (0x1), region = 86 }

</bundles_post_ra>
